<compile_context>
chip_gen: v5e
topology: v5e:2x2
jax: 0.10.0
libtpu: 0.0.40
codegen_flags: <defaults>
</compile_context>

<pallas_src>
import math
import functools

import jax
import jax.numpy as jnp
from jax.experimental import pallas as pl
from jax.experimental.pallas import tpu as pltpu

F32_MIN = float(jnp.finfo(jnp.float32).min)
NEG_BIG = 1e30
LN_EPS = 1e-12   # matches nn.LayerNorm(..., eps=1e-12) in the PyTorch module
LANE = 128


def _round_up(v, m):
    return ((v + m - 1) // m) * m


# --------------------------------------------------------------------------- #
# kernel-side helpers
# --------------------------------------------------------------------------- #
def _layer_norm(v, lane_mask, gamma, beta, inv_h):
    # Padded lanes of `v` are exactly 0, so the plain lane-sum is the true sum.
    mu = jnp.sum(v, axis=-1, keepdims=True) * inv_h
    c = v - mu
    cm = c * lane_mask                           # exclude pad lanes from variance
    var = jnp.sum(cm * cm, axis=-1, keepdims=True) * inv_h
    # gamma/beta are zero on padded lanes -> padded output lanes are exactly 0.
    return c * jax.lax.rsqrt(var + LN_EPS) * gamma + beta


def _split_heads(x, nh, dkp, bb, t, cdt):
    # (bb*t, nh*dkp) -> (bb*nh, t, dkp).  Static lane slices + one stack
    # (instead of a minor-dim reshape/transpose) for robust Mosaic lowering.
    heads = [x[:, h * dkp:(h + 1) * dkp].astype(cdt) for h in range(nh)]
    hx = jnp.stack(heads, axis=0)                # (nh, bb*t, dkp)
    if bb == 1:
        return hx
    return hx.reshape(nh, bb, t, dkp).reshape(nh * bb, t, dkp)


def _merge_heads(ctx, nh, dkp, bb, t):
    # (bb*nh, t, dkp) -> (bb*t, nh*dkp); single lane-concat of nh head blocks.
    if bb != 1:
        ctx = ctx.reshape(nh, bb, t, dkp).reshape(nh, bb * t, dkp)
    return jnp.concatenate([ctx[h] for h in range(nh)], axis=-1)


def _masked_softmax(s, mask01):
    """s: (..., tq, tkv) f32; mask01 broadcastable to s, 1.0 = keep."""
    s = s + (mask01 - 1.0) * NEG_BIG             # additive mask (== masked_fill)
    m = jnp.max(s, axis=-1, keepdims=True)
    e = jnp.exp(s - m)
    p = e * pl.reciprocal(jnp.sum(e, axis=-1, keepdims=True), approx=True)
    # PyTorch: softmax(...).masked_fill(mask==0, 0); mask is exactly 0/1 so a
    # multiply is equivalent (no compare+select on the VPU).
    return p * mask01


def _attend(q, k, v, mask, nh, dkp, scale, bb, tq, tkv, cdt):
    """Head-batched attention on flat (rows, Hp) slabs.

    q: (bb*tq, nh*dkp); k, v: (bb*tkv, nh*dkp); mask: (bb, tq or 1, tkv).
    Returns the (bb*tq, nh*dkp) context (before the output projection)."""
    g = nh * bb
    qh = _split_heads(q, nh, dkp, bb, tq, cdt)
    kh = _split_heads(k, nh, dkp, bb, tkv, cdt)
    vh = _split_heads(v, nh, dkp, bb, tkv, cdt)

    s = jnp.einsum('gqd,gkd->gqk', qh, kh,
                   preferred_element_type=jnp.float32) * scale
    if bb == 1:
        p = _masked_softmax(s, mask[0])                      # (nh, tq, tkv)
    else:
        p = _masked_softmax(s.reshape(nh, bb, tq, tkv),
                            mask[None]).reshape(g, tq, tkv)

    ctx = jnp.einsum('gqk,gkd->gqd', p.astype(cdt), vh,
                     preferred_element_type=jnp.float32)
    return _merge_heads(ctx, nh, dkp, bb, tq)


def _decoder_layer_kernel(nh, dkp, dk, h_true, tq, tkv, bb, cdt,
                          x_ref, mask_ref, mem_ref, mmask_ref,
                          lane_ref,
                          n1g, n1b, n2g, n2b, n3g, n3b,
                          w_sqkv, b_sqkv, so_w, so_b,
                          cq_w, cq_b, w_ckv, b_ckv, co_w, co_b,
                          w1_w, w1_b, w2_w, w2_b,
                          out_ref):
    hp = nh * dkp
    inv_h = 1.0 / h_true
    scale = 1.0 / math.sqrt(dk)

    x = x_ref[...]                                   # (bb*T, Hp)  f32
    mem = mem_ref[...]                               # (bb*S, Hp)  f32
    mask = mask_ref[...]                             # (bb, T, T)  f32 0/1
    mmask = mmask_ref[...]                           # (bb, 1, S)  f32 0/1
    lane = lane_ref[...]                             # (1, Hp) valid-lane mask

    # ---- block 1: self attention -------------------------------------------
    res = x
    xn = _layer_norm(x, lane, n1g[...], n1b[...], inv_h)
    qkv = jnp.dot(xn.astype(cdt), w_sqkv[...],
                  preferred_element_type=jnp.float32) + b_sqkv[...]
    ctx = _attend(qkv[:, :hp], qkv[:, hp:2 * hp], qkv[:, 2 * hp:],
                  mask, nh, dkp, scale, bb, tq, tq, cdt)
    x = res + jnp.dot(ctx.astype(cdt), so_w[...],
                      preferred_element_type=jnp.float32) + so_b[...]

    # ---- block 2: source (cross) attention ----------------------------------
    res = x
    xn = _layer_norm(x, lane, n2g[...], n2b[...], inv_h)
    q = jnp.dot(xn.astype(cdt), cq_w[...],
                preferred_element_type=jnp.float32) + cq_b[...]
    kv = jnp.dot(mem.astype(cdt), w_ckv[...],
                 preferred_element_type=jnp.float32) + b_ckv[...]
    ctx = _attend(q, kv[:, :hp], kv[:, hp:],
                  mmask, nh, dkp, scale, bb, tq, tkv, cdt)
    x = res + jnp.dot(ctx.astype(cdt), co_w[...],
                      preferred_element_type=jnp.float32) + co_b[...]

    # ---- block 3: position-wise feed forward (ReLU) --------------------------
    res = x
    xn = _layer_norm(x, lane, n3g[...], n3b[...], inv_h)
    h = jnp.maximum(jnp.dot(xn.astype(cdt), w1_w[...],
                            preferred_element_type=jnp.float32) + w1_b[...], 0.0)
    ff = jnp.dot(h.astype(cdt), w2_w[...],
                 preferred_element_type=jnp.float32) + w2_b[...]
    out_ref[...] = (res + ff).astype(out_ref.dtype)


# --------------------------------------------------------------------------- #
# one-time parameter packing (fuse QKV / KV, pad H and I to lane-dense widths)
# --------------------------------------------------------------------------- #
def pack_decoder_params(p, num_heads, compute_dtype=jnp.bfloat16):
    H = p["sq_w"].shape[0]
    I = p["w1_w"].shape[1]
    nh = num_heads
    assert H % nh == 0
    dk = H // nh
    Hp = _round_up(H, LANE)
    while Hp % nh:                       # need an integer padded per-head dim
        Hp += LANE
    dkp = Hp // nh
    Ip = _round_up(I, LANE)
    cdt = compute_dtype

    def pad2(a, r, c):
        return jnp.zeros((r, c), a.dtype).at[:a.shape[0], :a.shape[1]].set(a)

    def head_out(w, b):
        # output columns are head-blocked: head h's dk cols -> [h*dkp, h*dkp+dk)
        wp = jnp.zeros((Hp, Hp), jnp.float32)
        bp = jnp.zeros((1, Hp), jnp.float32)
        for h in range(nh):
            wp = wp.at[:H, h * dkp:h * dkp + dk].set(w[:, h * dk:(h + 1) * dk])
            bp = bp.at[:, h * dkp:h * dkp + dk].set(b[:, h * dk:(h + 1) * dk])
        return wp, bp

    def head_in(w):
        # input rows are head-blocked (context concat); padded rows stay zero
        wp = jnp.zeros((Hp, Hp), jnp.float32)
        for h in range(nh):
            wp = wp.at[h * dkp:h * dkp + dk, :H].set(w[h * dk:(h + 1) * dk, :])
        return wp

    sqw, sqb = head_out(p["sq_w"], p["sq_b"])
    skw, skb = head_out(p["sk_w"], p["sk_b"])
    svw, svb = head_out(p["sv_w"], p["sv_b"])
    cqw, cqb = head_out(p["cq_w"], p["cq_b"])
    ckw, ckb = head_out(p["ck_w"], p["ck_b"])
    cvw, cvb = head_out(p["cv_w"], p["cv_b"])

    weights = [
        (jnp.arange(Hp) < H).astype(jnp.float32)[None, :],      # valid-lane mask
        pad2(p["n1g"], 1, Hp), pad2(p["n1b"], 1, Hp),
        pad2(p["n2g"], 1, Hp), pad2(p["n2b"], 1, Hp),
        pad2(p["n3g"], 1, Hp), pad2(p["n3b"], 1, Hp),
        jnp.concatenate([sqw, skw, svw], axis=1).astype(cdt),   # fused self QKV
        jnp.concatenate([sqb, skb, svb], axis=1),
        head_in(p["so_w"]).astype(cdt), pad2(p["so_b"], 1, Hp),
        cqw.astype(cdt), cqb,
        jnp.concatenate([ckw, cvw], axis=1).astype(cdt),        # fused cross KV
        jnp.concatenate([ckb, cvb], axis=1),
        head_in(p["co_w"]).astype(cdt), pad2(p["co_b"], 1, Hp),
        pad2(p["w1_w"], Hp, Ip).astype(cdt), pad2(p["w1_b"], 1, Ip),
        pad2(p["w2_w"], Ip, Hp).astype(cdt), pad2(p["w2_b"], 1, Hp),
    ]
    meta = dict(h=H, i=I, nh=nh, dk=dk, dk_pad=dkp, h_pad=Hp, i_pad=Ip,
                compute_dtype=cdt)
    return {"weights": weights, "meta": meta}


# --------------------------------------------------------------------------- #
# wrapper
# --------------------------------------------------------------------------- #
def _choose_block_b(B, T, S, row_target=512):
    """Largest block_b (flattened M = block_b*T rows) such that B % block_b == 0,
    >= 2 grid steps when B > 1 (megacore sharding / pipeline overlap), the
    flattened slabs stay 8-row aligned, and M stays VMEM-friendly."""
    best = None
    for bb in range(1, B + 1):
        if B % bb:
            continue
        nb = B // bb
        if nb > 1 and ((bb * T) % 8 or (bb * S) % 8):
            continue
        if B > 1 and nb < 2:
            continue
        if best is not None and bb * T > row_target:
            continue
        best = bb
    return best if best is not None else B


def _vmem_limit_bytes():
    try:
        cap = int(pltpu.get_tpu_info().vmem_capacity_bytes)
        # ~56 MiB on v7x (64 MiB/TC), ~100 MiB on v5e/v6e (128 MiB).
        return int(min(100 * 1024 * 1024, cap * 7 // 8))
    except Exception:
        return 48 * 1024 * 1024     # conservative default, fits every generation


def transformer_decoder_layer(x, mask, memory, memory_mask, packed, block_b=None):
    """Forward of TransformerDecoderLayer; returns (x, mask, memory, memory_mask)."""
    B, T, H = x.shape
    S = memory.shape[1]
    meta = packed["meta"]
    weights = packed["weights"]
    assert meta["h"] == H
    Hp, nh, dkp, dk = meta["h_pad"], meta["nh"], meta["dk_pad"], meta["dk"]
    cdt = meta["compute_dtype"]

    if block_b is None:
        block_b = _choose_block_b(B, T, S)
    assert B % block_b == 0
    nb = B // block_b

    # lane-pad activations and flatten block_b examples into (block_b*T, Hp) slabs
    xp = x if Hp == H else jnp.pad(x, ((0, 0), (0, 0), (0, Hp - H)))
    memp = memory if Hp == H else jnp.pad(memory, ((0, 0), (0, 0), (0, Hp - H)))
    x2 = xp.reshape(B * T, Hp)
    mem2 = memp.reshape(B * S, Hp)
    mask_f = mask.astype(jnp.float32)
    mmask_f = memory_mask.astype(jnp.float32)

    kernel = functools.partial(_decoder_layer_kernel,
                               nh, dkp, dk, H, T, S, block_b, cdt)

    act_specs = [
        pl.BlockSpec((block_b * T, Hp), lambda b: (b, 0)),
        pl.BlockSpec((block_b, T, T), lambda b: (b, 0, 0)),
        pl.BlockSpec((block_b * S, Hp), lambda b: (b, 0)),
        pl.BlockSpec((block_b, 1, S), lambda b: (b, 0, 0)),
    ]

    def _weight_spec(arr, single_buffer):
        nd = arr.ndim
        idx = lambda b, _nd=nd: (0,) * _nd
        if single_buffer:
            # grid-invariant weights: the second pipeline buffer is pure waste
            return pl.BlockSpec(arr.shape, idx, pipeline_mode=pl.Buffered(1))
        return pl.BlockSpec(arr.shape, idx)

    def _run(single_buffer_weights):
        in_specs = act_specs + [_weight_spec(w, single_buffer_weights)
                                for w in weights]
        return pl.pallas_call(
            kernel,
            out_shape=jax.ShapeDtypeStruct((B * T, Hp), x.dtype),
            grid_spec=pltpu.PrefetchScalarGridSpec(
                num_scalar_prefetch=0,
                grid=(nb,),
                in_specs=in_specs,
                out_specs=pl.BlockSpec((block_b * T, Hp), lambda b: (b, 0)),
            ),
            compiler_params=pltpu.CompilerParams(
                dimension_semantics=("parallel",),   # independent batch blocks
                vmem_limit_bytes=_vmem_limit_bytes(),
            ),
        )(x2, mask_f, mem2, mmask_f, *weights)

    try:
        out2 = _run(True)
    except Exception:   # pl.Buffered(1) not supported on this build -> default
        out2 = _run(False)

    out = out2.reshape(B, T, Hp)[..., :H]
    return out, mask, memory, memory_mask


# --------------------------------------------------------------------------- #
# pure-JAX reference (mirrors the PyTorch math; used only for the check)
# --------------------------------------------------------------------------- #
def _ref_mha(q_in, k_in, v_in, mask, wq, bq, wk, bk, wv, bv, wo, bo, nh, dk):
    tq, tk = q_in.shape[0], k_in.shape[0]
    q = (q_in @ wq + bq).reshape(tq, nh, dk).transpose(1, 0, 2)
    k = (k_in @ wk + bk).reshape(tk, nh, dk).transpose(1, 0, 2)
    v = (v_in @ wv + bv).reshape(tk, nh, dk).transpose(1, 0, 2)
    scores = jnp.einsum('htd,hsd->hts', q, k) / math.sqrt(dk)
    masked = (mask == 0.0)[None]
    scores = jnp.where(masked, F32_MIN, scores)
    attn = jax.nn.softmax(scores, axis=-1)
    attn = jnp.where(masked, 0.0, attn)
    ctx = jnp.einsum('hts,hsd->htd', attn, v).transpose(1, 0, 2).reshape(tq, nh * dk)
    return ctx @ wo + bo


def _reference(x, mask, memory, memory_mask, p, num_heads):
    dk = x.shape[-1] // num_heads

    def ln(v, g, b):
        mu = jnp.mean(v, -1, keepdims=True)
        var = jnp.mean((v - mu) ** 2, -1, keepdims=True)
        return (v - mu) / jnp.sqrt(var + LN_EPS) * g + b

    def per_example(xb, mb, memb, mmb):
        res = xb
        xn = ln(xb, p["n1g"][0], p["n1b"][0])
        xb = res + _ref_mha(xn, xn, xn, mb,
                            p["sq_w"], p["sq_b"], p["sk_w"], p["sk_b"],
                            p["sv_w"], p["sv_b"], p["so_w"], p["so_b"],
                            num_heads, dk)
        res = xb
        xn = ln(xb, p["n2g"][0], p["n2b"][0])
        xb = res + _ref_mha(xn, memb, memb, mmb,
                            p["cq_w"], p["cq_b"], p["ck_w"], p["ck_b"],
                            p["cv_w"], p["cv_b"], p["co_w"], p["co_b"],
                            num_heads, dk)
        res = xb
        xn = ln(xb, p["n3g"][0], p["n3b"][0])
        h = jnp.maximum(xn @ p["w1_w"] + p["w1_b"][0], 0.0)
        return res + (h @ p["w2_w"] + p["w2_b"][0])

    return jax.vmap(per_example)(x, mask, memory, memory_mask)


def _init_params(key, hidden, intermediate):
    keys = jax.random.split(key, 16)
    s = 0.05

    def w(k, shape):
        return (s * jax.random.normal(k, shape)).astype(jnp.float32)

    return {
        "n1g": 1.0 + w(keys[0], (1, hidden)), "n1b": w(keys[1], (1, hidden)),
        "n2g": 1.0 + w(keys[2], (1, hidden)), "n2b": w(keys[3], (1, hidden)),
        "n3g": 1.0 + w(keys[4], (1, hidden)), "n3b": w(keys[5], (1, hidden)),
        "sq_w": w(keys[6], (hidden, hidden)), "sq_b": w(keys[6], (1, hidden)),
        "sk_w": w(keys[7], (hidden, hidden)), "sk_b": w(keys[7], (1, hidden)),
        "sv_w": w(keys[8], (hidden, hidden)), "sv_b": w(keys[8], (1, hidden)),
        "so_w": w(keys[9], (hidden, hidden)), "so_b": w(keys[9], (1, hidden)),
        "cq_w": w(keys[10], (hidden, hidden)), "cq_b": w(keys[10], (1, hidden)),
        "ck_w": w(keys[11], (hidden, hidden)), "ck_b": w(keys[11], (1, hidden)),
        "cv_w": w(keys[12], (hidden, hidden)), "cv_b": w(keys[12], (1, hidden)),
        "co_w": w(keys[13], (hidden, hidden)), "co_b": w(keys[13], (1, hidden)),
        "w1_w": w(keys[14], (hidden, intermediate)), "w1_b": w(keys[14], (1, intermediate)),
        "w2_w": w(keys[15], (intermediate, hidden)), "w2_b": w(keys[15], (1, hidden)),
    }


if __name__ == "__main__":
    B, T, S, H, NH, I = 2, 8, 16, 32, 4, 64

    key = jax.random.PRNGKey(0)
    kx, kmem, kp = jax.random.split(key, 3)

    x = jax.random.normal(kx, (B, T, H), dtype=jnp.float32)
    memory = jax.random.normal(kmem, (B, S, H), dtype=jnp.float32)

    # Causal self-attention mask (B, T, T): 1.0 = attend, 0.0 = masked.
    causal = jnp.tril(jnp.ones((T, T), dtype=jnp.float32))
    mask = jnp.broadcast_to(causal, (B, T, T))

    # Memory mask (B, 1, S): second example has last 4 memory frames padded.
    mm = jnp.ones((B, 1, S), dtype=jnp.float32)
    memory_mask = mm.at[1, 0, S - 4:].set(0.0)

    params = _init_params(kp, H, I)
    ref = _reference(x, mask, memory, memory_mask, params, NH)

    # f32-packed weights: exact parity with the PyTorch module numerics.
    packed_f32 = pack_decoder_params(params, NH, compute_dtype=jnp.float32)
    out, _, _, _ = transformer_decoder_layer(x, mask, memory, memory_mask,
                                             packed_f32)
    out = jax.block_until_ready(out)
    assert out.shape == (B, T, H)
    # tolerance covers the approximate EUP reciprocal in the softmax
    assert jnp.allclose(out, ref, rtol=2e-3, atol=2e-3), "mismatch vs pure-JAX reference"

    # default bf16-packed weights: half the weight DMA / ~2x MXU throughput
    # (f32 accumulation, LayerNorm and softmax statistics are kept in f32).
    packed_bf16 = pack_decoder_params(params, NH)
    out_bf, _, _, _ = transformer_decoder_layer(x, mask, memory, memory_mask,
                                                packed_bf16)
    out_bf = jax.block_until_ready(out_bf)
    assert out_bf.shape == (B, T, H)
    assert bool(jnp.all(jnp.isfinite(out_bf)))
    assert float(jnp.max(jnp.abs(out_bf - ref))) < 0.25   # loose bf16 sanity check

    print("KERNEL_OK")
</pallas_src>

<mosaic_0001>
module attributes {stable_mosaic.version = 11 : i64} {
  func.func @_decoder_layer_kernel(%arg0: i32, %arg1: memref<8x128xf32, #tpu.memory_space<vmem>>, %arg2: memref<1x8x8xf32, #tpu.memory_space<vmem>>, %arg3: memref<16x128xf32, #tpu.memory_space<vmem>>, %arg4: memref<1x1x16xf32, #tpu.memory_space<vmem>>, %arg5: memref<1x128xf32, #tpu.memory_space<vmem>>, %arg6: memref<1x128xf32, #tpu.memory_space<vmem>>, %arg7: memref<1x128xf32, #tpu.memory_space<vmem>>, %arg8: memref<1x128xf32, #tpu.memory_space<vmem>>, %arg9: memref<1x128xf32, #tpu.memory_space<vmem>>, %arg10: memref<1x128xf32, #tpu.memory_space<vmem>>, %arg11: memref<1x128xf32, #tpu.memory_space<vmem>>, %arg12: memref<128x384xf32, #tpu.memory_space<vmem>>, %arg13: memref<1x384xf32, #tpu.memory_space<vmem>>, %arg14: memref<128x128xf32, #tpu.memory_space<vmem>>, %arg15: memref<1x128xf32, #tpu.memory_space<vmem>>, %arg16: memref<128x128xf32, #tpu.memory_space<vmem>>, %arg17: memref<1x128xf32, #tpu.memory_space<vmem>>, %arg18: memref<128x256xf32, #tpu.memory_space<vmem>>, %arg19: memref<1x256xf32, #tpu.memory_space<vmem>>, %arg20: memref<128x128xf32, #tpu.memory_space<vmem>>, %arg21: memref<1x128xf32, #tpu.memory_space<vmem>>, %arg22: memref<128x128xf32, #tpu.memory_space<vmem>>, %arg23: memref<1x128xf32, #tpu.memory_space<vmem>>, %arg24: memref<128x128xf32, #tpu.memory_space<vmem>>, %arg25: memref<1x128xf32, #tpu.memory_space<vmem>>, %arg26: memref<8x128xf32, #tpu.memory_space<vmem>>) attributes {dimension_semantics = [#tpu.dimension_semantics<parallel>], iteration_bounds = array<i64: 2>, scalar_prefetch = 0 : i64, scratch_operands = 0 : i64, tpu.core_type = #tpu.core_type<tc>, window_params = [{transform_indices = @transform_0, window_bounds = array<i64: 8, 128>}, {transform_indices = @transform_1, window_bounds = array<i64: 1, 8, 8>}, {transform_indices = @transform_2, window_bounds = array<i64: 16, 128>}, {transform_indices = @transform_3, window_bounds = array<i64: 1, 1, 16>}, {pipeline_mode = #tpu.pipeline_mode<synchronous>, transform_indices = @transform_4, window_bounds = array<i64: 1, 128>}, {pipeline_mode = #tpu.pipeline_mode<synchronous>, transform_indices = @transform_5, window_bounds = array<i64: 1, 128>}, {pipeline_mode = #tpu.pipeline_mode<synchronous>, transform_indices = @transform_6, window_bounds = array<i64: 1, 128>}, {pipeline_mode = #tpu.pipeline_mode<synchronous>, transform_indices = @transform_7, window_bounds = array<i64: 1, 128>}, {pipeline_mode = #tpu.pipeline_mode<synchronous>, transform_indices = @transform_8, window_bounds = array<i64: 1, 128>}, {pipeline_mode = #tpu.pipeline_mode<synchronous>, transform_indices = @transform_9, window_bounds = array<i64: 1, 128>}, {pipeline_mode = #tpu.pipeline_mode<synchronous>, transform_indices = @transform_10, window_bounds = array<i64: 1, 128>}, {pipeline_mode = #tpu.pipeline_mode<synchronous>, transform_indices = @transform_11, window_bounds = array<i64: 128, 384>}, {pipeline_mode = #tpu.pipeline_mode<synchronous>, transform_indices = @transform_12, window_bounds = array<i64: 1, 384>}, {pipeline_mode = #tpu.pipeline_mode<synchronous>, transform_indices = @transform_13, window_bounds = array<i64: 128, 128>}, {pipeline_mode = #tpu.pipeline_mode<synchronous>, transform_indices = @transform_14, window_bounds = array<i64: 1, 128>}, {pipeline_mode = #tpu.pipeline_mode<synchronous>, transform_indices = @transform_15, window_bounds = array<i64: 128, 128>}, {pipeline_mode = #tpu.pipeline_mode<synchronous>, transform_indices = @transform_16, window_bounds = array<i64: 1, 128>}, {pipeline_mode = #tpu.pipeline_mode<synchronous>, transform_indices = @transform_17, window_bounds = array<i64: 128, 256>}, {pipeline_mode = #tpu.pipeline_mode<synchronous>, transform_indices = @transform_18, window_bounds = array<i64: 1, 256>}, {pipeline_mode = #tpu.pipeline_mode<synchronous>, transform_indices = @transform_19, window_bounds = array<i64: 128, 128>}, {pipeline_mode = #tpu.pipeline_mode<synchronous>, transform_indices = @transform_20, window_bounds = array<i64: 1, 128>}, {pipeline_mode = #tpu.pipeline_mode<synchronous>, transform_indices = @transform_21, window_bounds = array<i64: 128, 128>}, {pipeline_mode = #tpu.pipeline_mode<synchronous>, transform_indices = @transform_22, window_bounds = array<i64: 1, 128>}, {pipeline_mode = #tpu.pipeline_mode<synchronous>, transform_indices = @transform_23, window_bounds = array<i64: 128, 128>}, {pipeline_mode = #tpu.pipeline_mode<synchronous>, transform_indices = @transform_24, window_bounds = array<i64: 1, 128>}, {transform_indices = @transform_25, window_bounds = array<i64: 8, 128>}]} {
    %c0 = arith.constant 0 : index
    %c0_0 = arith.constant 0 : index
    %0 = vector.load %arg1[%c0, %c0_0] : memref<8x128xf32, #tpu.memory_space<vmem>>, vector<8x128xf32>
    %c0_1 = arith.constant 0 : index
    %c0_2 = arith.constant 0 : index
    %1 = vector.load %arg3[%c0_1, %c0_2] : memref<16x128xf32, #tpu.memory_space<vmem>>, vector<16x128xf32>
    %c0_3 = arith.constant 0 : index
    %c0_4 = arith.constant 0 : index
    %c0_5 = arith.constant 0 : index
    %2 = vector.load %arg2[%c0_3, %c0_4, %c0_5] : memref<1x8x8xf32, #tpu.memory_space<vmem>>, vector<1x8x8xf32>
    %c0_6 = arith.constant 0 : index
    %c0_7 = arith.constant 0 : index
    %c0_8 = arith.constant 0 : index
    %3 = vector.load %arg4[%c0_6, %c0_7, %c0_8] : memref<1x1x16xf32, #tpu.memory_space<vmem>>, vector<1x1x16xf32>
    %c0_9 = arith.constant 0 : index
    %c0_10 = arith.constant 0 : index
    %4 = vector.load %arg5[%c0_9, %c0_10] : memref<1x128xf32, #tpu.memory_space<vmem>>, vector<1x128xf32>
    %c0_11 = arith.constant 0 : index
    %c0_12 = arith.constant 0 : index
    %5 = vector.load %arg6[%c0_11, %c0_12] : memref<1x128xf32, #tpu.memory_space<vmem>>, vector<1x128xf32>
    %c0_13 = arith.constant 0 : index
    %c0_14 = arith.constant 0 : index
    %6 = vector.load %arg7[%c0_13, %c0_14] : memref<1x128xf32, #tpu.memory_space<vmem>>, vector<1x128xf32>
    %cst = arith.constant dense<0.000000e+00> : vector<8xf32>
    %7 = vector.multi_reduction <add>, %0, %cst [1] : vector<8x128xf32> to vector<8xf32>
    %8 = vector.shape_cast %7 : vector<8xf32> to vector<8x1xf32>
    %cst_15 = arith.constant 3.125000e-02 : f32
    %9 = vector.broadcast %cst_15 : f32 to vector<8x1xf32>
    %10 = arith.mulf %8, %9 : vector<8x1xf32>
    %11 = vector.broadcast %10 : vector<8x1xf32> to vector<8x128xf32>
    %12 = arith.subf %0, %11 : vector<8x128xf32>
    %13 = vector.broadcast %4 : vector<1x128xf32> to vector<8x128xf32>
    %14 = arith.mulf %12, %13 : vector<8x128xf32>
    %15 = arith.mulf %14, %14 : vector<8x128xf32>
    %cst_16 = arith.constant dense<0.000000e+00> : vector<8xf32>
    %16 = vector.multi_reduction <add>, %15, %cst_16 [1] : vector<8x128xf32> to vector<8xf32>
    %17 = vector.shape_cast %16 : vector<8xf32> to vector<8x1xf32>
    %cst_17 = arith.constant 3.125000e-02 : f32
    %18 = vector.broadcast %cst_17 : f32 to vector<8x1xf32>
    %19 = arith.mulf %17, %18 : vector<8x1xf32>
    %cst_18 = arith.constant 9.99999996E-13 : f32
    %20 = vector.broadcast %cst_18 : f32 to vector<8x1xf32>
    %21 = arith.addf %19, %20 : vector<8x1xf32>
    %22 = math.rsqrt %21 : vector<8x1xf32>
    %23 = vector.broadcast %22 : vector<8x1xf32> to vector<8x128xf32>
    %24 = arith.mulf %12, %23 : vector<8x128xf32>
    %25 = vector.broadcast %5 : vector<1x128xf32> to vector<8x128xf32>
    %26 = arith.mulf %24, %25 : vector<8x128xf32>
    %27 = vector.broadcast %6 : vector<1x128xf32> to vector<8x128xf32>
    %28 = arith.addf %26, %27 : vector<8x128xf32>
    %c0_19 = arith.constant 0 : index
    %c0_20 = arith.constant 0 : index
    %29 = vector.load %arg12[%c0_19, %c0_20] : memref<128x384xf32, #tpu.memory_space<vmem>>, vector<128x384xf32>
    %cst_21 = arith.constant dense<0.000000e+00> : vector<8x384xf32>
    %30 = tpu.matmul %28, %29, %cst_21 {dimension_numbers = #tpu.dot_dimension_numbers<[1], [0], [0], [1], [0, 0, 1, 1], [], []>} : vector<8x128xf32>, vector<128x384xf32>, vector<8x384xf32> -> vector<8x384xf32>
    %c0_22 = arith.constant 0 : index
    %c0_23 = arith.constant 0 : index
    %31 = vector.load %arg13[%c0_22, %c0_23] : memref<1x384xf32, #tpu.memory_space<vmem>>, vector<1x384xf32>
    %32 = vector.broadcast %31 : vector<1x384xf32> to vector<8x384xf32>
    %33 = arith.addf %30, %32 : vector<8x384xf32>
    %34 = vector.extract_strided_slice %33 {offsets = [0, 0], sizes = [8, 128], strides = [1, 1]} : vector<8x384xf32> to vector<8x128xf32>
    %35 = vector.extract_strided_slice %33 {offsets = [0, 128], sizes = [8, 128], strides = [1, 1]} : vector<8x384xf32> to vector<8x128xf32>
    %36 = vector.extract_strided_slice %33 {offsets = [0, 256], sizes = [8, 128], strides = [1, 1]} : vector<8x384xf32> to vector<8x128xf32>
    %37 = vector.extract_strided_slice %34 {offsets = [0, 0], sizes = [8, 32], strides = [1, 1]} : vector<8x128xf32> to vector<8x32xf32>
    %38 = vector.extract_strided_slice %34 {offsets = [0, 32], sizes = [8, 32], strides = [1, 1]} : vector<8x128xf32> to vector<8x32xf32>
    %39 = vector.extract_strided_slice %34 {offsets = [0, 64], sizes = [8, 32], strides = [1, 1]} : vector<8x128xf32> to vector<8x32xf32>
    %40 = vector.extract_strided_slice %34 {offsets = [0, 96], sizes = [8, 32], strides = [1, 1]} : vector<8x128xf32> to vector<8x32xf32>
    %41 = vector.shape_cast %37 : vector<8x32xf32> to vector<1x8x32xf32>
    %42 = vector.shape_cast %38 : vector<8x32xf32> to vector<1x8x32xf32>
    %43 = vector.shape_cast %39 : vector<8x32xf32> to vector<1x8x32xf32>
    %44 = vector.shape_cast %40 : vector<8x32xf32> to vector<1x8x32xf32>
    %45 = tpu.concatenate %41, %42, %43, %44 in 0 : vector<1x8x32xf32>, vector<1x8x32xf32>, vector<1x8x32xf32>, vector<1x8x32xf32> -> vector<4x8x32xf32>
    %46 = vector.extract_strided_slice %35 {offsets = [0, 0], sizes = [8, 32], strides = [1, 1]} : vector<8x128xf32> to vector<8x32xf32>
    %47 = vector.extract_strided_slice %35 {offsets = [0, 32], sizes = [8, 32], strides = [1, 1]} : vector<8x128xf32> to vector<8x32xf32>
    %48 = vector.extract_strided_slice %35 {offsets = [0, 64], sizes = [8, 32], strides = [1, 1]} : vector<8x128xf32> to vector<8x32xf32>
    %49 = vector.extract_strided_slice %35 {offsets = [0, 96], sizes = [8, 32], strides = [1, 1]} : vector<8x128xf32> to vector<8x32xf32>
    %50 = vector.shape_cast %46 : vector<8x32xf32> to vector<1x8x32xf32>
    %51 = vector.shape_cast %47 : vector<8x32xf32> to vector<1x8x32xf32>
    %52 = vector.shape_cast %48 : vector<8x32xf32> to vector<1x8x32xf32>
    %53 = vector.shape_cast %49 : vector<8x32xf32> to vector<1x8x32xf32>
    %54 = tpu.concatenate %50, %51, %52, %53 in 0 : vector<1x8x32xf32>, vector<1x8x32xf32>, vector<1x8x32xf32>, vector<1x8x32xf32> -> vector<4x8x32xf32>
    %55 = vector.extract_strided_slice %36 {offsets = [0, 0], sizes = [8, 32], strides = [1, 1]} : vector<8x128xf32> to vector<8x32xf32>
    %56 = vector.extract_strided_slice %36 {offsets = [0, 32], sizes = [8, 32], strides = [1, 1]} : vector<8x128xf32> to vector<8x32xf32>
    %57 = vector.extract_strided_slice %36 {offsets = [0, 64], sizes = [8, 32], strides = [1, 1]} : vector<8x128xf32> to vector<8x32xf32>
    %58 = vector.extract_strided_slice %36 {offsets = [0, 96], sizes = [8, 32], strides = [1, 1]} : vector<8x128xf32> to vector<8x32xf32>
    %59 = vector.shape_cast %55 : vector<8x32xf32> to vector<1x8x32xf32>
    %60 = vector.shape_cast %56 : vector<8x32xf32> to vector<1x8x32xf32>
    %61 = vector.shape_cast %57 : vector<8x32xf32> to vector<1x8x32xf32>
    %62 = vector.shape_cast %58 : vector<8x32xf32> to vector<1x8x32xf32>
    %63 = tpu.concatenate %59, %60, %61, %62 in 0 : vector<1x8x32xf32>, vector<1x8x32xf32>, vector<1x8x32xf32>, vector<1x8x32xf32> -> vector<4x8x32xf32>
    "tpu.trace_start"() <{level = 10 : i32, message = "gqd,gkd->gqk"}> : () -> ()
    %cst_24 = arith.constant dense<0.000000e+00> : vector<4x8x8xf32>
    %64 = tpu.matmul %45, %54, %cst_24 {dimension_numbers = #tpu.dot_dimension_numbers<[2], [2], [1], [1], [0, 0, 0, 1, 1, 1], [0], [0]>} : vector<4x8x32xf32>, vector<4x8x32xf32>, vector<4x8x8xf32> -> vector<4x8x8xf32>
    "tpu.trace_stop"() : () -> ()
    %cst_25 = arith.constant 0.353553385 : f32
    %65 = vector.broadcast %cst_25 : f32 to vector<4x8x8xf32>
    %66 = arith.mulf %64, %65 : vector<4x8x8xf32>
    %67 = vector.shape_cast %2 : vector<1x8x8xf32> to vector<8x8xf32>
    %cst_26 = arith.constant 1.000000e+00 : f32
    %68 = vector.broadcast %cst_26 : f32 to vector<8x8xf32>
    %69 = arith.subf %67, %68 : vector<8x8xf32>
    %cst_27 = arith.constant 1.000000e+30 : f32
    %70 = vector.broadcast %cst_27 : f32 to vector<8x8xf32>
    %71 = arith.mulf %69, %70 : vector<8x8xf32>
    %72 = vector.shape_cast %71 : vector<8x8xf32> to vector<1x8x8xf32>
    %73 = vector.broadcast %72 : vector<1x8x8xf32> to vector<4x8x8xf32>
    %74 = arith.addf %66, %73 : vector<4x8x8xf32>
    %cst_28 = arith.constant dense<0xFF800000> : vector<4x8xf32>
    %75 = vector.multi_reduction <maximumf>, %74, %cst_28 [2] : vector<4x8x8xf32> to vector<4x8xf32>
    %76 = vector.shape_cast %75 : vector<4x8xf32> to vector<4x8x1xf32>
    %77 = vector.broadcast %76 : vector<4x8x1xf32> to vector<4x8x8xf32>
    %78 = arith.subf %74, %77 : vector<4x8x8xf32>
    %79 = math.exp %78 : vector<4x8x8xf32>
    %cst_29 = arith.constant dense<0.000000e+00> : vector<4x8xf32>
    %80 = vector.multi_reduction <add>, %79, %cst_29 [2] : vector<4x8x8xf32> to vector<4x8xf32>
    %81 = vector.shape_cast %80 : vector<4x8xf32> to vector<4x8x1xf32>
    %82 = tpu.reciprocal %81 {approx = true} : vector<4x8x1xf32> -> vector<4x8x1xf32>
    %83 = vector.broadcast %82 : vector<4x8x1xf32> to vector<4x8x8xf32>
    %84 = arith.mulf %79, %83 : vector<4x8x8xf32>
    %85 = vector.shape_cast %67 : vector<8x8xf32> to vector<1x8x8xf32>
    %86 = vector.broadcast %85 : vector<1x8x8xf32> to vector<4x8x8xf32>
    %87 = arith.mulf %84, %86 : vector<4x8x8xf32>
    "tpu.trace_start"() <{level = 10 : i32, message = "gqk,gkd->gqd"}> : () -> ()
    %cst_30 = arith.constant dense<0.000000e+00> : vector<4x8x32xf32>
    %88 = tpu.matmul %87, %63, %cst_30 {dimension_numbers = #tpu.dot_dimension_numbers<[2], [1], [1], [2], [0, 0, 0, 1, 1, 2], [0], [0]>} : vector<4x8x8xf32>, vector<4x8x32xf32>, vector<4x8x32xf32> -> vector<4x8x32xf32>
    "tpu.trace_stop"() : () -> ()
    %89 = vector.extract_strided_slice %88 {offsets = [0, 0, 0], sizes = [1, 8, 32], strides = [1, 1, 1]} : vector<4x8x32xf32> to vector<1x8x32xf32>
    %90 = vector.shape_cast %89 : vector<1x8x32xf32> to vector<8x32xf32>
    %91 = vector.extract_strided_slice %88 {offsets = [1, 0, 0], sizes = [1, 8, 32], strides = [1, 1, 1]} : vector<4x8x32xf32> to vector<1x8x32xf32>
    %92 = vector.shape_cast %91 : vector<1x8x32xf32> to vector<8x32xf32>
    %93 = vector.extract_strided_slice %88 {offsets = [2, 0, 0], sizes = [1, 8, 32], strides = [1, 1, 1]} : vector<4x8x32xf32> to vector<1x8x32xf32>
    %94 = vector.shape_cast %93 : vector<1x8x32xf32> to vector<8x32xf32>
    %95 = vector.extract_strided_slice %88 {offsets = [3, 0, 0], sizes = [1, 8, 32], strides = [1, 1, 1]} : vector<4x8x32xf32> to vector<1x8x32xf32>
    %96 = vector.shape_cast %95 : vector<1x8x32xf32> to vector<8x32xf32>
    %97 = tpu.concatenate %90, %92, %94, %96 in 1 : vector<8x32xf32>, vector<8x32xf32>, vector<8x32xf32>, vector<8x32xf32> -> vector<8x128xf32>
    %c0_31 = arith.constant 0 : index
    %c0_32 = arith.constant 0 : index
    %98 = vector.load %arg14[%c0_31, %c0_32] : memref<128x128xf32, #tpu.memory_space<vmem>>, vector<128x128xf32>
    %cst_33 = arith.constant dense<0.000000e+00> : vector<8x128xf32>
    %99 = tpu.matmul %97, %98, %cst_33 {dimension_numbers = #tpu.dot_dimension_numbers<[1], [0], [0], [1], [0, 0, 1, 1], [], []>} : vector<8x128xf32>, vector<128x128xf32>, vector<8x128xf32> -> vector<8x128xf32>
    %100 = arith.addf %0, %99 : vector<8x128xf32>
    %c0_34 = arith.constant 0 : index
    %c0_35 = arith.constant 0 : index
    %101 = vector.load %arg15[%c0_34, %c0_35] : memref<1x128xf32, #tpu.memory_space<vmem>>, vector<1x128xf32>
    %102 = vector.broadcast %101 : vector<1x128xf32> to vector<8x128xf32>
    %103 = arith.addf %100, %102 : vector<8x128xf32>
    %c0_36 = arith.constant 0 : index
    %c0_37 = arith.constant 0 : index
    %104 = vector.load %arg8[%c0_36, %c0_37] : memref<1x128xf32, #tpu.memory_space<vmem>>, vector<1x128xf32>
    %c0_38 = arith.constant 0 : index
    %c0_39 = arith.constant 0 : index
    %105 = vector.load %arg9[%c0_38, %c0_39] : memref<1x128xf32, #tpu.memory_space<vmem>>, vector<1x128xf32>
    %cst_40 = arith.constant dense<0.000000e+00> : vector<8xf32>
    %106 = vector.multi_reduction <add>, %103, %cst_40 [1] : vector<8x128xf32> to vector<8xf32>
    %107 = vector.shape_cast %106 : vector<8xf32> to vector<8x1xf32>
    %cst_41 = arith.constant 3.125000e-02 : f32
    %108 = vector.broadcast %cst_41 : f32 to vector<8x1xf32>
    %109 = arith.mulf %107, %108 : vector<8x1xf32>
    %110 = vector.broadcast %109 : vector<8x1xf32> to vector<8x128xf32>
    %111 = arith.subf %103, %110 : vector<8x128xf32>
    %112 = vector.broadcast %4 : vector<1x128xf32> to vector<8x128xf32>
    %113 = arith.mulf %111, %112 : vector<8x128xf32>
    %114 = arith.mulf %113, %113 : vector<8x128xf32>
    %cst_42 = arith.constant dense<0.000000e+00> : vector<8xf32>
    %115 = vector.multi_reduction <add>, %114, %cst_42 [1] : vector<8x128xf32> to vector<8xf32>
    %116 = vector.shape_cast %115 : vector<8xf32> to vector<8x1xf32>
    %cst_43 = arith.constant 3.125000e-02 : f32
    %117 = vector.broadcast %cst_43 : f32 to vector<8x1xf32>
    %118 = arith.mulf %116, %117 : vector<8x1xf32>
    %cst_44 = arith.constant 9.99999996E-13 : f32
    %119 = vector.broadcast %cst_44 : f32 to vector<8x1xf32>
    %120 = arith.addf %118, %119 : vector<8x1xf32>
    %121 = math.rsqrt %120 : vector<8x1xf32>
    %122 = vector.broadcast %121 : vector<8x1xf32> to vector<8x128xf32>
    %123 = arith.mulf %111, %122 : vector<8x128xf32>
    %124 = vector.broadcast %104 : vector<1x128xf32> to vector<8x128xf32>
    %125 = arith.mulf %123, %124 : vector<8x128xf32>
    %126 = vector.broadcast %105 : vector<1x128xf32> to vector<8x128xf32>
    %127 = arith.addf %125, %126 : vector<8x128xf32>
    %c0_45 = arith.constant 0 : index
    %c0_46 = arith.constant 0 : index
    %128 = vector.load %arg16[%c0_45, %c0_46] : memref<128x128xf32, #tpu.memory_space<vmem>>, vector<128x128xf32>
    %cst_47 = arith.constant dense<0.000000e+00> : vector<8x128xf32>
    %129 = tpu.matmul %127, %128, %cst_47 {dimension_numbers = #tpu.dot_dimension_numbers<[1], [0], [0], [1], [0, 0, 1, 1], [], []>} : vector<8x128xf32>, vector<128x128xf32>, vector<8x128xf32> -> vector<8x128xf32>
    %c0_48 = arith.constant 0 : index
    %c0_49 = arith.constant 0 : index
    %130 = vector.load %arg17[%c0_48, %c0_49] : memref<1x128xf32, #tpu.memory_space<vmem>>, vector<1x128xf32>
    %131 = vector.broadcast %130 : vector<1x128xf32> to vector<8x128xf32>
    %132 = arith.addf %129, %131 : vector<8x128xf32>
    %c0_50 = arith.constant 0 : index
    %c0_51 = arith.constant 0 : index
    %133 = vector.load %arg18[%c0_50, %c0_51] : memref<128x256xf32, #tpu.memory_space<vmem>>, vector<128x256xf32>
    %cst_52 = arith.constant dense<0.000000e+00> : vector<16x256xf32>
    %134 = tpu.matmul %1, %133, %cst_52 {dimension_numbers = #tpu.dot_dimension_numbers<[1], [0], [0], [1], [0, 0, 1, 1], [], []>} : vector<16x128xf32>, vector<128x256xf32>, vector<16x256xf32> -> vector<16x256xf32>
    %c0_53 = arith.constant 0 : index
    %c0_54 = arith.constant 0 : index
    %135 = vector.load %arg19[%c0_53, %c0_54] : memref<1x256xf32, #tpu.memory_space<vmem>>, vector<1x256xf32>
    %136 = vector.broadcast %135 : vector<1x256xf32> to vector<16x256xf32>
    %137 = arith.addf %134, %136 : vector<16x256xf32>
    %138 = vector.extract_strided_slice %137 {offsets = [0, 0], sizes = [16, 128], strides = [1, 1]} : vector<16x256xf32> to vector<16x128xf32>
    %139 = vector.extract_strided_slice %137 {offsets = [0, 128], sizes = [16, 128], strides = [1, 1]} : vector<16x256xf32> to vector<16x128xf32>
    %140 = vector.extract_strided_slice %132 {offsets = [0, 0], sizes = [8, 32], strides = [1, 1]} : vector<8x128xf32> to vector<8x32xf32>
    %141 = vector.extract_strided_slice %132 {offsets = [0, 32], sizes = [8, 32], strides = [1, 1]} : vector<8x128xf32> to vector<8x32xf32>
    %142 = vector.extract_strided_slice %132 {offsets = [0, 64], sizes = [8, 32], strides = [1, 1]} : vector<8x128xf32> to vector<8x32xf32>
    %143 = vector.extract_strided_slice %132 {offsets = [0, 96], sizes = [8, 32], strides = [1, 1]} : vector<8x128xf32> to vector<8x32xf32>
    %144 = vector.shape_cast %140 : vector<8x32xf32> to vector<1x8x32xf32>
    %145 = vector.shape_cast %141 : vector<8x32xf32> to vector<1x8x32xf32>
    %146 = vector.shape_cast %142 : vector<8x32xf32> to vector<1x8x32xf32>
    %147 = vector.shape_cast %143 : vector<8x32xf32> to vector<1x8x32xf32>
    %148 = tpu.concatenate %144, %145, %146, %147 in 0 : vector<1x8x32xf32>, vector<1x8x32xf32>, vector<1x8x32xf32>, vector<1x8x32xf32> -> vector<4x8x32xf32>
    %149 = vector.extract_strided_slice %138 {offsets = [0, 0], sizes = [16, 32], strides = [1, 1]} : vector<16x128xf32> to vector<16x32xf32>
    %150 = vector.extract_strided_slice %138 {offsets = [0, 32], sizes = [16, 32], strides = [1, 1]} : vector<16x128xf32> to vector<16x32xf32>
    %151 = vector.extract_strided_slice %138 {offsets = [0, 64], sizes = [16, 32], strides = [1, 1]} : vector<16x128xf32> to vector<16x32xf32>
    %152 = vector.extract_strided_slice %138 {offsets = [0, 96], sizes = [16, 32], strides = [1, 1]} : vector<16x128xf32> to vector<16x32xf32>
    %153 = vector.shape_cast %149 : vector<16x32xf32> to vector<1x16x32xf32>
    %154 = vector.shape_cast %150 : vector<16x32xf32> to vector<1x16x32xf32>
    %155 = vector.shape_cast %151 : vector<16x32xf32> to vector<1x16x32xf32>
    %156 = vector.shape_cast %152 : vector<16x32xf32> to vector<1x16x32xf32>
    %157 = tpu.concatenate %153, %154, %155, %156 in 0 : vector<1x16x32xf32>, vector<1x16x32xf32>, vector<1x16x32xf32>, vector<1x16x32xf32> -> vector<4x16x32xf32>
    %158 = vector.extract_strided_slice %139 {offsets = [0, 0], sizes = [16, 32], strides = [1, 1]} : vector<16x128xf32> to vector<16x32xf32>
    %159 = vector.extract_strided_slice %139 {offsets = [0, 32], sizes = [16, 32], strides = [1, 1]} : vector<16x128xf32> to vector<16x32xf32>
    %160 = vector.extract_strided_slice %139 {offsets = [0, 64], sizes = [16, 32], strides = [1, 1]} : vector<16x128xf32> to vector<16x32xf32>
    %161 = vector.extract_strided_slice %139 {offsets = [0, 96], sizes = [16, 32], strides = [1, 1]} : vector<16x128xf32> to vector<16x32xf32>
    %162 = vector.shape_cast %158 : vector<16x32xf32> to vector<1x16x32xf32>
    %163 = vector.shape_cast %159 : vector<16x32xf32> to vector<1x16x32xf32>
    %164 = vector.shape_cast %160 : vector<16x32xf32> to vector<1x16x32xf32>
    %165 = vector.shape_cast %161 : vector<16x32xf32> to vector<1x16x32xf32>
    %166 = tpu.concatenate %162, %163, %164, %165 in 0 : vector<1x16x32xf32>, vector<1x16x32xf32>, vector<1x16x32xf32>, vector<1x16x32xf32> -> vector<4x16x32xf32>
    "tpu.trace_start"() <{level = 10 : i32, message = "gqd,gkd->gqk"}> : () -> ()
    %cst_55 = arith.constant dense<0.000000e+00> : vector<4x8x16xf32>
    %167 = tpu.matmul %148, %157, %cst_55 {dimension_numbers = #tpu.dot_dimension_numbers<[2], [2], [1], [1], [0, 0, 0, 1, 1, 1], [0], [0]>} : vector<4x8x32xf32>, vector<4x16x32xf32>, vector<4x8x16xf32> -> vector<4x8x16xf32>
    "tpu.trace_stop"() : () -> ()
    %cst_56 = arith.constant 0.353553385 : f32
    %168 = vector.broadcast %cst_56 : f32 to vector<4x8x16xf32>
    %169 = arith.mulf %167, %168 : vector<4x8x16xf32>
    %170 = vector.shape_cast %3 : vector<1x1x16xf32> to vector<1x16xf32>
    %cst_57 = arith.constant 1.000000e+00 : f32
    %171 = vector.broadcast %cst_57 : f32 to vector<1x16xf32>
    %172 = arith.subf %170, %171 : vector<1x16xf32>
    %cst_58 = arith.constant 1.000000e+30 : f32
    %173 = vector.broadcast %cst_58 : f32 to vector<1x16xf32>
    %174 = arith.mulf %172, %173 : vector<1x16xf32>
    %175 = vector.shape_cast %174 : vector<1x16xf32> to vector<1x1x16xf32>
    %176 = vector.broadcast %175 : vector<1x1x16xf32> to vector<4x8x16xf32>
    %177 = arith.addf %169, %176 : vector<4x8x16xf32>
    %cst_59 = arith.constant dense<0xFF800000> : vector<4x8xf32>
    %178 = vector.multi_reduction <maximumf>, %177, %cst_59 [2] : vector<4x8x16xf32> to vector<4x8xf32>
    %179 = vector.shape_cast %178 : vector<4x8xf32> to vector<4x8x1xf32>
    %180 = vector.broadcast %179 : vector<4x8x1xf32> to vector<4x8x16xf32>
    %181 = arith.subf %177, %180 : vector<4x8x16xf32>
    %182 = math.exp %181 : vector<4x8x16xf32>
    %cst_60 = arith.constant dense<0.000000e+00> : vector<4x8xf32>
    %183 = vector.multi_reduction <add>, %182, %cst_60 [2] : vector<4x8x16xf32> to vector<4x8xf32>
    %184 = vector.shape_cast %183 : vector<4x8xf32> to vector<4x8x1xf32>
    %185 = tpu.reciprocal %184 {approx = true} : vector<4x8x1xf32> -> vector<4x8x1xf32>
    %186 = vector.broadcast %185 : vector<4x8x1xf32> to vector<4x8x16xf32>
    %187 = arith.mulf %182, %186 : vector<4x8x16xf32>
    %188 = vector.shape_cast %170 : vector<1x16xf32> to vector<1x1x16xf32>
    %189 = vector.broadcast %188 : vector<1x1x16xf32> to vector<4x8x16xf32>
    %190 = arith.mulf %187, %189 : vector<4x8x16xf32>
    "tpu.trace_start"() <{level = 10 : i32, message = "gqk,gkd->gqd"}> : () -> ()
    %cst_61 = arith.constant dense<0.000000e+00> : vector<4x8x32xf32>
    %191 = tpu.matmul %190, %166, %cst_61 {dimension_numbers = #tpu.dot_dimension_numbers<[2], [1], [1], [2], [0, 0, 0, 1, 1, 2], [0], [0]>} : vector<4x8x16xf32>, vector<4x16x32xf32>, vector<4x8x32xf32> -> vector<4x8x32xf32>
    "tpu.trace_stop"() : () -> ()
    %192 = vector.extract_strided_slice %191 {offsets = [0, 0, 0], sizes = [1, 8, 32], strides = [1, 1, 1]} : vector<4x8x32xf32> to vector<1x8x32xf32>
    %193 = vector.shape_cast %192 : vector<1x8x32xf32> to vector<8x32xf32>
    %194 = vector.extract_strided_slice %191 {offsets = [1, 0, 0], sizes = [1, 8, 32], strides = [1, 1, 1]} : vector<4x8x32xf32> to vector<1x8x32xf32>
    %195 = vector.shape_cast %194 : vector<1x8x32xf32> to vector<8x32xf32>
    %196 = vector.extract_strided_slice %191 {offsets = [2, 0, 0], sizes = [1, 8, 32], strides = [1, 1, 1]} : vector<4x8x32xf32> to vector<1x8x32xf32>
    %197 = vector.shape_cast %196 : vector<1x8x32xf32> to vector<8x32xf32>
    %198 = vector.extract_strided_slice %191 {offsets = [3, 0, 0], sizes = [1, 8, 32], strides = [1, 1, 1]} : vector<4x8x32xf32> to vector<1x8x32xf32>
    %199 = vector.shape_cast %198 : vector<1x8x32xf32> to vector<8x32xf32>
    %200 = tpu.concatenate %193, %195, %197, %199 in 1 : vector<8x32xf32>, vector<8x32xf32>, vector<8x32xf32>, vector<8x32xf32> -> vector<8x128xf32>
    %c0_62 = arith.constant 0 : index
    %c0_63 = arith.constant 0 : index
    %201 = vector.load %arg20[%c0_62, %c0_63] : memref<128x128xf32, #tpu.memory_space<vmem>>, vector<128x128xf32>
    %cst_64 = arith.constant dense<0.000000e+00> : vector<8x128xf32>
    %202 = tpu.matmul %200, %201, %cst_64 {dimension_numbers = #tpu.dot_dimension_numbers<[1], [0], [0], [1], [0, 0, 1, 1], [], []>} : vector<8x128xf32>, vector<128x128xf32>, vector<8x128xf32> -> vector<8x128xf32>
    %203 = arith.addf %103, %202 : vector<8x128xf32>
    %c0_65 = arith.constant 0 : index
    %c0_66 = arith.constant 0 : index
    %204 = vector.load %arg21[%c0_65, %c0_66] : memref<1x128xf32, #tpu.memory_space<vmem>>, vector<1x128xf32>
    %205 = vector.broadcast %204 : vector<1x128xf32> to vector<8x128xf32>
    %206 = arith.addf %203, %205 : vector<8x128xf32>
    %c0_67 = arith.constant 0 : index
    %c0_68 = arith.constant 0 : index
    %207 = vector.load %arg10[%c0_67, %c0_68] : memref<1x128xf32, #tpu.memory_space<vmem>>, vector<1x128xf32>
    %c0_69 = arith.constant 0 : index
    %c0_70 = arith.constant 0 : index
    %208 = vector.load %arg11[%c0_69, %c0_70] : memref<1x128xf32, #tpu.memory_space<vmem>>, vector<1x128xf32>
    %cst_71 = arith.constant dense<0.000000e+00> : vector<8xf32>
    %209 = vector.multi_reduction <add>, %206, %cst_71 [1] : vector<8x128xf32> to vector<8xf32>
    %210 = vector.shape_cast %209 : vector<8xf32> to vector<8x1xf32>
    %cst_72 = arith.constant 3.125000e-02 : f32
    %211 = vector.broadcast %cst_72 : f32 to vector<8x1xf32>
    %212 = arith.mulf %210, %211 : vector<8x1xf32>
    %213 = vector.broadcast %212 : vector<8x1xf32> to vector<8x128xf32>
    %214 = arith.subf %206, %213 : vector<8x128xf32>
    %215 = vector.broadcast %4 : vector<1x128xf32> to vector<8x128xf32>
    %216 = arith.mulf %214, %215 : vector<8x128xf32>
    %217 = arith.mulf %216, %216 : vector<8x128xf32>
    %cst_73 = arith.constant dense<0.000000e+00> : vector<8xf32>
    %218 = vector.multi_reduction <add>, %217, %cst_73 [1] : vector<8x128xf32> to vector<8xf32>
    %219 = vector.shape_cast %218 : vector<8xf32> to vector<8x1xf32>
    %cst_74 = arith.constant 3.125000e-02 : f32
    %220 = vector.broadcast %cst_74 : f32 to vector<8x1xf32>
    %221 = arith.mulf %219, %220 : vector<8x1xf32>
    %cst_75 = arith.constant 9.99999996E-13 : f32
    %222 = vector.broadcast %cst_75 : f32 to vector<8x1xf32>
    %223 = arith.addf %221, %222 : vector<8x1xf32>
    %224 = math.rsqrt %223 : vector<8x1xf32>
    %225 = vector.broadcast %224 : vector<8x1xf32> to vector<8x128xf32>
    %226 = arith.mulf %214, %225 : vector<8x128xf32>
    %227 = vector.broadcast %207 : vector<1x128xf32> to vector<8x128xf32>
    %228 = arith.mulf %226, %227 : vector<8x128xf32>
    %229 = vector.broadcast %208 : vector<1x128xf32> to vector<8x128xf32>
    %230 = arith.addf %228, %229 : vector<8x128xf32>
    %c0_76 = arith.constant 0 : index
    %c0_77 = arith.constant 0 : index
    %231 = vector.load %arg22[%c0_76, %c0_77] : memref<128x128xf32, #tpu.memory_space<vmem>>, vector<128x128xf32>
    %cst_78 = arith.constant dense<0.000000e+00> : vector<8x128xf32>
    %232 = tpu.matmul %230, %231, %cst_78 {dimension_numbers = #tpu.dot_dimension_numbers<[1], [0], [0], [1], [0, 0, 1, 1], [], []>} : vector<8x128xf32>, vector<128x128xf32>, vector<8x128xf32> -> vector<8x128xf32>
    %c0_79 = arith.constant 0 : index
    %c0_80 = arith.constant 0 : index
    %233 = vector.load %arg23[%c0_79, %c0_80] : memref<1x128xf32, #tpu.memory_space<vmem>>, vector<1x128xf32>
    %234 = vector.broadcast %233 : vector<1x128xf32> to vector<8x128xf32>
    %235 = arith.addf %232, %234 : vector<8x128xf32>
    %cst_81 = arith.constant 0.000000e+00 : f32
    %236 = vector.broadcast %cst_81 : f32 to vector<8x128xf32>
    %237 = arith.maximumf %235, %236 : vector<8x128xf32>
    %c0_82 = arith.constant 0 : index
    %c0_83 = arith.constant 0 : index
    %238 = vector.load %arg24[%c0_82, %c0_83] : memref<128x128xf32, #tpu.memory_space<vmem>>, vector<128x128xf32>
    %cst_84 = arith.constant dense<0.000000e+00> : vector<8x128xf32>
    %239 = tpu.matmul %237, %238, %cst_84 {dimension_numbers = #tpu.dot_dimension_numbers<[1], [0], [0], [1], [0, 0, 1, 1], [], []>} : vector<8x128xf32>, vector<128x128xf32>, vector<8x128xf32> -> vector<8x128xf32>
    %c0_85 = arith.constant 0 : index
    %c0_86 = arith.constant 0 : index
    %240 = vector.load %arg25[%c0_85, %c0_86] : memref<1x128xf32, #tpu.memory_space<vmem>>, vector<1x128xf32>
    %241 = vector.broadcast %240 : vector<1x128xf32> to vector<8x128xf32>
    %242 = arith.addf %239, %241 : vector<8x128xf32>
    %243 = arith.addf %206, %242 : vector<8x128xf32>
    %c0_87 = arith.constant 0 : index
    %c0_88 = arith.constant 0 : index
    %244 = vector.load %arg26[%c0_87, %c0_88] : memref<8x128xf32, #tpu.memory_space<vmem>>, vector<8x128xf32>
    tpu.vector_store %arg26[%c0_87, %c0_88], %243 {strides = array<i32>} : memref<8x128xf32, #tpu.memory_space<vmem>>, vector<8x128xf32>,
    return
  }
  func.func @transform_0(%arg0: i32) -> (i32, i32) {
    %c0_i32 = arith.constant 0 : i32
    %c0_i32_0 = arith.constant 0 : i32
    return %arg0, %c0_i32 : i32, i32
  }
  func.func @transform_1(%arg0: i32) -> (i32, i32, i32) {
    %c0_i32 = arith.constant 0 : i32
    %c0_i32_0 = arith.constant 0 : i32
    %c0_i32_1 = arith.constant 0 : i32
    return %arg0, %c0_i32, %c0_i32_0 : i32, i32, i32
  }
  func.func @transform_2(%arg0: i32) -> (i32, i32) {
    %c0_i32 = arith.constant 0 : i32
    %c0_i32_0 = arith.constant 0 : i32
    return %arg0, %c0_i32 : i32, i32
  }
  func.func @transform_3(%arg0: i32) -> (i32, i32, i32) {
    %c0_i32 = arith.constant 0 : i32
    %c0_i32_0 = arith.constant 0 : i32
    %c0_i32_1 = arith.constant 0 : i32
    return %arg0, %c0_i32, %c0_i32_0 : i32, i32, i32
  }
  func.func @transform_4(%arg0: i32) -> (i32, i32) {
    %c0_i32 = arith.constant 0 : i32
    %c0_i32_0 = arith.constant 0 : i32
    %c0_i32_1 = arith.constant 0 : i32
    return %c0_i32, %c0_i32_0 : i32, i32
  }
  func.func @transform_5(%arg0: i32) -> (i32, i32) {
    %c0_i32 = arith.constant 0 : i32
    %c0_i32_0 = arith.constant 0 : i32
    %c0_i32_1 = arith.constant 0 : i32
    return %c0_i32, %c0_i32_0 : i32, i32
  }
  func.func @transform_6(%arg0: i32) -> (i32, i32) {
    %c0_i32 = arith.constant 0 : i32
    %c0_i32_0 = arith.constant 0 : i32
    %c0_i32_1 = arith.constant 0 : i32
    return %c0_i32, %c0_i32_0 : i32, i32
  }
  func.func @transform_7(%arg0: i32) -> (i32, i32) {
    %c0_i32 = arith.constant 0 : i32
    %c0_i32_0 = arith.constant 0 : i32
    %c0_i32_1 = arith.constant 0 : i32
    return %c0_i32, %c0_i32_0 : i32, i32
  }
  func.func @transform_8(%arg0: i32) -> (i32, i32) {
    %c0_i32 = arith.constant 0 : i32
    %c0_i32_0 = arith.constant 0 : i32
    %c0_i32_1 = arith.constant 0 : i32
    return %c0_i32, %c0_i32_0 : i32, i32
  }
  func.func @transform_9(%arg0: i32) -> (i32, i32) {
    %c0_i32 = arith.constant 0 : i32
    %c0_i32_0 = arith.constant 0 : i32
    %c0_i32_1 = arith.constant 0 : i32
    return %c0_i32, %c0_i32_0 : i32, i32
  }
  func.func @transform_10(%arg0: i32) -> (i32, i32) {
    %c0_i32 = arith.constant 0 : i32
    %c0_i32_0 = arith.constant 0 : i32
    %c0_i32_1 = arith.constant 0 : i32
    return %c0_i32, %c0_i32_0 : i32, i32
  }
  func.func @transform_11(%arg0: i32) -> (i32, i32) {
    %c0_i32 = arith.constant 0 : i32
    %c0_i32_0 = arith.constant 0 : i32
    %c0_i32_1 = arith.constant 0 : i32
    return %c0_i32, %c0_i32_0 : i32, i32
  }
  func.func @transform_12(%arg0: i32) -> (i32, i32) {
    %c0_i32 = arith.constant 0 : i32
    %c0_i32_0 = arith.constant 0 : i32
    %c0_i32_1 = arith.constant 0 : i32
    return %c0_i32, %c0_i32_0 : i32, i32
  }
  func.func @transform_13(%arg0: i32) -> (i32, i32) {
    %c0_i32 = arith.constant 0 : i32
    %c0_i32_0 = arith.constant 0 : i32
    %c0_i32_1 = arith.constant 0 : i32
    return %c0_i32, %c0_i32_0 : i32, i32
  }
  func.func @transform_14(%arg0: i32) -> (i32, i32) {
    %c0_i32 = arith.constant 0 : i32
    %c0_i32_0 = arith.constant 0 : i32
    %c0_i32_1 = arith.constant 0 : i32
    return %c0_i32, %c0_i32_0 : i32, i32
  }
  func.func @transform_15(%arg0: i32) -> (i32, i32) {
    %c0_i32 = arith.constant 0 : i32
    %c0_i32_0 = arith.constant 0 : i32
    %c0_i32_1 = arith.constant 0 : i32
    return %c0_i32, %c0_i32_0 : i32, i32
  }
  func.func @transform_16(%arg0: i32) -> (i32, i32) {
    %c0_i32 = arith.constant 0 : i32
    %c0_i32_0 = arith.constant 0 : i32
    %c0_i32_1 = arith.constant 0 : i32
    return %c0_i32, %c0_i32_0 : i32, i32
  }
  func.func @transform_17(%arg0: i32) -> (i32, i32) {
    %c0_i32 = arith.constant 0 : i32
    %c0_i32_0 = arith.constant 0 : i32
    %c0_i32_1 = arith.constant 0 : i32
    return %c0_i32, %c0_i32_0 : i32, i32
  }
  func.func @transform_18(%arg0: i32) -> (i32, i32) {
    %c0_i32 = arith.constant 0 : i32
    %c0_i32_0 = arith.constant 0 : i32
    %c0_i32_1 = arith.constant 0 : i32
    return %c0_i32, %c0_i32_0 : i32, i32
  }
  func.func @transform_19(%arg0: i32) -> (i32, i32) {
    %c0_i32 = arith.constant 0 : i32
    %c0_i32_0 = arith.constant 0 : i32
    %c0_i32_1 = arith.constant 0 : i32
    return %c0_i32, %c0_i32_0 : i32, i32
  }
  func.func @transform_20(%arg0: i32) -> (i32, i32) {
    %c0_i32 = arith.constant 0 : i32
    %c0_i32_0 = arith.constant 0 : i32
    %c0_i32_1 = arith.constant 0 : i32
    return %c0_i32, %c0_i32_0 : i32, i32
  }
  func.func @transform_21(%arg0: i32) -> (i32, i32) {
    %c0_i32 = arith.constant 0 : i32
    %c0_i32_0 = arith.constant 0 : i32
    %c0_i32_1 = arith.constant 0 : i32
    return %c0_i32, %c0_i32_0 : i32, i32
  }
  func.func @transform_22(%arg0: i32) -> (i32, i32) {
    %c0_i32 = arith.constant 0 : i32
    %c0_i32_0 = arith.constant 0 : i32
    %c0_i32_1 = arith.constant 0 : i32
    return %c0_i32, %c0_i32_0 : i32, i32
  }
  func.func @transform_23(%arg0: i32) -> (i32, i32) {
    %c0_i32 = arith.constant 0 : i32
    %c0_i32_0 = arith.constant 0 : i32
    %c0_i32_1 = arith.constant 0 : i32
    return %c0_i32, %c0_i32_0 : i32, i32
  }
  func.func @transform_24(%arg0: i32) -> (i32, i32) {
    %c0_i32 = arith.constant 0 : i32
    %c0_i32_0 = arith.constant 0 : i32
    %c0_i32_1 = arith.constant 0 : i32
    return %c0_i32, %c0_i32_0 : i32, i32
  }
  func.func @transform_25(%arg0: i32) -> (i32, i32) {
    %c0_i32 = arith.constant 0 : i32
    %c0_i32_0 = arith.constant 0 : i32
    return %arg0, %c0_i32 : i32, i32
  }
}

module attributes {stable_mosaic.version = 11 : i64} {
  func.func @_decoder_layer_kernel(%arg0: i32, %arg1: memref<8x128xf32, #tpu.memory_space<vmem>>, %arg2: memref<1x8x8xf32, #tpu.memory_space<vmem>>, %arg3: memref<16x128xf32, #tpu.memory_space<vmem>>, %arg4: memref<1x1x16xf32, #tpu.memory_space<vmem>>, %arg5: memref<1x128xf32, #tpu.memory_space<vmem>>, %arg6: memref<1x128xf32, #tpu.memory_space<vmem>>, %arg7: memref<1x128xf32, #tpu.memory_space<vmem>>, %arg8: memref<1x128xf32, #tpu.memory_space<vmem>>, %arg9: memref<1x128xf32, #tpu.memory_space<vmem>>, %arg10: memref<1x128xf32, #tpu.memory_space<vmem>>, %arg11: memref<1x128xf32, #tpu.memory_space<vmem>>, %arg12: memref<128x384xf32, #tpu.memory_space<vmem>>, %arg13: memref<1x384xf32, #tpu.memory_space<vmem>>, %arg14: memref<128x128xf32, #tpu.memory_space<vmem>>, %arg15: memref<1x128xf32, #tpu.memory_space<vmem>>, %arg16: memref<128x128xf32, #tpu.memory_space<vmem>>, %arg17: memref<1x128xf32, #tpu.memory_space<vmem>>, %arg18: memref<128x256xf32, #tpu.memory_space<vmem>>, %arg19: memref<1x256xf32, #tpu.memory_space<vmem>>, %arg20: memref<128x128xf32, #tpu.memory_space<vmem>>, %arg21: memref<1x128xf32, #tpu.memory_space<vmem>>, %arg22: memref<128x128xf32, #tpu.memory_space<vmem>>, %arg23: memref<1x128xf32, #tpu.memory_space<vmem>>, %arg24: memref<128x128xf32, #tpu.memory_space<vmem>>, %arg25: memref<1x128xf32, #tpu.memory_space<vmem>>, %arg26: memref<8x128xf32, #tpu.memory_space<vmem>>) attributes {dimension_semantics = [#tpu.dimension_semantics<parallel>], iteration_bounds = array<i64: 2>, scalar_prefetch = 0 : i64, scratch_operands = 0 : i64, tpu.core_type = #tpu.core_type<tc>, window_params = [{transform_indices = @transform_0, window_bounds = array<i64: 8, 128>}, {transform_indices = @transform_1, window_bounds = array<i64: 1, 8, 8>}, {transform_indices = @transform_2, window_bounds = array<i64: 16, 128>}, {transform_indices = @transform_3, window_bounds = array<i64: 1, 1, 16>}, {pipeline_mode = #tpu.pipeline_mode<synchronous>, transform_indices = @transform_4, window_bounds = array<i64: 1, 128>}, {pipeline_mode = #tpu.pipeline_mode<synchronous>, transform_indices = @transform_5, window_bounds = array<i64: 1, 128>}, {pipeline_mode = #tpu.pipeline_mode<synchronous>, transform_indices = @transform_6, window_bounds = array<i64: 1, 128>}, {pipeline_mode = #tpu.pipeline_mode<synchronous>, transform_indices = @transform_7, window_bounds = array<i64: 1, 128>}, {pipeline_mode = #tpu.pipeline_mode<synchronous>, transform_indices = @transform_8, window_bounds = array<i64: 1, 128>}, {pipeline_mode = #tpu.pipeline_mode<synchronous>, transform_indices = @transform_9, window_bounds = array<i64: 1, 128>}, {pipeline_mode = #tpu.pipeline_mode<synchronous>, transform_indices = @transform_10, window_bounds = array<i64: 1, 128>}, {pipeline_mode = #tpu.pipeline_mode<synchronous>, transform_indices = @transform_11, window_bounds = array<i64: 128, 384>}, {pipeline_mode = #tpu.pipeline_mode<synchronous>, transform_indices = @transform_12, window_bounds = array<i64: 1, 384>}, {pipeline_mode = #tpu.pipeline_mode<synchronous>, transform_indices = @transform_13, window_bounds = array<i64: 128, 128>}, {pipeline_mode = #tpu.pipeline_mode<synchronous>, transform_indices = @transform_14, window_bounds = array<i64: 1, 128>}, {pipeline_mode = #tpu.pipeline_mode<synchronous>, transform_indices = @transform_15, window_bounds = array<i64: 128, 128>}, {pipeline_mode = #tpu.pipeline_mode<synchronous>, transform_indices = @transform_16, window_bounds = array<i64: 1, 128>}, {pipeline_mode = #tpu.pipeline_mode<synchronous>, transform_indices = @transform_17, window_bounds = array<i64: 128, 256>}, {pipeline_mode = #tpu.pipeline_mode<synchronous>, transform_indices = @transform_18, window_bounds = array<i64: 1, 256>}, {pipeline_mode = #tpu.pipeline_mode<synchronous>, transform_indices = @transform_19, window_bounds = array<i64: 128, 128>}, {pipeline_mode = #tpu.pipeline_mode<synchronous>, transform_indices = @transform_20, window_bounds = array<i64: 1, 128>}, {pipeline_mode = #tpu.pipeline_mode<synchronous>, transform_indices = @transform_21, window_bounds = array<i64: 128, 128>}, {pipeline_mode = #tpu.pipeline_mode<synchronous>, transform_indices = @transform_22, window_bounds = array<i64: 1, 128>}, {pipeline_mode = #tpu.pipeline_mode<synchronous>, transform_indices = @transform_23, window_bounds = array<i64: 128, 128>}, {pipeline_mode = #tpu.pipeline_mode<synchronous>, transform_indices = @transform_24, window_bounds = array<i64: 1, 128>}, {transform_indices = @transform_25, window_bounds = array<i64: 8, 128>}]} {
    %c0 = arith.constant 0 : index
    %c0_0 = arith.constant 0 : index
    %0 = vector.load %arg1[%c0, %c0_0] : memref<8x128xf32, #tpu.memory_space<vmem>>, vector<8x128xf32>
    %c0_1 = arith.constant 0 : index
    %c0_2 = arith.constant 0 : index
    %1 = vector.load %arg3[%c0_1, %c0_2] : memref<16x128xf32, #tpu.memory_space<vmem>>, vector<16x128xf32>
    %c0_3 = arith.constant 0 : index
    %c0_4 = arith.constant 0 : index
    %c0_5 = arith.constant 0 : index
    %2 = vector.load %arg2[%c0_3, %c0_4, %c0_5] : memref<1x8x8xf32, #tpu.memory_space<vmem>>, vector<1x8x8xf32>
    %c0_6 = arith.constant 0 : index
    %c0_7 = arith.constant 0 : index
    %c0_8 = arith.constant 0 : index
    %3 = vector.load %arg4[%c0_6, %c0_7, %c0_8] : memref<1x1x16xf32, #tpu.memory_space<vmem>>, vector<1x1x16xf32>
    %c0_9 = arith.constant 0 : index
    %c0_10 = arith.constant 0 : index
    %4 = vector.load %arg5[%c0_9, %c0_10] : memref<1x128xf32, #tpu.memory_space<vmem>>, vector<1x128xf32>
    %c0_11 = arith.constant 0 : index
    %c0_12 = arith.constant 0 : index
    %5 = vector.load %arg6[%c0_11, %c0_12] : memref<1x128xf32, #tpu.memory_space<vmem>>, vector<1x128xf32>
    %c0_13 = arith.constant 0 : index
    %c0_14 = arith.constant 0 : index
    %6 = vector.load %arg7[%c0_13, %c0_14] : memref<1x128xf32, #tpu.memory_space<vmem>>, vector<1x128xf32>
    %cst = arith.constant dense<0.000000e+00> : vector<8xf32>
    %7 = vector.multi_reduction <add>, %0, %cst [1] : vector<8x128xf32> to vector<8xf32>
    %8 = vector.shape_cast %7 : vector<8xf32> to vector<8x1xf32>
    %cst_15 = arith.constant 3.125000e-02 : f32
    %9 = vector.broadcast %cst_15 : f32 to vector<8x1xf32>
    %10 = arith.mulf %8, %9 : vector<8x1xf32>
    %11 = vector.broadcast %10 : vector<8x1xf32> to vector<8x128xf32>
    %12 = arith.subf %0, %11 : vector<8x128xf32>
    %13 = vector.broadcast %4 : vector<1x128xf32> to vector<8x128xf32>
    %14 = arith.mulf %12, %13 : vector<8x128xf32>
    %15 = arith.mulf %14, %14 : vector<8x128xf32>
    %cst_16 = arith.constant dense<0.000000e+00> : vector<8xf32>
    %16 = vector.multi_reduction <add>, %15, %cst_16 [1] : vector<8x128xf32> to vector<8xf32>
    %17 = vector.shape_cast %16 : vector<8xf32> to vector<8x1xf32>
    %cst_17 = arith.constant 3.125000e-02 : f32
    %18 = vector.broadcast %cst_17 : f32 to vector<8x1xf32>
    %19 = arith.mulf %17, %18 : vector<8x1xf32>
    %cst_18 = arith.constant 9.99999996E-13 : f32
    %20 = vector.broadcast %cst_18 : f32 to vector<8x1xf32>
    %21 = arith.addf %19, %20 : vector<8x1xf32>
    %22 = math.rsqrt %21 : vector<8x1xf32>
    %23 = vector.broadcast %22 : vector<8x1xf32> to vector<8x128xf32>
    %24 = arith.mulf %12, %23 : vector<8x128xf32>
    %25 = vector.broadcast %5 : vector<1x128xf32> to vector<8x128xf32>
    %26 = arith.mulf %24, %25 : vector<8x128xf32>
    %27 = vector.broadcast %6 : vector<1x128xf32> to vector<8x128xf32>
    %28 = arith.addf %26, %27 : vector<8x128xf32>
    %c0_19 = arith.constant 0 : index
    %c0_20 = arith.constant 0 : index
    %29 = vector.load %arg12[%c0_19, %c0_20] : memref<128x384xf32, #tpu.memory_space<vmem>>, vector<128x384xf32>
    %cst_21 = arith.constant dense<0.000000e+00> : vector<8x384xf32>
    %30 = tpu.matmul %28, %29, %cst_21 {dimension_numbers = #tpu.dot_dimension_numbers<[1], [0], [0], [1], [0, 0, 1, 1], [], []>} : vector<8x128xf32>, vector<128x384xf32>, vector<8x384xf32> -> vector<8x384xf32>
    %c0_22 = arith.constant 0 : index
    %c0_23 = arith.constant 0 : index
    %31 = vector.load %arg13[%c0_22, %c0_23] : memref<1x384xf32, #tpu.memory_space<vmem>>, vector<1x384xf32>
    %32 = vector.broadcast %31 : vector<1x384xf32> to vector<8x384xf32>
    %33 = arith.addf %30, %32 : vector<8x384xf32>
    %34 = vector.extract_strided_slice %33 {offsets = [0, 0], sizes = [8, 128], strides = [1, 1]} : vector<8x384xf32> to vector<8x128xf32>
    %35 = vector.extract_strided_slice %33 {offsets = [0, 128], sizes = [8, 128], strides = [1, 1]} : vector<8x384xf32> to vector<8x128xf32>
    %36 = vector.extract_strided_slice %33 {offsets = [0, 256], sizes = [8, 128], strides = [1, 1]} : vector<8x384xf32> to vector<8x128xf32>
    %37 = vector.extract_strided_slice %34 {offsets = [0, 0], sizes = [8, 32], strides = [1, 1]} : vector<8x128xf32> to vector<8x32xf32>
    %38 = vector.extract_strided_slice %34 {offsets = [0, 32], sizes = [8, 32], strides = [1, 1]} : vector<8x128xf32> to vector<8x32xf32>
    %39 = vector.extract_strided_slice %34 {offsets = [0, 64], sizes = [8, 32], strides = [1, 1]} : vector<8x128xf32> to vector<8x32xf32>
    %40 = vector.extract_strided_slice %34 {offsets = [0, 96], sizes = [8, 32], strides = [1, 1]} : vector<8x128xf32> to vector<8x32xf32>
    %41 = vector.shape_cast %37 : vector<8x32xf32> to vector<1x8x32xf32>
    %42 = vector.shape_cast %38 : vector<8x32xf32> to vector<1x8x32xf32>
    %43 = vector.shape_cast %39 : vector<8x32xf32> to vector<1x8x32xf32>
    %44 = vector.shape_cast %40 : vector<8x32xf32> to vector<1x8x32xf32>
    %45 = tpu.concatenate %41, %42, %43, %44 in 0 : vector<1x8x32xf32>, vector<1x8x32xf32>, vector<1x8x32xf32>, vector<1x8x32xf32> -> vector<4x8x32xf32>
    %46 = vector.extract_strided_slice %35 {offsets = [0, 0], sizes = [8, 32], strides = [1, 1]} : vector<8x128xf32> to vector<8x32xf32>
    %47 = vector.extract_strided_slice %35 {offsets = [0, 32], sizes = [8, 32], strides = [1, 1]} : vector<8x128xf32> to vector<8x32xf32>
    %48 = vector.extract_strided_slice %35 {offsets = [0, 64], sizes = [8, 32], strides = [1, 1]} : vector<8x128xf32> to vector<8x32xf32>
    %49 = vector.extract_strided_slice %35 {offsets = [0, 96], sizes = [8, 32], strides = [1, 1]} : vector<8x128xf32> to vector<8x32xf32>
    %50 = vector.shape_cast %46 : vector<8x32xf32> to vector<1x8x32xf32>
    %51 = vector.shape_cast %47 : vector<8x32xf32> to vector<1x8x32xf32>
    %52 = vector.shape_cast %48 : vector<8x32xf32> to vector<1x8x32xf32>
    %53 = vector.shape_cast %49 : vector<8x32xf32> to vector<1x8x32xf32>
    %54 = tpu.concatenate %50, %51, %52, %53 in 0 : vector<1x8x32xf32>, vector<1x8x32xf32>, vector<1x8x32xf32>, vector<1x8x32xf32> -> vector<4x8x32xf32>
    %55 = vector.extract_strided_slice %36 {offsets = [0, 0], sizes = [8, 32], strides = [1, 1]} : vector<8x128xf32> to vector<8x32xf32>
    %56 = vector.extract_strided_slice %36 {offsets = [0, 32], sizes = [8, 32], strides = [1, 1]} : vector<8x128xf32> to vector<8x32xf32>
    %57 = vector.extract_strided_slice %36 {offsets = [0, 64], sizes = [8, 32], strides = [1, 1]} : vector<8x128xf32> to vector<8x32xf32>
    %58 = vector.extract_strided_slice %36 {offsets = [0, 96], sizes = [8, 32], strides = [1, 1]} : vector<8x128xf32> to vector<8x32xf32>
    %59 = vector.shape_cast %55 : vector<8x32xf32> to vector<1x8x32xf32>
    %60 = vector.shape_cast %56 : vector<8x32xf32> to vector<1x8x32xf32>
    %61 = vector.shape_cast %57 : vector<8x32xf32> to vector<1x8x32xf32>
    %62 = vector.shape_cast %58 : vector<8x32xf32> to vector<1x8x32xf32>
    %63 = tpu.concatenate %59, %60, %61, %62 in 0 : vector<1x8x32xf32>, vector<1x8x32xf32>, vector<1x8x32xf32>, vector<1x8x32xf32> -> vector<4x8x32xf32>
    "tpu.trace_start"() <{level = 10 : i32, message = "gqd,gkd->gqk"}> : () -> ()
    %cst_24 = arith.constant dense<0.000000e+00> : vector<4x8x8xf32>
    %64 = tpu.matmul %45, %54, %cst_24 {dimension_numbers = #tpu.dot_dimension_numbers<[2], [2], [1], [1], [0, 0, 0, 1, 1, 1], [0], [0]>} : vector<4x8x32xf32>, vector<4x8x32xf32>, vector<4x8x8xf32> -> vector<4x8x8xf32>
    "tpu.trace_stop"() : () -> ()
    %cst_25 = arith.constant 0.353553385 : f32
    %65 = vector.broadcast %cst_25 : f32 to vector<4x8x8xf32>
    %66 = arith.mulf %64, %65 : vector<4x8x8xf32>
    %67 = vector.shape_cast %2 : vector<1x8x8xf32> to vector<8x8xf32>
    %cst_26 = arith.constant 1.000000e+00 : f32
    %68 = vector.broadcast %cst_26 : f32 to vector<8x8xf32>
    %69 = arith.subf %67, %68 : vector<8x8xf32>
    %cst_27 = arith.constant 1.000000e+30 : f32
    %70 = vector.broadcast %cst_27 : f32 to vector<8x8xf32>
    %71 = arith.mulf %69, %70 : vector<8x8xf32>
    %72 = vector.shape_cast %71 : vector<8x8xf32> to vector<1x8x8xf32>
    %73 = vector.broadcast %72 : vector<1x8x8xf32> to vector<4x8x8xf32>
    %74 = arith.addf %66, %73 : vector<4x8x8xf32>
    %cst_28 = arith.constant dense<0xFF800000> : vector<4x8xf32>
    %75 = vector.multi_reduction <maximumf>, %74, %cst_28 [2] : vector<4x8x8xf32> to vector<4x8xf32>
    %76 = vector.shape_cast %75 : vector<4x8xf32> to vector<4x8x1xf32>
    %77 = vector.broadcast %76 : vector<4x8x1xf32> to vector<4x8x8xf32>
    %78 = arith.subf %74, %77 : vector<4x8x8xf32>
    %79 = math.exp %78 : vector<4x8x8xf32>
    %cst_29 = arith.constant dense<0.000000e+00> : vector<4x8xf32>
    %80 = vector.multi_reduction <add>, %79, %cst_29 [2] : vector<4x8x8xf32> to vector<4x8xf32>
    %81 = vector.shape_cast %80 : vector<4x8xf32> to vector<4x8x1xf32>
    %82 = tpu.reciprocal %81 {approx = true} : vector<4x8x1xf32> -> vector<4x8x1xf32>
    %83 = vector.broadcast %82 : vector<4x8x1xf32> to vector<4x8x8xf32>
    %84 = arith.mulf %79, %83 : vector<4x8x8xf32>
    %85 = vector.shape_cast %67 : vector<8x8xf32> to vector<1x8x8xf32>
    %86 = vector.broadcast %85 : vector<1x8x8xf32> to vector<4x8x8xf32>
    %87 = arith.mulf %84, %86 : vector<4x8x8xf32>
    "tpu.trace_start"() <{level = 10 : i32, message = "gqk,gkd->gqd"}> : () -> ()
    %cst_30 = arith.constant dense<0.000000e+00> : vector<4x8x32xf32>
    %88 = tpu.matmul %87, %63, %cst_30 {dimension_numbers = #tpu.dot_dimension_numbers<[2], [1], [1], [2], [0, 0, 0, 1, 1, 2], [0], [0]>} : vector<4x8x8xf32>, vector<4x8x32xf32>, vector<4x8x32xf32> -> vector<4x8x32xf32>
    "tpu.trace_stop"() : () -> ()
    %89 = vector.extract_strided_slice %88 {offsets = [0, 0, 0], sizes = [1, 8, 32], strides = [1, 1, 1]} : vector<4x8x32xf32> to vector<1x8x32xf32>
    %90 = vector.shape_cast %89 : vector<1x8x32xf32> to vector<8x32xf32>
    %91 = vector.extract_strided_slice %88 {offsets = [1, 0, 0], sizes = [1, 8, 32], strides = [1, 1, 1]} : vector<4x8x32xf32> to vector<1x8x32xf32>
    %92 = vector.shape_cast %91 : vector<1x8x32xf32> to vector<8x32xf32>
    %93 = vector.extract_strided_slice %88 {offsets = [2, 0, 0], sizes = [1, 8, 32], strides = [1, 1, 1]} : vector<4x8x32xf32> to vector<1x8x32xf32>
    %94 = vector.shape_cast %93 : vector<1x8x32xf32> to vector<8x32xf32>
    %95 = vector.extract_strided_slice %88 {offsets = [3, 0, 0], sizes = [1, 8, 32], strides = [1, 1, 1]} : vector<4x8x32xf32> to vector<1x8x32xf32>
    %96 = vector.shape_cast %95 : vector<1x8x32xf32> to vector<8x32xf32>
    %97 = tpu.concatenate %90, %92, %94, %96 in 1 : vector<8x32xf32>, vector<8x32xf32>, vector<8x32xf32>, vector<8x32xf32> -> vector<8x128xf32>
    %c0_31 = arith.constant 0 : index
    %c0_32 = arith.constant 0 : index
    %98 = vector.load %arg14[%c0_31, %c0_32] : memref<128x128xf32, #tpu.memory_space<vmem>>, vector<128x128xf32>
    %cst_33 = arith.constant dense<0.000000e+00> : vector<8x128xf32>
    %99 = tpu.matmul %97, %98, %cst_33 {dimension_numbers = #tpu.dot_dimension_numbers<[1], [0], [0], [1], [0, 0, 1, 1], [], []>} : vector<8x128xf32>, vector<128x128xf32>, vector<8x128xf32> -> vector<8x128xf32>
    %100 = arith.addf %0, %99 : vector<8x128xf32>
    %c0_34 = arith.constant 0 : index
    %c0_35 = arith.constant 0 : index
    %101 = vector.load %arg15[%c0_34, %c0_35] : memref<1x128xf32, #tpu.memory_space<vmem>>, vector<1x128xf32>
    %102 = vector.broadcast %101 : vector<1x128xf32> to vector<8x128xf32>
    %103 = arith.addf %100, %102 : vector<8x128xf32>
    %c0_36 = arith.constant 0 : index
    %c0_37 = arith.constant 0 : index
    %104 = vector.load %arg8[%c0_36, %c0_37] : memref<1x128xf32, #tpu.memory_space<vmem>>, vector<1x128xf32>
    %c0_38 = arith.constant 0 : index
    %c0_39 = arith.constant 0 : index
    %105 = vector.load %arg9[%c0_38, %c0_39] : memref<1x128xf32, #tpu.memory_space<vmem>>, vector<1x128xf32>
    %cst_40 = arith.constant dense<0.000000e+00> : vector<8xf32>
    %106 = vector.multi_reduction <add>, %103, %cst_40 [1] : vector<8x128xf32> to vector<8xf32>
    %107 = vector.shape_cast %106 : vector<8xf32> to vector<8x1xf32>
    %cst_41 = arith.constant 3.125000e-02 : f32
    %108 = vector.broadcast %cst_41 : f32 to vector<8x1xf32>
    %109 = arith.mulf %107, %108 : vector<8x1xf32>
    %110 = vector.broadcast %109 : vector<8x1xf32> to vector<8x128xf32>
    %111 = arith.subf %103, %110 : vector<8x128xf32>
    %112 = vector.broadcast %4 : vector<1x128xf32> to vector<8x128xf32>
    %113 = arith.mulf %111, %112 : vector<8x128xf32>
    %114 = arith.mulf %113, %113 : vector<8x128xf32>
    %cst_42 = arith.constant dense<0.000000e+00> : vector<8xf32>
    %115 = vector.multi_reduction <add>, %114, %cst_42 [1] : vector<8x128xf32> to vector<8xf32>
    %116 = vector.shape_cast %115 : vector<8xf32> to vector<8x1xf32>
    %cst_43 = arith.constant 3.125000e-02 : f32
    %117 = vector.broadcast %cst_43 : f32 to vector<8x1xf32>
    %118 = arith.mulf %116, %117 : vector<8x1xf32>
    %cst_44 = arith.constant 9.99999996E-13 : f32
    %119 = vector.broadcast %cst_44 : f32 to vector<8x1xf32>
    %120 = arith.addf %118, %119 : vector<8x1xf32>
    %121 = math.rsqrt %120 : vector<8x1xf32>
    %122 = vector.broadcast %121 : vector<8x1xf32> to vector<8x128xf32>
    %123 = arith.mulf %111, %122 : vector<8x128xf32>
    %124 = vector.broadcast %104 : vector<1x128xf32> to vector<8x128xf32>
    %125 = arith.mulf %123, %124 : vector<8x128xf32>
    %126 = vector.broadcast %105 : vector<1x128xf32> to vector<8x128xf32>
    %127 = arith.addf %125, %126 : vector<8x128xf32>
    %c0_45 = arith.constant 0 : index
    %c0_46 = arith.constant 0 : index
    %128 = vector.load %arg16[%c0_45, %c0_46] : memref<128x128xf32, #tpu.memory_space<vmem>>, vector<128x128xf32>
    %cst_47 = arith.constant dense<0.000000e+00> : vector<8x128xf32>
    %129 = tpu.matmul %127, %128, %cst_47 {dimension_numbers = #tpu.dot_dimension_numbers<[1], [0], [0], [1], [0, 0, 1, 1], [], []>} : vector<8x128xf32>, vector<128x128xf32>, vector<8x128xf32> -> vector<8x128xf32>
    %c0_48 = arith.constant 0 : index
    %c0_49 = arith.constant 0 : index
    %130 = vector.load %arg17[%c0_48, %c0_49] : memref<1x128xf32, #tpu.memory_space<vmem>>, vector<1x128xf32>
    %131 = vector.broadcast %130 : vector<1x128xf32> to vector<8x128xf32>
    %132 = arith.addf %129, %131 : vector<8x128xf32>
    %c0_50 = arith.constant 0 : index
    %c0_51 = arith.constant 0 : index
    %133 = vector.load %arg18[%c0_50, %c0_51] : memref<128x256xf32, #tpu.memory_space<vmem>>, vector<128x256xf32>
    %cst_52 = arith.constant dense<0.000000e+00> : vector<16x256xf32>
    %134 = tpu.matmul %1, %133, %cst_52 {dimension_numbers = #tpu.dot_dimension_numbers<[1], [0], [0], [1], [0, 0, 1, 1], [], []>} : vector<16x128xf32>, vector<128x256xf32>, vector<16x256xf32> -> vector<16x256xf32>
    %c0_53 = arith.constant 0 : index
    %c0_54 = arith.constant 0 : index
    %135 = vector.load %arg19[%c0_53, %c0_54] : memref<1x256xf32, #tpu.memory_space<vmem>>, vector<1x256xf32>
    %136 = vector.broadcast %135 : vector<1x256xf32> to vector<16x256xf32>
    %137 = arith.addf %134, %136 : vector<16x256xf32>
    %138 = vector.extract_strided_slice %137 {offsets = [0, 0], sizes = [16, 128], strides = [1, 1]} : vector<16x256xf32> to vector<16x128xf32>
    %139 = vector.extract_strided_slice %137 {offsets = [0, 128], sizes = [16, 128], strides = [1, 1]} : vector<16x256xf32> to vector<16x128xf32>
    %140 = vector.extract_strided_slice %132 {offsets = [0, 0], sizes = [8, 32], strides = [1, 1]} : vector<8x128xf32> to vector<8x32xf32>
    %141 = vector.extract_strided_slice %132 {offsets = [0, 32], sizes = [8, 32], strides = [1, 1]} : vector<8x128xf32> to vector<8x32xf32>
    %142 = vector.extract_strided_slice %132 {offsets = [0, 64], sizes = [8, 32], strides = [1, 1]} : vector<8x128xf32> to vector<8x32xf32>
    %143 = vector.extract_strided_slice %132 {offsets = [0, 96], sizes = [8, 32], strides = [1, 1]} : vector<8x128xf32> to vector<8x32xf32>
    %144 = vector.shape_cast %140 : vector<8x32xf32> to vector<1x8x32xf32>
    %145 = vector.shape_cast %141 : vector<8x32xf32> to vector<1x8x32xf32>
    %146 = vector.shape_cast %142 : vector<8x32xf32> to vector<1x8x32xf32>
    %147 = vector.shape_cast %143 : vector<8x32xf32> to vector<1x8x32xf32>
    %148 = tpu.concatenate %144, %145, %146, %147 in 0 : vector<1x8x32xf32>, vector<1x8x32xf32>, vector<1x8x32xf32>, vector<1x8x32xf32> -> vector<4x8x32xf32>
    %149 = vector.extract_strided_slice %138 {offsets = [0, 0], sizes = [16, 32], strides = [1, 1]} : vector<16x128xf32> to vector<16x32xf32>
    %150 = vector.extract_strided_slice %138 {offsets = [0, 32], sizes = [16, 32], strides = [1, 1]} : vector<16x128xf32> to vector<16x32xf32>
    %151 = vector.extract_strided_slice %138 {offsets = [0, 64], sizes = [16, 32], strides = [1, 1]} : vector<16x128xf32> to vector<16x32xf32>
    %152 = vector.extract_strided_slice %138 {offsets = [0, 96], sizes = [16, 32], strides = [1, 1]} : vector<16x128xf32> to vector<16x32xf32>
    %153 = vector.shape_cast %149 : vector<16x32xf32> to vector<1x16x32xf32>
    %154 = vector.shape_cast %150 : vector<16x32xf32> to vector<1x16x32xf32>
    %155 = vector.shape_cast %151 : vector<16x32xf32> to vector<1x16x32xf32>
    %156 = vector.shape_cast %152 : vector<16x32xf32> to vector<1x16x32xf32>
    %157 = tpu.concatenate %153, %154, %155, %156 in 0 : vector<1x16x32xf32>, vector<1x16x32xf32>, vector<1x16x32xf32>, vector<1x16x32xf32> -> vector<4x16x32xf32>
    %158 = vector.extract_strided_slice %139 {offsets = [0, 0], sizes = [16, 32], strides = [1, 1]} : vector<16x128xf32> to vector<16x32xf32>
    %159 = vector.extract_strided_slice %139 {offsets = [0, 32], sizes = [16, 32], strides = [1, 1]} : vector<16x128xf32> to vector<16x32xf32>
    %160 = vector.extract_strided_slice %139 {offsets = [0, 64], sizes = [16, 32], strides = [1, 1]} : vector<16x128xf32> to vector<16x32xf32>
    %161 = vector.extract_strided_slice %139 {offsets = [0, 96], sizes = [16, 32], strides = [1, 1]} : vector<16x128xf32> to vector<16x32xf32>
    %162 = vector.shape_cast %158 : vector<16x32xf32> to vector<1x16x32xf32>
    %163 = vector.shape_cast %159 : vector<16x32xf32> to vector<1x16x32xf32>
    %164 = vector.shape_cast %160 : vector<16x32xf32> to vector<1x16x32xf32>
    %165 = vector.shape_cast %161 : vector<16x32xf32> to vector<1x16x32xf32>
    %166 = tpu.concatenate %162, %163, %164, %165 in 0 : vector<1x16x32xf32>, vector<1x16x32xf32>, vector<1x16x32xf32>, vector<1x16x32xf32> -> vector<4x16x32xf32>
    "tpu.trace_start"() <{level = 10 : i32, message = "gqd,gkd->gqk"}> : () -> ()
    %cst_55 = arith.constant dense<0.000000e+00> : vector<4x8x16xf32>
    %167 = tpu.matmul %148, %157, %cst_55 {dimension_numbers = #tpu.dot_dimension_numbers<[2], [2], [1], [1], [0, 0, 0, 1, 1, 1], [0], [0]>} : vector<4x8x32xf32>, vector<4x16x32xf32>, vector<4x8x16xf32> -> vector<4x8x16xf32>
    "tpu.trace_stop"() : () -> ()
    %cst_56 = arith.constant 0.353553385 : f32
    %168 = vector.broadcast %cst_56 : f32 to vector<4x8x16xf32>
    %169 = arith.mulf %167, %168 : vector<4x8x16xf32>
    %170 = vector.shape_cast %3 : vector<1x1x16xf32> to vector<1x16xf32>
    %cst_57 = arith.constant 1.000000e+00 : f32
    %171 = vector.broadcast %cst_57 : f32 to vector<1x16xf32>
    %172 = arith.subf %170, %171 : vector<1x16xf32>
    %cst_58 = arith.constant 1.000000e+30 : f32
    %173 = vector.broadcast %cst_58 : f32 to vector<1x16xf32>
    %174 = arith.mulf %172, %173 : vector<1x16xf32>
    %175 = vector.shape_cast %174 : vector<1x16xf32> to vector<1x1x16xf32>
    %176 = vector.broadcast %175 : vector<1x1x16xf32> to vector<4x8x16xf32>
    %177 = arith.addf %169, %176 : vector<4x8x16xf32>
    %cst_59 = arith.constant dense<0xFF800000> : vector<4x8xf32>
    %178 = vector.multi_reduction <maximumf>, %177, %cst_59 [2] : vector<4x8x16xf32> to vector<4x8xf32>
    %179 = vector.shape_cast %178 : vector<4x8xf32> to vector<4x8x1xf32>
    %180 = vector.broadcast %179 : vector<4x8x1xf32> to vector<4x8x16xf32>
    %181 = arith.subf %177, %180 : vector<4x8x16xf32>
    %182 = math.exp %181 : vector<4x8x16xf32>
    %cst_60 = arith.constant dense<0.000000e+00> : vector<4x8xf32>
    %183 = vector.multi_reduction <add>, %182, %cst_60 [2] : vector<4x8x16xf32> to vector<4x8xf32>
    %184 = vector.shape_cast %183 : vector<4x8xf32> to vector<4x8x1xf32>
    %185 = tpu.reciprocal %184 {approx = true} : vector<4x8x1xf32> -> vector<4x8x1xf32>
    %186 = vector.broadcast %185 : vector<4x8x1xf32> to vector<4x8x16xf32>
    %187 = arith.mulf %182, %186 : vector<4x8x16xf32>
    %188 = vector.shape_cast %170 : vector<1x16xf32> to vector<1x1x16xf32>
    %189 = vector.broadcast %188 : vector<1x1x16xf32> to vector<4x8x16xf32>
    %190 = arith.mulf %187, %189 : vector<4x8x16xf32>
    "tpu.trace_start"() <{level = 10 : i32, message = "gqk,gkd->gqd"}> : () -> ()
    %cst_61 = arith.constant dense<0.000000e+00> : vector<4x8x32xf32>
    %191 = tpu.matmul %190, %166, %cst_61 {dimension_numbers = #tpu.dot_dimension_numbers<[2], [1], [1], [2], [0, 0, 0, 1, 1, 2], [0], [0]>} : vector<4x8x16xf32>, vector<4x16x32xf32>, vector<4x8x32xf32> -> vector<4x8x32xf32>
    "tpu.trace_stop"() : () -> ()
    %192 = vector.extract_strided_slice %191 {offsets = [0, 0, 0], sizes = [1, 8, 32], strides = [1, 1, 1]} : vector<4x8x32xf32> to vector<1x8x32xf32>
    %193 = vector.shape_cast %192 : vector<1x8x32xf32> to vector<8x32xf32>
    %194 = vector.extract_strided_slice %191 {offsets = [1, 0, 0], sizes = [1, 8, 32], strides = [1, 1, 1]} : vector<4x8x32xf32> to vector<1x8x32xf32>
    %195 = vector.shape_cast %194 : vector<1x8x32xf32> to vector<8x32xf32>
    %196 = vector.extract_strided_slice %191 {offsets = [2, 0, 0], sizes = [1, 8, 32], strides = [1, 1, 1]} : vector<4x8x32xf32> to vector<1x8x32xf32>
    %197 = vector.shape_cast %196 : vector<1x8x32xf32> to vector<8x32xf32>
    %198 = vector.extract_strided_slice %191 {offsets = [3, 0, 0], sizes = [1, 8, 32], strides = [1, 1, 1]} : vector<4x8x32xf32> to vector<1x8x32xf32>
    %199 = vector.shape_cast %198 : vector<1x8x32xf32> to vector<8x32xf32>
    %200 = tpu.concatenate %193, %195, %197, %199 in 1 : vector<8x32xf32>, vector<8x32xf32>, vector<8x32xf32>, vector<8x32xf32> -> vector<8x128xf32>
    %c0_62 = arith.constant 0 : index
    %c0_63 = arith.constant 0 : index
    %201 = vector.load %arg20[%c0_62, %c0_63] : memref<128x128xf32, #tpu.memory_space<vmem>>, vector<128x128xf32>
    %cst_64 = arith.constant dense<0.000000e+00> : vector<8x128xf32>
    %202 = tpu.matmul %200, %201, %cst_64 {dimension_numbers = #tpu.dot_dimension_numbers<[1], [0], [0], [1], [0, 0, 1, 1], [], []>} : vector<8x128xf32>, vector<128x128xf32>, vector<8x128xf32> -> vector<8x128xf32>
    %203 = arith.addf %103, %202 : vector<8x128xf32>
    %c0_65 = arith.constant 0 : index
    %c0_66 = arith.constant 0 : index
    %204 = vector.load %arg21[%c0_65, %c0_66] : memref<1x128xf32, #tpu.memory_space<vmem>>, vector<1x128xf32>
    %205 = vector.broadcast %204 : vector<1x128xf32> to vector<8x128xf32>
    %206 = arith.addf %203, %205 : vector<8x128xf32>
    %c0_67 = arith.constant 0 : index
    %c0_68 = arith.constant 0 : index
    %207 = vector.load %arg10[%c0_67, %c0_68] : memref<1x128xf32, #tpu.memory_space<vmem>>, vector<1x128xf32>
    %c0_69 = arith.constant 0 : index
    %c0_70 = arith.constant 0 : index
    %208 = vector.load %arg11[%c0_69, %c0_70] : memref<1x128xf32, #tpu.memory_space<vmem>>, vector<1x128xf32>
    %cst_71 = arith.constant dense<0.000000e+00> : vector<8xf32>
    %209 = vector.multi_reduction <add>, %206, %cst_71 [1] : vector<8x128xf32> to vector<8xf32>
    %210 = vector.shape_cast %209 : vector<8xf32> to vector<8x1xf32>
    %cst_72 = arith.constant 3.125000e-02 : f32
    %211 = vector.broadcast %cst_72 : f32 to vector<8x1xf32>
    %212 = arith.mulf %210, %211 : vector<8x1xf32>
    %213 = vector.broadcast %212 : vector<8x1xf32> to vector<8x128xf32>
    %214 = arith.subf %206, %213 : vector<8x128xf32>
    %215 = vector.broadcast %4 : vector<1x128xf32> to vector<8x128xf32>
    %216 = arith.mulf %214, %215 : vector<8x128xf32>
    %217 = arith.mulf %216, %216 : vector<8x128xf32>
    %cst_73 = arith.constant dense<0.000000e+00> : vector<8xf32>
    %218 = vector.multi_reduction <add>, %217, %cst_73 [1] : vector<8x128xf32> to vector<8xf32>
    %219 = vector.shape_cast %218 : vector<8xf32> to vector<8x1xf32>
    %cst_74 = arith.constant 3.125000e-02 : f32
    %220 = vector.broadcast %cst_74 : f32 to vector<8x1xf32>
    %221 = arith.mulf %219, %220 : vector<8x1xf32>
    %cst_75 = arith.constant 9.99999996E-13 : f32
    %222 = vector.broadcast %cst_75 : f32 to vector<8x1xf32>
    %223 = arith.addf %221, %222 : vector<8x1xf32>
    %224 = math.rsqrt %223 : vector<8x1xf32>
    %225 = vector.broadcast %224 : vector<8x1xf32> to vector<8x128xf32>
    %226 = arith.mulf %214, %225 : vector<8x128xf32>
    %227 = vector.broadcast %207 : vector<1x128xf32> to vector<8x128xf32>
    %228 = arith.mulf %226, %227 : vector<8x128xf32>
    %229 = vector.broadcast %208 : vector<1x128xf32> to vector<8x128xf32>
    %230 = arith.addf %228, %229 : vector<8x128xf32>
    %c0_76 = arith.constant 0 : index
    %c0_77 = arith.constant 0 : index
    %231 = vector.load %arg22[%c0_76, %c0_77] : memref<128x128xf32, #tpu.memory_space<vmem>>, vector<128x128xf32>
    %cst_78 = arith.constant dense<0.000000e+00> : vector<8x128xf32>
    %232 = tpu.matmul %230, %231, %cst_78 {dimension_numbers = #tpu.dot_dimension_numbers<[1], [0], [0], [1], [0, 0, 1, 1], [], []>} : vector<8x128xf32>, vector<128x128xf32>, vector<8x128xf32> -> vector<8x128xf32>
    %c0_79 = arith.constant 0 : index
    %c0_80 = arith.constant 0 : index
    %233 = vector.load %arg23[%c0_79, %c0_80] : memref<1x128xf32, #tpu.memory_space<vmem>>, vector<1x128xf32>
    %234 = vector.broadcast %233 : vector<1x128xf32> to vector<8x128xf32>
    %235 = arith.addf %232, %234 : vector<8x128xf32>
    %cst_81 = arith.constant 0.000000e+00 : f32
    %236 = vector.broadcast %cst_81 : f32 to vector<8x128xf32>
    %237 = arith.maximumf %235, %236 : vector<8x128xf32>
    %c0_82 = arith.constant 0 : index
    %c0_83 = arith.constant 0 : index
    %238 = vector.load %arg24[%c0_82, %c0_83] : memref<128x128xf32, #tpu.memory_space<vmem>>, vector<128x128xf32>
    %cst_84 = arith.constant dense<0.000000e+00> : vector<8x128xf32>
    %239 = tpu.matmul %237, %238, %cst_84 {dimension_numbers = #tpu.dot_dimension_numbers<[1], [0], [0], [1], [0, 0, 1, 1], [], []>} : vector<8x128xf32>, vector<128x128xf32>, vector<8x128xf32> -> vector<8x128xf32>
    %c0_85 = arith.constant 0 : index
    %c0_86 = arith.constant 0 : index
    %240 = vector.load %arg25[%c0_85, %c0_86] : memref<1x128xf32, #tpu.memory_space<vmem>>, vector<1x128xf32>
    %241 = vector.broadcast %240 : vector<1x128xf32> to vector<8x128xf32>
    %242 = arith.addf %239, %241 : vector<8x128xf32>
    %243 = arith.addf %206, %242 : vector<8x128xf32>
    %c0_87 = arith.constant 0 : index
    %c0_88 = arith.constant 0 : index
    %244 = vector.load %arg26[%c0_87, %c0_88] : memref<8x128xf32, #tpu.memory_space<vmem>>, vector<8x128xf32>
    tpu.vector_store %arg26[%c0_87, %c0_88], %243 {strides = array<i32>} : memref<8x128xf32, #tpu.memory_space<vmem>>, vector<8x128xf32>,
    return
  }
  func.func @transform_0(%arg0: i32) -> (i32, i32) {
    %c0_i32 = arith.constant 0 : i32
    %c0_i32_0 = arith.constant 0 : i32
    return %arg0, %c0_i32 : i32, i32
  }
  func.func @transform_1(%arg0: i32) -> (i32, i32, i32) {
    %c0_i32 = arith.constant 0 : i32
    %c0_i32_0 = arith.constant 0 : i32
    %c0_i32_1 = arith.constant 0 : i32
    return %arg0, %c0_i32, %c0_i32_0 : i32, i32, i32
  }
  func.func @transform_2(%arg0: i32) -> (i32, i32) {
    %c0_i32 = arith.constant 0 : i32
    %c0_i32_0 = arith.constant 0 : i32
    return %arg0, %c0_i32 : i32, i32
  }
  func.func @transform_3(%arg0: i32) -> (i32, i32, i32) {
    %c0_i32 = arith.constant 0 : i32
    %c0_i32_0 = arith.constant 0 : i32
    %c0_i32_1 = arith.constant 0 : i32
    return %arg0, %c0_i32, %c0_i32_0 : i32, i32, i32
  }
  func.func @transform_4(%arg0: i32) -> (i32, i32) {
    %c0_i32 = arith.constant 0 : i32
    %c0_i32_0 = arith.constant 0 : i32
    %c0_i32_1 = arith.constant 0 : i32
    return %c0_i32, %c0_i32_0 : i32, i32
  }
  func.func @transform_5(%arg0: i32) -> (i32, i32) {
    %c0_i32 = arith.constant 0 : i32
    %c0_i32_0 = arith.constant 0 : i32
    %c0_i32_1 = arith.constant 0 : i32
    return %c0_i32, %c0_i32_0 : i32, i32
  }
  func.func @transform_6(%arg0: i32) -> (i32, i32) {
    %c0_i32 = arith.constant 0 : i32
    %c0_i32_0 = arith.constant 0 : i32
    %c0_i32_1 = arith.constant 0 : i32
    return %c0_i32, %c0_i32_0 : i32, i32
  }
  func.func @transform_7(%arg0: i32) -> (i32, i32) {
    %c0_i32 = arith.constant 0 : i32
    %c0_i32_0 = arith.constant 0 : i32
    %c0_i32_1 = arith.constant 0 : i32
    return %c0_i32, %c0_i32_0 : i32, i32
  }
  func.func @transform_8(%arg0: i32) -> (i32, i32) {
    %c0_i32 = arith.constant 0 : i32
    %c0_i32_0 = arith.constant 0 : i32
    %c0_i32_1 = arith.constant 0 : i32
    return %c0_i32, %c0_i32_0 : i32, i32
  }
  func.func @transform_9(%arg0: i32) -> (i32, i32) {
    %c0_i32 = arith.constant 0 : i32
    %c0_i32_0 = arith.constant 0 : i32
    %c0_i32_1 = arith.constant 0 : i32
    return %c0_i32, %c0_i32_0 : i32, i32
  }
  func.func @transform_10(%arg0: i32) -> (i32, i32) {
    %c0_i32 = arith.constant 0 : i32
    %c0_i32_0 = arith.constant 0 : i32
    %c0_i32_1 = arith.constant 0 : i32
    return %c0_i32, %c0_i32_0 : i32, i32
  }
  func.func @transform_11(%arg0: i32) -> (i32, i32) {
    %c0_i32 = arith.constant 0 : i32
    %c0_i32_0 = arith.constant 0 : i32
    %c0_i32_1 = arith.constant 0 : i32
    return %c0_i32, %c0_i32_0 : i32, i32
  }
  func.func @transform_12(%arg0: i32) -> (i32, i32) {
    %c0_i32 = arith.constant 0 : i32
    %c0_i32_0 = arith.constant 0 : i32
    %c0_i32_1 = arith.constant 0 : i32
    return %c0_i32, %c0_i32_0 : i32, i32
  }
  func.func @transform_13(%arg0: i32) -> (i32, i32) {
    %c0_i32 = arith.constant 0 : i32
    %c0_i32_0 = arith.constant 0 : i32
    %c0_i32_1 = arith.constant 0 : i32
    return %c0_i32, %c0_i32_0 : i32, i32
  }
  func.func @transform_14(%arg0: i32) -> (i32, i32) {
    %c0_i32 = arith.constant 0 : i32
    %c0_i32_0 = arith.constant 0 : i32
    %c0_i32_1 = arith.constant 0 : i32
    return %c0_i32, %c0_i32_0 : i32, i32
  }
  func.func @transform_15(%arg0: i32) -> (i32, i32) {
    %c0_i32 = arith.constant 0 : i32
    %c0_i32_0 = arith.constant 0 : i32
    %c0_i32_1 = arith.constant 0 : i32
    return %c0_i32, %c0_i32_0 : i32, i32
  }
  func.func @transform_16(%arg0: i32) -> (i32, i32) {
    %c0_i32 = arith.constant 0 : i32
    %c0_i32_0 = arith.constant 0 : i32
    %c0_i32_1 = arith.constant 0 : i32
    return %c0_i32, %c0_i32_0 : i32, i32
  }
  func.func @transform_17(%arg0: i32) -> (i32, i32) {
    %c0_i32 = arith.constant 0 : i32
    %c0_i32_0 = arith.constant 0 : i32
    %c0_i32_1 = arith.constant 0 : i32
    return %c0_i32, %c0_i32_0 : i32, i32
  }
  func.func @transform_18(%arg0: i32) -> (i32, i32) {
    %c0_i32 = arith.constant 0 : i32
    %c0_i32_0 = arith.constant 0 : i32
    %c0_i32_1 = arith.constant 0 : i32
    return %c0_i32, %c0_i32_0 : i32, i32
  }
  func.func @transform_19(%arg0: i32) -> (i32, i32) {
    %c0_i32 = arith.constant 0 : i32
    %c0_i32_0 = arith.constant 0 : i32
    %c0_i32_1 = arith.constant 0 : i32
    return %c0_i32, %c0_i32_0 : i32, i32
  }
  func.func @transform_20(%arg0: i32) -> (i32, i32) {
    %c0_i32 = arith.constant 0 : i32
    %c0_i32_0 = arith.constant 0 : i32
    %c0_i32_1 = arith.constant 0 : i32
    return %c0_i32, %c0_i32_0 : i32, i32
  }
  func.func @transform_21(%arg0: i32) -> (i32, i32) {
    %c0_i32 = arith.constant 0 : i32
    %c0_i32_0 = arith.constant 0 : i32
    %c0_i32_1 = arith.constant 0 : i32
    return %c0_i32, %c0_i32_0 : i32, i32
  }
  func.func @transform_22(%arg0: i32) -> (i32, i32) {
    %c0_i32 = arith.constant 0 : i32
    %c0_i32_0 = arith.constant 0 : i32
    %c0_i32_1 = arith.constant 0 : i32
    return %c0_i32, %c0_i32_0 : i32, i32
  }
  func.func @transform_23(%arg0: i32) -> (i32, i32) {
    %c0_i32 = arith.constant 0 : i32
    %c0_i32_0 = arith.constant 0 : i32
    %c0_i32_1 = arith.constant 0 : i32
    return %c0_i32, %c0_i32_0 : i32, i32
  }
  func.func @transform_24(%arg0: i32) -> (i32, i32) {
    %c0_i32 = arith.constant 0 : i32
    %c0_i32_0 = arith.constant 0 : i32
    %c0_i32_1 = arith.constant 0 : i32
    return %c0_i32, %c0_i32_0 : i32, i32
  }
  func.func @transform_25(%arg0: i32) -> (i32, i32) {
    %c0_i32 = arith.constant 0 : i32
    %c0_i32_0 = arith.constant 0 : i32
    return %arg0, %c0_i32 : i32, i32
  }
}

</mosaic_0001>

<bundles_post_ra>
// kernel: tpu_custom_call.1
= control target key start
LH: loop header
LB: loop body
LE: loop exit
PB: predicated region body
PF: predicated region fallthrough
CT: control target
= control target key end

     0   :  { %s3924_s0 = inlined_call_operand.hbm [shape: f32[16,128], index: 0, kind: input, shape index: {}]   ;;  %s3925_s1 = inlined_call_operand.hbm [shape: f32[2,8,8], index: 1, kind: input, shape index: {}]   ;;  %s3926_s2 = inlined_call_operand.hbm [shape: f32[32,128], index: 2, kind: input, shape index: {}]   ;;  %s3927_s3 = inlined_call_operand.vmem [shape: f32[2,1,16], index: 3, kind: input, shape index: {}]   ;;  %s3928_s4 = inlined_call_operand.hbm [shape: f32[1,128], index: 4, kind: input, shape index: {}]   ;;  %s3929_s5 = inlined_call_operand.hbm [shape: f32[1,128], index: 5, kind: input, shape index: {}]   ;;  %s3930_s6 = inlined_call_operand.hbm [shape: f32[1,128], index: 6, kind: input, shape index: {}]   ;;  %s3931_s7 = inlined_call_operand.hbm [shape: f32[1,128], index: 7, kind: input, shape index: {}]   ;;  %s3932_s8 = inlined_call_operand.hbm [shape: f32[1,128], index: 8, kind: input, shape index: {}]   ;;  %s3933_s9 = inlined_call_operand.vmem [shape: f32[1,128], index: 9, kind: input, shape index: {}]   ;;  %s3934_s10 = inlined_call_operand.vmem [shape: f32[1,128], index: 10, kind: input, shape index: {}]   ;;  %s3935_s11 = inlined_call_operand.hbm [shape: f32[128,384], index: 11, kind: input, shape index: {}]   ;;  %s3936_s12 = inlined_call_operand.vmem [shape: f32[1,384], index: 12, kind: input, shape index: {}]   ;;  %s3937_s13 = inlined_call_operand.hbm [shape: f32[128,128], index: 13, kind: input, shape index: {}]   ;;  %s3938_s14 = inlined_call_operand.vmem [shape: f32[1,128], index: 14, kind: input, shape index: {}]   ;;  %s3939_s15 = inlined_call_operand.hbm [shape: f32[128,128], index: 15, kind: input, shape index: {}]   ;;  %s3940_s16 = inlined_call_operand.vmem [shape: f32[1,128], index: 16, kind: input, shape index: {}]   ;;  %s3941_s17 = inlined_call_operand.hbm [shape: f32[128,256], index: 17, kind: input, shape index: {}]   ;;  %s3942_s18 = inlined_call_operand.vmem [shape: f32[1,256], index: 18, kind: input, shape index: {}]   ;;  %s3943_s19 = inlined_call_operand.hbm [shape: f32[128,128], index: 19, kind: input, shape index: {}]   ;;  %s3944_s20 = inlined_call_operand.vmem [shape: f32[1,128], index: 20, kind: input, shape index: {}]   ;;  %s3945_s21 = inlined_call_operand.hbm [shape: f32[128,128], index: 21, kind: input, shape index: {}]   ;;  %s3946_s22 = inlined_call_operand.vmem [shape: f32[1,128], index: 22, kind: input, shape index: {}]   ;;  %s3947_s23 = inlined_call_operand.hbm [shape: f32[128,128], index: 23, kind: input, shape index: {}]   ;;  %s3948_s24 = inlined_call_operand.vmem [shape: f32[1,128], index: 24, kind: input, shape index: {}]   ;;  %s3949_s25 = inlined_call_operand.hbm [shape: f32[16,128], index: 25, kind: output, shape index: {}]  }
   0x1   :  { %3969 = sst [smem:[#allocation42_spill]] %s3924_s0 }
   0x2   :  { %3970 = sst [smem:[#allocation43_spill]] %s3925_s1 }
   0x3   :  { %3971 = sst [smem:[#allocation44_spill]] %s3926_s2 }
   0x4   :  { %3972 = sst [smem:[#allocation45_spill]] %s3927_s3 }
   0x5   :  { %3973 = sst [smem:[#allocation46_spill]] %s3928_s4 }
   0x6   :  { %3974 = sst [smem:[#allocation47_spill]] %s3929_s5 }
   0x7   :  { %3975 = sst [smem:[#allocation48_spill]] %s3930_s6 }
   0x8   :  { %3976 = sst [smem:[#allocation49_spill]] %s3931_s7 }
   0x9   :  { %3977 = sst [smem:[#allocation50_spill]] %s3932_s8 }
   0xa   :  { %3978 = sst [smem:[#allocation51_spill]] %s3933_s9 }
   0xb   :  { %3979 = sst [smem:[#allocation52_spill]] %s3934_s10 }
   0xc   :  { %3980 = sst [smem:[#allocation53_spill]] %s3935_s11 }
   0xd   :  { %3981 = sst [smem:[#allocation54_spill]] %s3937_s13 }
   0xe   :  { %3982 = sst [smem:[#allocation55_spill]] %s3939_s15 }
   0xf   :  { %3983 = sst [smem:[#allocation56_spill]] %s3940_s16 }
  0x10   :  { %3984 = sst [smem:[#allocation57_spill]] %s3941_s17 }
  0x11   :  { %3985 = sst [smem:[#allocation58_spill]] %s3943_s19 }
  0x12   :  { %3986 = sst [smem:[#allocation59_spill]] %s3944_s20 }
  0x13   :  { %3987 = sst [smem:[#allocation60_spill]] %s3945_s21 }
  0x14   :  { %3988 = sst [smem:[#allocation61_spill]] %s3946_s22 }
  0x15   :  { %3989 = sst [smem:[#allocation62_spill]] %s3948_s24 }
  0x16   :  { %3990 = sst [smem:[#allocation63_spill]] %s3949_s25 }
  0x17   :  { %30 = vsyncpa [#allocation3], 0 }
  0x18   :  { %32 = vsyncpa [#allocation3 + $0x1], 0 }
  0x19   :  { %33 = vsyncpa [#allocation6], 0 }
  0x1a   :  { %35 = vsyncpa [#allocation6 + $0x1], 0 }
  0x1b   :  { %36 = vsyncpa [#allocation9], 0 }
  0x1c   :  { %37 = vsyncpa [#allocation12], 0 }
  0x1d   :  { %38 = vsyncpa [#allocation15], 0 }
  0x1e   :  { %39 = vsyncpa [#allocation18], 0 }
  0x1f   :  { %40 = vsyncpa [#allocation21], 0 }
  0x20   :  { %41 = vsyncpa [#allocation24], 0 }
  0x21   :  { %42 = vsyncpa [#allocation4], 0 }
  0x22   :  { %44 = vsyncpa [#allocation4 + $0x1], 0  ;;  %s3454_s29 = smov 0   ;;  %s3456_s2 = smov 0  }
  0x23   :  { %s3458_s6 = smov 0   ;;  %s3460_s30 = smov 0  }
  0x24 LB: > { %3991 = sst [smem:[#allocation36_spill]] %s3289_s29  ;;  %s3478_s8 = sadd.s32 4294967295, %s3301_s30   ;;  %s3301_s30 = sphi %s3460_s30, %s4047_s30   ;;  %s3297_s6 = sphi %s3458_s6, %s4049_s6   ;;  %s3293_s2 = sphi %s3456_s2, %s4051_s2   ;;  %s3289_s29 = sphi %s3454_s29, %s4050_s29  }
  0x25   : > { %3992 = sst [smem:[#allocation37_spill]] %s3297_s6  ;;  %p2431_p0 = scmp.ge.s32.totalorder %s3301_s30, 1 }
  0x26   : > { %s3993_s26 = sld [smem:[#allocation46_spill]]  ;;  %p3962_p1 = scmp.eq.s32.totalorder %s3478_s8, 0 }
  0x27   : > { %p626_p2 = scmp.lt.s32.totalorder %s3301_s30, 3  ;;  %s3303_s4 = smov [#allocation8]  }
  0x28   : > { %s640_s28 = sshll.u32 %s3303_s4, 4  ;;  %s3995_s0 = sld [smem:[#allocation48_spill]]  ;;  %s641_s28 = int_to_ptr.vmem [resolvable:$true] %s640_s28 }
  0x29   : > { %p3483_p3 = pnand %p2431_p0, %p626_p2  ;;  %s3997_s22 = sld [smem:[#allocation50_spill]] }
  0x2a   : > { %s3998_s13 = sld [smem:[#allocation54_spill]]  ;;  %s3305_s20 = smov [#allocation14]  }
  0x2b   : > { %p2560_p5 = pneg %p3483_p3  ;;  %s688_s16 = sshll.u32 %s3305_s20, 4  ;;  %s689_s16 = int_to_ptr.vmem [resolvable:$true] %s688_s16 }
  0x2c   : > { %s638_s1 = sshll.u32 %s3993_s26, 4  ;;  %s3304_s26 = smov [#allocation11]   ;;  %s639_s1 = int_to_ptr.hbm [resolvable:$true] %s638_s1 }
  0x2d   : > { %p3495_p6 = pnand %p2560_p5, %p3962_p1  ;;  %s664_s25 = sshll.u32 %s3304_s26, 4  ;;  %s665_s25 = int_to_ptr.vmem [resolvable:$true] %s664_s25 }
  0x2e   : > { %s662_s7 = sshll.u32 %s3995_s0, 4  ;;  %s3306_s26 = smov [#allocation17]   ;;  %s663_s7 = int_to_ptr.hbm [resolvable:$true] %s662_s7 }
  0x2f   : > { %s686_s10 = sshll.u32 %s3997_s22, 4  ;;  %s722_s24 = sshll.u32 %s3306_s26, 4  ;;  %s687_s10 = int_to_ptr.hbm [resolvable:$true] %s686_s10  ;;  %s723_s24 = int_to_ptr.vmem [resolvable:$true] %s722_s24 }
  0x30   : > { %2563 = dma.hbm_to_vmem [thread:$0]  (!%p3495_p6), %s639_s1, 16, %s641_s28, [#allocation9]  }
  0x31   : > { %2569 = dma.hbm_to_vmem [thread:$0]  (!%p3495_p6), %s663_s7, 16, %s665_s25, [#allocation12]  }
  0x32   : > { %s720_s0 = sshll.u32 %s3998_s13, 4  ;;  %s3954_s22 = smov 128   ;;  %s721_s0 = int_to_ptr.hbm [resolvable:$true] %s720_s0 }
  0x33   : > { %2575 = dma.hbm_to_vmem [thread:$0]  (!%p3495_p6), %s687_s10, 16, %s689_s16, [#allocation15]  }
  0x34   : > { %s3956_s4 = smov 8   ;;  %s3999_s17 = sld [smem:[#allocation57_spill]] }
  0x35   : > { %2581 = dma.hbm_to_vmem [thread:$0]  (!%p3495_p6), %s721_s0, 2048, %s723_s24, [#allocation18], %s3954_s22, %s3954_s22, %s3956_s4  }
  0x36   : > { %s3309_s10 = smov [#allocation20]   ;;  %s4000_s21 = sld [smem:[#allocation60_spill]] }
  0x37   : > { %s756_s16 = sshll.u32 %s3309_s10, 4  ;;  %s3310_s5 = smov 256   ;;  %s757_s16 = int_to_ptr.vmem [resolvable:$true] %s756_s16 }
  0x38   : > { %s3311_s0 = smov 16   ;;  %s3312_s26 = smov [#allocation23]  }
  0x39   : > { %s790_s24 = sshll.u32 %s3312_s26, 4  ;;  %s2430_s25 = sadd.s32 4294967294, %s3301_s30   ;;  %s791_s24 = int_to_ptr.vmem [resolvable:$true] %s790_s24 }
  0x3a   : > { %s754_s20 = sshll.u32 %s3999_s17, 4  ;;  %s3531_s1 = sadd.s32 1, %s3301_s30   ;;  %s755_s20 = int_to_ptr.hbm [resolvable:$true] %s754_s20 }
  0x3b   : > { %2587 = dma.hbm_to_vmem [thread:$0]  (!%p3495_p6), %s755_s20, 4096, %s757_s16, [#allocation21], %s3310_s5, %s3310_s5, %s3311_s0  }
  0x3c   : > { %s788_s9 = sshll.u32 %s4000_s21, 4  ;;  %4001 = sst [smem:[#allocation38_spill]] %s3531_s1  ;;  %s789_s9 = int_to_ptr.hbm [resolvable:$true] %s788_s9 }
  0x3d   : > { %2593 = dma.hbm_to_vmem [thread:$0]  (!%p3495_p6), %s789_s9, 2048, %s791_s24, [#allocation24], %s3954_s22, %s3954_s22, %s3956_s4  }
  0x3e   : > { %s54_s10 = ssub.s32 %s3301_s30, %s3531_s1  ;;  %s57_s20 = sadd.s32 1, %s3297_s6 }
  0x3f   : > { %p55_p7 = scmp.eq.s32.totalorder %s54_s10, 0  ;;  %p64_p8 = scmp.ne.s32.totalorder %s3297_s6, %s3293_s2 }
  0x40   : > { %p65_p9 = scmp.eq.s32.totalorder %s3301_s30, 0  ;;  %p70_p10 = scmp.ne.s32.totalorder %s3293_s2, %s3289_s29 }
  0x41   : > { %s3542_s16 = scalar_select %p55_p7, %s3297_s6, %s57_s20  }
  0x42   : > { %p66_p11 = por %p65_p9, %p64_p8  ;;  %p3546_p12 = por %p3962_p1, %p70_p10 }
  0x43   : > { %4002 = sst [smem:[#allocation39_spill]] %s3542_s16  ;;  %p613_p13 = scmp.eq.s32.totalorder %s3478_s8, 1 }
  0x44   : > { %p619_p0 = scmp.eq.s32.totalorder %s2430_s25, 1  ;;  %p2623_p2 = scmp.lt.s32.totalorder %s3301_s30, 2 }
  0x45   : > { %s3553_s7 = sand.u32 1, %s3297_s6   ;;  %p3555_p5 = por %p613_p13, %p64_p8 }
  0x46   : > { %p3559_p4 = por %p619_p0, %p70_p10  ;;  %s3961_s0 = sshll.u32 %s3553_s7, 3 }
  0x47   : > { %s4004_s9 = scalar_select %p3555_p5, 1, 0 }
  0x48   : > { %s4006_s5 = scalar_select %p3559_p4, 1, 0 }
  0x49   : > { %4005 = sst [smem:[#allocation40_spill]] %s4004_s9  ;;  %s3963_s26 = sshll.u32 %s3301_s30, 3 }
  0x4a   : > { %4007 = sst [smem:[#allocation41_spill]] %s4006_s5  ;;  %p3565_p7 = pnand %p2623_p2, %p66_p11 }
  0x4b   : > { %s843_s25 = sand.u32 1, %s3301_s30   ;;  %s4009_s22 = sld [smem:[#allocation43_spill]] }
  0x4c   : > { %s847_s17 = scalar_lea.vmem [#allocation5], %s3961_s0  ;;  %s3577_s16 = scalar_lea.sflag [#allocation6], %s843_s25 }
  0x4d   : > { %s855_s21 = sshll.u32 %s847_s17, 4  ;;  %p2941_p9 = pneg %p3565_p7  ;;  %s856_s21 = int_to_ptr.vmem [resolvable:$true] %s855_s21 }
  0x51   : > { %s851_s4 = scalar_lea.hbm %s4009_s22, %s3963_s26 }
  0x52   : > { %s853_s13 = sshll.u32 %s851_s4, 4  ;;  %s2944_s4 = scalar_lea.hbm %s4009_s22, 16  ;;  %s854_s13 = int_to_ptr.hbm [resolvable:$true] %s853_s13 }
  0x53   : > { %s2937_s6 = sshra.s32 %s854_s13, 4  ;;  %s2938_s6 = int_to_ptr.hbm [resolvable:$true] %s2937_s6 }
  0x54   : > { %s2939_s1 = scalar_lea.hbm %s2938_s6, 8  ;;  %p2945_p13 = scmp.lt.s32.totalorder %s2938_s6, %s4009_s22 }
  0x55   : > { %p2940_p8 = scmp.ne.s32.totalorder %s2938_s6, %s2939_s1  ;;  %p2946_p0 = scmp.lt.s32.totalorder %s2944_s4, %s2939_s1 }
  0x57   : > { %p2942_p10 = pnand %p2941_p9, %p2940_p8  ;;  %p2947_p2 = por %p2946_p0, %p2945_p13 }
  0x59   : > { %p2943_p11 = pneg %p2942_p10 }
  0x5b   : > { %p2948_p1 = pnand %p2947_p2, %p2943_p11 }
  0x5d   : > { %2951 = shalt.err (!%p2948_p1)
}
  0x5e   : > { %2603 = dma.hbm_to_vmem [thread:$0]  (!%p3565_p7), %s854_s13, 128, %s856_s21, %s3577_s16  }
  0x5f   : > { %s2449_s25 = sshll.u32 %s3553_s7, 4  ;;  %s4010_s29 = sld [smem:[#allocation47_spill]] }
  0x60   : > { %s3597_s20 = scalar_lea.vmem [#allocation7], %s2449_s25  ;;  %s3313_s1 = smov [#allocation10]  }
  0x61   : > { %s652_s0 = sshll.u32 %s3313_s1, 4  ;;  %s4011_s22 = sld [smem:[#allocation49_spill]]  ;;  %s653_s0 = int_to_ptr.vmem [resolvable:$true] %s652_s0 }
  0x62   : > { %s3314_s13 = smov [#allocation13]   ;;  %s4012_s11 = sld [smem:[#allocation53_spill]] }
  0x63   : > { %s676_s21 = sshll.u32 %s3314_s13, 4  ;;  %s3315_s25 = smov [#allocation16]   ;;  %s677_s21 = int_to_ptr.vmem [resolvable:$true] %s676_s21 }
  0x64   : > { %s705_s1 = sshll.u32 %s3315_s25, 4  ;;  %s4013_s15 = sld [smem:[#allocation55_spill]]  ;;  %s706_s1 = int_to_ptr.vmem [resolvable:$true] %s705_s1 }
  0x65   : > { %s650_s10 = sshll.u32 %s4010_s29, 4  ;;  %s3318_s13 = smov [#allocation19]   ;;  %s651_s10 = int_to_ptr.hbm [resolvable:$true] %s650_s10 }
  0x66   : > { %2566 = dma.hbm_to_vmem [thread:$0]  (!%p3495_p6), %s651_s10, 16, %s653_s0, [#allocation9]  }
  0x67   : > { %s674_s9 = sshll.u32 %s4011_s22, 4  ;;  %s3316_s10 = smov 384   ;;  %s675_s9 = int_to_ptr.hbm [resolvable:$true] %s674_s9 }
  0x68   : > { %s703_s26 = sshll.u32 %s4012_s11, 4  ;;  %s3317_s0 = smov 24   ;;  %s704_s26 = int_to_ptr.hbm [resolvable:$true] %s703_s26 }
  0x69   : > { %2572 = dma.hbm_to_vmem [thread:$0]  (!%p3495_p6), %s675_s9, 16, %s677_s21, [#allocation12]  }
  0x6a   : > { %s737_s22 = sshll.u32 %s4013_s15, 4  ;;  %s739_s5 = sshll.u32 %s3318_s13, 4  ;;  %s738_s22 = int_to_ptr.hbm [resolvable:$true] %s737_s22  ;;  %s740_s5 = int_to_ptr.vmem [resolvable:$true] %s739_s5 }
  0x6b   : > { %2578 = dma.hbm_to_vmem [thread:$0]  (!%p3495_p6), %s704_s26, 6144, %s706_s1, [#allocation15], %s3316_s10, %s3316_s10, %s3317_s0  }
  0x6c   : > { %s4014_s19 = sld [smem:[#allocation58_spill]]  ;;  %s4015_s21 = smov 8  }
  0x6d   : > { %s4016_s25 = smov 128   ;;  %s805_s26 = sshll.u32 %s3947_s23, 4  ;;  %s806_s26 = int_to_ptr.hbm [resolvable:$true] %s805_s26 }
  0x6e   : > { %2584 = dma.hbm_to_vmem [thread:$0]  (!%p3495_p6), %s738_s22, 2048, %s740_s5, [#allocation18], %s4016_s25, %s4016_s25, %s4015_s21  }
  0x6f   : > { %s3319_s1 = smov [#allocation22]   ;;  %s3320_s6 = smov [#allocation25]  }
  0x70   : > { %s773_s10 = sshll.u32 %s3319_s1, 4  ;;  %s807_s0 = sshll.u32 %s3320_s6, 4  ;;  %s774_s10 = int_to_ptr.vmem [resolvable:$true] %s773_s10  ;;  %s808_s0 = int_to_ptr.vmem [resolvable:$true] %s807_s0 }
  0x71   : > { %2596 = dma.hbm_to_vmem [thread:$0]  (!%p3495_p6), %s806_s26, 2048, %s808_s0, [#allocation24], %s4016_s25, %s4016_s25, %s4015_s21  }
  0x72   : > { %s771_s9 = sshll.u32 %s4014_s19, 4  ;;  %s4017_s22 = sshll.u32 %s3301_s30, 3  ;;  %s772_s9 = int_to_ptr.hbm [resolvable:$true] %s771_s9 }
  0x73   : > { %2590 = dma.hbm_to_vmem [thread:$0]  (!%p3495_p6), %s772_s9, 2048, %s774_s10, [#allocation21], %s4016_s25, %s4016_s25, %s4015_s21  }
  0x74   : > { %s4018_s29 = sld [smem:[#allocation42_spill]]  ;;  %s4020_s1 = sshll.u32 %s3553_s7, 3 }
  0x75   : > { %s828_s11 = scalar_lea.vmem [#allocation2], %s4020_s1  ;;  %s2503_s9 = sshll.u32 %s3301_s30, 4 }
  0x76   : > { %s836_s15 = sshll.u32 %s828_s11, 4  ;;  %s825_s10 = scalar_lea.sflag [#allocation3], %s3553_s7  ;;  %s837_s15 = int_to_ptr.vmem [resolvable:$true] %s836_s15 }
  0x7a   : > { %s4019_s4 = smov %s4018_s29  ;;  %s832_s17 = scalar_lea.hbm %s4018_s29, %s4017_s22 }
  0x7b   : > { %s834_s19 = sshll.u32 %s832_s17, 4  ;;  %s3154_s22 = scalar_lea.hbm %s4019_s4, 16  ;;  %s835_s19 = int_to_ptr.hbm [resolvable:$true] %s834_s19 }
  0x7c   : > { %s3147_s6 = sshra.s32 %s835_s19, 4  ;;  %s3148_s6 = int_to_ptr.hbm [resolvable:$true] %s3147_s6 }
  0x7d   : > { %s3149_s3 = scalar_lea.hbm %s3148_s6, 8  ;;  %p3155_p10 = scmp.lt.s32.totalorder %s3148_s6, %s4019_s4 }
  0x7e   : > { %p3150_p1 = scmp.ne.s32.totalorder %s3148_s6, %s3149_s3  ;;  %p3156_p11 = scmp.lt.s32.totalorder %s3154_s22, %s3149_s3 }
  0x80   : > { %p3152_p6 = pnand %p3150_p1, %p2941_p9  ;;  %p3157_p13 = por %p3156_p11, %p3155_p10 }
  0x82   : > { %p3153_p8 = pneg %p3152_p6 }
  0x84   : > { %p3158_p0 = pnand %p3157_p13, %p3153_p8 }
  0x86   : > { %3161 = shalt.err (!%p3158_p0)
}
  0x87   : > { %2600 = dma.hbm_to_vmem [thread:$0]  (!%p3565_p7), %s835_s19, 128, %s837_s15, %s825_s10  }
  0x88   : > { %s4021_s11 = sshll.u32 %s3597_s20, 4  ;;  %s4022_s17 = sld [smem:[#allocation44_spill]]  ;;  %s875_s11 = int_to_ptr.vmem [resolvable:$true] %s4021_s11 }
  0x8e   : > { %s871_s1 = scalar_lea.hbm %s4022_s17, %s2503_s9  ;;  %s3184_s15 = scalar_lea.hbm %s4022_s17, 32 }
  0x8f   : > { %s872_s26 = sshll.u32 %s871_s1, 4  ;;  %s873_s26 = int_to_ptr.hbm [resolvable:$true] %s872_s26 }
  0x90   : > { %s3177_s0 = sshra.s32 %s873_s26, 4  ;;  %s3178_s0 = int_to_ptr.hbm [resolvable:$true] %s3177_s0 }
  0x91   : > { %s3179_s6 = scalar_lea.hbm %s3178_s0, 16  ;;  %p3185_p8 = scmp.lt.s32.totalorder %s3178_s0, %s4022_s17 }
  0x92   : > { %p3180_p2 = scmp.ne.s32.totalorder %s3178_s0, %s3179_s6  ;;  %p3186_p10 = scmp.lt.s32.totalorder %s3184_s15, %s3179_s6 }
  0x94   : > { %p3182_p1 = pnand %p3180_p2, %p2941_p9  ;;  %p3187_p11 = por %p3186_p10, %p3185_p8 }
  0x96   : > { %p3183_p6 = pneg %p3182_p1 }
  0x98   : > { %p3188_p13 = pnand %p3187_p11, %p3183_p6 }
  0x9a   : > { %3191 = shalt.err (!%p3188_p13)
}
  0x9b   : > { %2606 = dma.hbm_to_vmem [thread:$0]  (!%p3565_p7), %s873_s26, 256, %s875_s11, %s3577_s16, %s4016_s25, %s4016_s25, %s4015_s21  }
  0x9c   : > { %892 = sbr.rel (%p3483_p3) target bundleno = 3365 (0xd25), region = 120  ;;  %s3679_s9 = sand.u32 (!%p3483_p3), 1, %s3293_s2  }
  0x9d   : > { %s3682_s10 = sshll.u32 (!%p3483_p3), %s3679_s9, 3  ;;  %s895_s13 = scalar_lea.sflag (!%p3483_p3), [#allocation3], %s3679_s9 }
  0x9e   : > { %s898_s5 = scalar_lea.vmem (!%p3483_p3), [#allocation2], %s3682_s10 }
  0xa1   : > { %3252 = dma.done.wait (%p3546_p12), %s895_s13, 128  }
  0xa2   : > { %3254 = vsyncadd (%p3546_p12), %s895_s13, 4294967168  ;;  %s904_s27 = sand.u32 1, %s3478_s8   ;;  %s908_s24 = scalar_lea.vmem [#allocation5], %s3682_s10 }
  0xa3   : > { %s905_s16 = scalar_lea.sflag [#allocation6], %s904_s27 }
  0xa4   : > { %3256 = dma.done.wait (%p3546_p12), %s905_s16, 384  }
  0xa5   : > { %3258 = vsyncadd (%p3546_p12), %s905_s16, 4294966912  ;;  %s2455_s21 = sshll.u32 %s3679_s9, 4  ;;  %p4023_p3 = scmp.eq.s32.totalorder %s3478_s8, 0 }
  0xa6   : > { %s3697_s25 = scalar_lea.vmem [#allocation7], %s2455_s21 }
  0xa7   : > { %3260 = dma.done.wait (%p4023_p3), [#allocation9], 32   ;;  %p4024_p7 = pmov %p4023_p3 }
  0xa8   : > { %p4025_p9 = pmov %p4023_p3 }
  0xa9   : > { %3262 = vsyncadd (%p4024_p7), [#allocation9], 4294967264 }
  0xaa   : > { %3264 = dma.done.wait (%p4025_p9), [#allocation12], 32   ;;  %p4026_p0 = pmov %p4023_p3 }
  0xac   : > { %3266 = vsyncadd (%p4026_p0), [#allocation12], 4294967264  ;;  %p4027_p2 = pmov %p4026_p0 }
  0xad   : > { %p4028_p12 = pmov %p4026_p0 }
  0xae   : > { %3268 = dma.done.wait (%p4027_p2), [#allocation15], 6160  }
  0xaf   : > { %3270 = vsyncadd (%p4028_p12), [#allocation15], 4294961136  ;;  %p4029_p1 = pmov %p4026_p0 }
  0xb0   : > { %p4030_p6 = pmov %p4026_p0 }
  0xb1   : > { %3272 = dma.done.wait (%p4029_p1), [#allocation18], 4096  }
  0xb2   : > { %3274 = vsyncadd (%p4030_p6), [#allocation18], 4294963200  ;;  %p4031_p8 = pmov %p4026_p0 }
  0xb3   : > { %p4032_p10 = pmov %p4026_p0 }
  0xb4   : > { %3276 = dma.done.wait (%p4031_p8), [#allocation21], 6144  }
  0xb5   : > { %3278 = vsyncadd (%p4032_p10), [#allocation21], 4294961152  ;;  %p4033_p11 = pmov %p4026_p0 }
  0xb6   : > { %p4034_p13 = pmov %p4026_p0 }
  0xb7   : > { %3280 = dma.done.wait (%p4033_p11), [#allocation24], 4096  }
  0xb8   : > { %3282 = vsyncadd (%p4034_p13), [#allocation24], 4294963200  ;;  %v3723_v0 = vld [vmem:[%s898_s5] sm:$0xff]  ;;  %v1148_v1 = vld [vmem:[#allocation16 + $0x168] sm:$0xff]  ;;  %vm1243_vm3 = vcmask 261120   ;;  %s3321_s7 = smov 32  }
  0xb9   : > { %1071 = vadd.xlane.f32.xlu0 %v3723_v0  ;;  %v1149_v2 = vld [vmem:[#allocation16 + $0x170] sm:$0xff]  ;;  %v1150_v3 = vld [vmem:[#allocation16 + $0x178] sm:$0xff]  ;;  %1159 = vmatpush.msra.mxu0 %v1148_v1  ;;  %v1147_v6 = vld [vmem:[#allocation16 + $0x160] sm:$0xff]  ;;  %s3322_s29 = smov 64   ;;  %s3323_s1 = smov 96   ;;  %vm1350_vm4 = vcmask 64512  }
  0xba   : > { %1179 = vmatpush.msra.mxu1 %v1149_v2  ;;  %v1145_v4 = vld [vmem:[#allocation16 + $0x150] sm:$0xff]  ;;  %v1146_v5 = vld [vmem:[#allocation16 + $0x158] sm:$0xff]  ;;  %1199 = vmatpush.msra.mxu2 %v1150_v3  ;;  %v1143_v14 = vld [vmem:[#allocation16 + $0x140] sm:$0xff]  ;;  %vm1504_vm5 = vcmask 523264   ;;  %vm1506_vm6 = vcmask 785408   ;;  %s4035_s19 = sld [smem:[#allocation56_spill]] }
  0xbb   : > { %1160 = vmatpush.msra.mxu0 %v1145_v4  ;;  %v3726_v9 = vld [vmem:[#allocation8] ss:$0 sm:$0xff]  ;;  %v1142_v13 = vld [vmem:[#allocation16 + $0x138] sm:$0xff]  ;;  %v1144_v15 = vld [vmem:[#allocation16 + $0x148] sm:$0xff]  ;;  %p1060_p3 = scmp.lt.s32.totalorder %s3478_s8, 1  ;;  %s4036_s27 = sld [smem:[#allocation45_spill]] }
  0xbc   : > { %1180 = vmatpush.msra.mxu1 %v1146_v5  ;;  %1200 = vmatpush.msra.mxu2 %v1147_v6  ;;  %v1139_v16 = vld [vmem:[#allocation16 + $0x120] sm:$0xff]  ;;  %v1140_v17 = vld [vmem:[#allocation16 + $0x128] sm:$0xff]  ;;  %v1141_v18 = vld [vmem:[#allocation16 + $0x130] sm:$0xff]  ;;  %vm1863_vm10 = vcmask 130048   ;;  %s4039_s26 = sld [smem:[#allocation52_spill]]  ;;  %s2500_s22 = sshll.u32 %s3478_s8, 3 }
  0xbd   : > { %1161 = vmatpush.msra.mxu0 %v1142_v13  ;;  %v1136_v19 = vld [vmem:[#allocation16 + $0x108] sm:$0xff]  ;;  %v1137_v20 = vld [vmem:[#allocation16 + $0x110] sm:$0xff]  ;;  %v1138_v21 = vld [vmem:[#allocation16 + $0x118] sm:$0xff]  ;;  %s1061_s20 = scalar_select %p1060_p3, %s3478_s8, 1 }
  0xbe   : > { %1181 = vmatpush.msra.mxu1 %v1143_v14  ;;  %1201 = vmatpush.msra.mxu2 %v1144_v15  ;;  %v1133_v22 = vld [vmem:[#allocation16 + $0xf0] sm:$0xff]  ;;  %v1134_v23 = vld [vmem:[#allocation16 + $0xf8] sm:$0xff]  ;;  %v1135_v24 = vld [vmem:[#allocation16 + $0x100] sm:$0xff]  ;;  %s4040_s3 = sld [smem:[#allocation61_spill]]  ;;  %s1058_s21 = scalar_lea.vmem [#allocation26], %s3682_s10 }
  0xbf   : > { %1162 = vmatpush.msra.mxu0 %v1139_v16  ;;  %v1130_v25 = vld [vmem:[#allocation16 + $0xd8] sm:$0xff]  ;;  %v1131_v26 = vld [vmem:[#allocation16 + $0xe0] sm:$0xff]  ;;  %v1132_v27 = vld [vmem:[#allocation16 + $0xe8] sm:$0xff]  ;;  %s2179_s8 = scalar_lea.sflag [#allocation4], %s3679_s9 }
  0xc0   : > { %1182 = vmatpush.msra.mxu1 %v1140_v17  ;;  %1202 = vmatpush.msra.mxu2 %v1141_v18  ;;  %v1127_v28 = vld [vmem:[#allocation16 + $0xc0] sm:$0xff]  ;;  %v1128_v29 = vld [vmem:[#allocation16 + $0xc8] sm:$0xff]  ;;  %v1129_v30 = vld [vmem:[#allocation16 + $0xd0] sm:$0xff] }
  0xc1   : > { %1163 = vmatpush.msra.mxu0 %v1136_v19  ;;  %v1124_v31 = vld [vmem:[#allocation16 + $0xa8] sm:$0xff]  ;;  %v1125_v32 = vld [vmem:[#allocation16 + $0xb0] sm:$0xff]  ;;  %v1126_v33 = vld [vmem:[#allocation16 + $0xb8] sm:$0xff]  ;;  %s3839_s16 = scalar_lea.vmem %s4036_s27, %s1061_s20  ;;  %s4041_s20 = sld [smem:[#allocation62_spill]] }
  0xc2   : > { %1183 = vmatpush.msra.mxu1 %v1137_v20  ;;  %1203 = vmatpush.msra.mxu2 %v1138_v21  ;;  %v1121_v34 = vld [vmem:[#allocation16 + $0x90] sm:$0xff]  ;;  %v1122_v35 = vld [vmem:[#allocation16 + $0x98] sm:$0xff]  ;;  %v1123_v36 = vld [vmem:[#allocation16 + $0xa0] sm:$0xff]  ;;  %s4042_s27 = sld [smem:[#allocation63_spill]] }
  0xc3   : > { %1164 = vmatpush.msra.mxu0 %v1133_v22  ;;  %v1118_v37 = vld [vmem:[#allocation16 + $0x78] sm:$0xff]  ;;  %v1119_v38 = vld [vmem:[#allocation16 + $0x80] sm:$0xff]  ;;  %v1120_v39 = vld [vmem:[#allocation16 + $0x88] sm:$0xff] }
  0xc4   : > { %1184 = vmatpush.msra.mxu1 %v1134_v23  ;;  %1204 = vmatpush.msra.mxu2 %v1135_v24  ;;  %v1115_v40 = vld [vmem:[#allocation16 + $0x60] sm:$0xff]  ;;  %v1116_v41 = vld [vmem:[#allocation16 + $0x68] sm:$0xff]  ;;  %v1117_v42 = vld [vmem:[#allocation16 + $0x70] sm:$0xff] }
  0xc5   : > { %1165 = vmatpush.msra.mxu0 %v1130_v25  ;;  %v1112_v43 = vld [vmem:[#allocation16 + $0x48] sm:$0xff]  ;;  %v1113_v44 = vld [vmem:[#allocation16 + $0x50] sm:$0xff]  ;;  %v1114_v45 = vld [vmem:[#allocation16 + $0x58] sm:$0xff] }
  0xc6   : > { %1185 = vmatpush.msra.mxu1 %v1131_v26  ;;  %1205 = vmatpush.msra.mxu2 %v1132_v27  ;;  %v1109_v46 = vld [vmem:[#allocation16 + $0x30] sm:$0xff]  ;;  %v1110_v47 = vld [vmem:[#allocation16 + $0x38] sm:$0xff]  ;;  %v1111_v48 = vld [vmem:[#allocation16 + $0x40] sm:$0xff] }
  0xc7   : > { %1166 = vmatpush.msra.mxu0 %v1127_v28  ;;  %v1106_v49 = vld [vmem:[#allocation16 + $0x18] sm:$0xff]  ;;  %v1107_v50 = vld [vmem:[#allocation16 + $0x20] sm:$0xff]  ;;  %v1108_v51 = vld [vmem:[#allocation16 + $0x28] sm:$0xff] }
  0xc8   : > { %1186 = vmatpush.msra.mxu1 %v1128_v29  ;;  %1206 = vmatpush.msra.mxu2 %v1129_v30  ;;  %v1103_v52 = vld [vmem:[#allocation16] sm:$0xff]  ;;  %v1104_v53 = vld [vmem:[#allocation16 + $0x8] sm:$0xff]  ;;  %v1105_v54 = vld [vmem:[#allocation16 + $0x10] sm:$0xff]  ;;  %s3227_s10 = scalar_lea.hbm %s4042_s27, 16 }
  0xc9   : > { %1167 = vmatpush.msra.mxu0 %v1124_v31  ;;  %v2706_v1 = vld [vmem:[#allocation10] ss:$0 sm:$0xff]  ;;  %v2707_v4 = vld [vmem:[#allocation11] ss:$0 sm:$0xff]  ;;  %v3753_v24 = vld [vmem:[%s908_s24] sm:$0xff]  ;;  %s2189_s24 = scalar_lea.hbm %s4042_s27, %s2500_s22 }
  0xca   : > { %1187 = vmatpush.msra.mxu1 %v1125_v32  ;;  %1207 = vmatpush.msra.mxu2 %v1126_v33  ;;  %v2477_v25 = vadd.f32 -1.0, %v3753_v24  ;;  %s2193_s28 = sshll.u32 %s2189_s24, 4  ;;  %s2194_s28 = int_to_ptr.hbm [resolvable:$true] %s2193_s28 }
  0xcb   : > { %1168 = vmatpush.msra.mxu0 %v1121_v34  ;;  %s3221_s11 = sshra.s32 %s2194_s28, 4  ;;  %s3222_s11 = int_to_ptr.hbm [resolvable:$true] %s3221_s11 }
  0xcc   : > { %1188 = vmatpush.msra.mxu1 %v1122_v35  ;;  %1208 = vmatpush.msra.mxu2 %v1123_v36  ;;  %v1345_v28 = vmul.f32 1e+30, %v2477_v25  ;;  %p3228_p2 = scmp.lt.s32.totalorder %s3222_s11, %s4042_s27 }
  0xcd   : > { %1169 = vmatpush.msra.mxu0 %v1118_v37 }
  0xce   : > { %1189 = vmatpush.msra.mxu1 %v1119_v38  ;;  %1209 = vmatpush.msra.mxu2 %v1120_v39 }
  0xcf   : > { %1170 = vmatpush.msra.mxu0 %v1115_v40 }
  0xd0   : > { %1190 = vmatpush.msra.mxu1 %v1116_v41  ;;  %1210 = vmatpush.msra.mxu2 %v1117_v42 }
  0xd1   : > { %1171 = vmatpush.msra.mxu0 %v1112_v43 }
  0xd2   : > { %1191 = vmatpush.msra.mxu1 %v1113_v44  ;;  %1211 = vmatpush.msra.mxu2 %v1114_v45 }
  0xd3   : > { %1172 = vmatpush.msra.mxu0 %v1109_v46 }
  0xd4   : > { %1192 = vmatpush.msra.mxu1 %v1110_v47  ;;  %1212 = vmatpush.msra.mxu2 %v1111_v48 }
  0xd5   : > { %1173 = vmatpush.msra.mxu0 %v1106_v49 }
  0xd6   : > { %1193 = vmatpush.msra.mxu1 %v1107_v50  ;;  %1213 = vmatpush.msra.mxu2 %v1108_v51 }
  0xd7   : > { %1174 = vmatpush.msra.mxu0 %v1103_v52 }
  0xd8   : > { %1194 = vmatpush.msra.mxu1 %v1104_v53  ;;  %1214 = vmatpush.msra.mxu2 %v1105_v54 }
 0x12c   : > { %v1072_v7 = vpop.xlane.xlu0 %1071 }
 0x12d   : > { %v1073_v8 = vmul.f32 0.03125, %v1072_v7  ;;  %v1151_v7 = vld [vmem:[%s3936_s12] sm:$0x7] }
 0x12e   : > { %v1155_v19 = vperm.slane %v1151_v7, 2 }
 0x12f   : > { %v3729_v10 = vsub.f32 %v3723_v0, %v1073_v8  ;;  %v1154_v8 = vperm.slane %v1151_v7, 1 }
 0x131   : > { %v1078_v11 = vmul.f32 %v3726_v9, %v3729_v10 }
 0x133   : > { %v1079_v12 = vmul.f32 %v1078_v11, %v1078_v11 }
 0x135   : > { %1080 = vadd.xlane.f32.xlu0 %v1079_v12  ;;  %v1153_v12 = vperm.slane %v1151_v7, 0 }
 0x1a8   : > { %v1081_v55 = vpop.xlane.xlu0 %1080 }
 0x1a9   : > { %v1082_v56 = vmul.f32 0.03125, %v1081_v55 }
 0x1ab   : > { %v1083_v57 = vadd.f32 1e-12, %v1082_v56 }
 0x1ad   : > { %2718 = vrsqrt.f32 %v1083_v57  ;;  %vm1090_vm1 = vweird.f32 %v1083_v57 }
 0x1b3   : > { %v2719_v58 = vpop.eup %2718 }
 0x1b4   : > { %v1085_v59 = vmul.f32 %v2719_v58, %v1083_v57  ;;  %vm1091_vm0 = vweird.f32 %v2719_v58 }
 0x1b5   : > { %vm1092_vm2 = vmor %vm1090_vm1, %vm1091_vm0 }
 0x1b6   : > { %v1086_v60 = vmul.f32 %v2719_v58, %v1085_v59 }
 0x1b8   : > { %v1087_v61 = vmul.f32 0.5, %v1086_v60 }
 0x1ba   : > { %v1088_v62 = vsub.f32 1.5, %v1087_v61 }
 0x1bc   : > { %v1089_v63 = vmul.f32 %v2719_v58, %v1088_v62 }
 0x1be   : > { %v1093_v2 = vsel %vm1092_vm2, %v2719_v58, %v1089_v63 }
 0x1bf   : > { %v1094_v3 = vmul.f32 %v1093_v2, %v3729_v10 }
 0x1c1   : > { %v1098_v5 = vmul.f32 %v2706_v1, %v1094_v3 }
 0x1c3   : > { %v1102_v6 = vadd.f32 %v2707_v4, %v1098_v5 }
 0x1c5   : > { %1175 = vmatmul.f32.vlgmr.msra.gmra.mxu0 %v1102_v6  ;;  %1195 = vmatmul.f32.vlgmr.msra.gmra.mxu1 %v1102_v6 }
 0x1c6   : > { %1215 = vmatmul.f32.vlgmr.msra.gmra.mxu2 %v1102_v6 }
 0x242   : > { %v1196_v11 = vpop.f32.mrf.mxu1  ;;  %v1176_v14 = vpop.f32.mrf.mxu0 }
 0x243   : > { %v1197_v13 = vadd.f32 %v1196_v11, %v1154_v8  ;;  %v1177_v10 = vadd.f32 %v1176_v14, %v1153_v12 }
 0x245   : > { %1231 = vrot.lane.b32.xlu0 %v1197_v13, %s3321_s7  ;;  %1229 = vrot.lane.b32.xlu2 %v1197_v13, %s3322_s29 }
 0x246   : > { %1227 = vrot.lane.b32.xlu1 %v1197_v13, %s3323_s1  ;;  %2469 = vmatpush.xpose.msk.msrb.mxu0 %vm1243_vm3, %v1197_v13 }
 0x249   : > { %2470 = vmatmul.msk.f32.vlgmr.msrb.gmra.mxu0 %vm1243_vm3, %v1177_v10  ;;  %v1216_v20 = vpop.f32.mrf.mxu2 }
 0x24a   : > { %v1217_v21 = vadd.f32 %v1216_v20, %v1155_v19  ;;  %v1523_v20 = vld [vmem:[#allocation17 + $0x78] sm:$0xff] }
 0x24d   : > { %1222 = vrot.lane.b32.xlu2 %v1177_v10, %s3322_s29 }
 0x24e   : > { %1220 = vrot.lane.b32.xlu1 %v1177_v10, %s3323_s1 }
 0x256   : > { %1224 = vrot.lane.b32.xlu1 %v1177_v10, %s3321_s7 }
 0x29f   : > { %v1230_v16 = vpop.permute.xlu2 %1229 }
 0x2a7   : > { %v1223_v22 = vpop.permute.xlu2 %1222 }
 0x2b7   : > { %v1232_v18 = vpop.permute.xlu0 %1231 }
 0x2b8   : > { %v1228_v15 = vpop.permute.xlu1 %1227 }
 0x2b9   : > { %2471 = vmatpush.xpose.msk.msra.mxu3 %vm1243_vm3, %v1228_v15 }
 0x2bd   : > { %2473 = vmatpush.xpose.msk.msrb.mxu3 %vm1243_vm3, %v1230_v16 }
 0x2c0   : > { %v1221_v17 = vpop.permute.xlu1 %1220 }
 0x2c1   : > { %2472 = vmatmul.msk.f32.vlgmr.msra.gmra.mxu3 %vm1243_vm3, %v1221_v17 }
 0x2c2   : > { %2475 = vmatpush.xpose.msk.msra.mxu3 %vm1243_vm3, %v1232_v18 }
 0x2c6   : > { %v1265_v29 = vpop.f32.mrf.mxu0 }
 0x2c7   : > { %v1340_v31 = vmul.f32 0.35355338, %v1265_v29  ;;  %v1517_v29 = vld [vmem:[#allocation17 + $0x48] sm:$0xff] }
 0x2c8   : > { %v1225_v23 = vpop.permute.xlu1 %1224 }
 0x2c9   : > { %2474 = vmatmul.msk.f32.vlgmr.msrb.gmra.mxu3 %vm1243_vm3, %v1223_v22  ;;  %v1346_v35 = vadd.f32 %v1345_v28, %v1340_v31  ;;  %v1521_v22 = vld [vmem:[#allocation17 + $0x68] sm:$0xff]  ;;  %v1515_v31 = vld [vmem:[#allocation17 + $0x38] sm:$0xff] }
 0x2ca   : > { %1417 = vmatpush.msrb.mxu3 %v1217_v21 }
 0x2cb   : > { %v1351_v38 = vsel %vm1350_vm4, %v1346_v35, -inf }
 0x2d1   : > { %2476 = vmatmul.msk.f32.vlgmr.msra.gmra.mxu3 %vm1243_vm3, %v1225_v23 }
 0x2d2   : > { %1524 = vmatpush.msra.mxu3 %v1523_v20  ;;  %v1585_v20 = vld [vmem:[#allocation19 + $0x20] sm:$0xff] }
 0x344   : > { %v1289_v26 = vpop.f32.mrf.mxu3 }
 0x345   : > { %v1341_v27 = vmul.f32 0.35355338, %v1289_v26 }
 0x347   : > { %v1347_v30 = vadd.f32 %v1345_v28, %v1341_v27  ;;  %v1520_v27 = vld [vmem:[#allocation17 + $0x60] sm:$0xff] }
 0x349   : > { %v1354_v32 = vsel %vm1350_vm4, %v1347_v30, -inf }
 0x34a   : > { %1355 = vmax.xlane.f32.xlu2 %v1354_v32  ;;  %v1514_v32 = vld [vmem:[#allocation17 + $0x30] sm:$0xff] }
 0x34c   : > { %v1313_v33 = vpop.f32.mrf.mxu3 }
 0x34d   : > { %v1342_v34 = vmul.f32 0.35355338, %v1313_v33  ;;  %v1513_v33 = vld [vmem:[#allocation17 + $0x28] sm:$0xff] }
 0x34f   : > { %v1348_v36 = vadd.f32 %v1345_v28, %v1342_v34  ;;  %v1512_v34 = vld [vmem:[#allocation17 + $0x20] sm:$0xff] }
 0x351   : > { %v1357_v37 = vsel %vm1350_vm4, %v1348_v36, -inf }
 0x352   : > { %1358 = vmax.xlane.f32.xlu0 %v1357_v37  ;;  %1352 = vmax.xlane.f32.xlu2 %v1351_v38  ;;  %v1509_v37 = vld [vmem:[#allocation17 + $0x8] sm:$0xff]  ;;  %v1508_v38 = vld [vmem:[#allocation17] sm:$0xff] }
 0x354   : > { %v1337_v39 = vpop.f32.mrf.mxu3 }
 0x355   : > { %v1343_v40 = vmul.f32 0.35355338, %v1337_v39 }
 0x357   : > { %v1349_v41 = vadd.f32 %v1345_v28, %v1343_v40  ;;  %v1519_v28 = vld [vmem:[#allocation17 + $0x58] sm:$0xff] }
 0x359   : > { %v1360_v42 = vsel %vm1350_vm4, %v1349_v41, -inf }
 0x35a   : > { %1361 = vmax.xlane.f32.xlu1 %v1360_v42 }
 0x366   : > { %1240 = vrot.lane.b32.xlu0 %v1217_v21, %s3321_s7 }
 0x3bd   : > { %v1356_v43 = vpop.xlane.xlu2 %1355 }
 0x3be   : > { %v1364_v44 = vsub.f32 %v1347_v30, %v1356_v43  ;;  %v1516_v30 = vld [vmem:[#allocation17 + $0x40] sm:$0xff] }
 0x3c0   : > { %v1369_v45 = vmul.f32 1.442695, %v1364_v44 }
 0x3c2   : > { %2720 = vpow2.f32 %v1369_v45 }
 0x3c5   : > { %v1359_v46 = vpop.xlane.xlu0 %1358  ;;  %v1353_v47 = vpop.xlane.xlu2 %1352 }
 0x3c6   : > { %v1365_v48 = vsub.f32 %v1348_v36, %v1359_v46  ;;  %v1363_v49 = vsub.f32 %v1346_v35, %v1353_v47  ;;  %v1511_v35 = vld [vmem:[#allocation17 + $0x18] sm:$0xff]  ;;  %v1510_v36 = vld [vmem:[#allocation17 + $0x10] sm:$0xff] }
 0x3c7   : > { %v2708_v46 = vld [vmem:[%s3938_s14] ss:$0 sm:$0xff] }
 0x3c8   : > { %v2721_v50 = vpop.eup %2720  ;;  %v1371_v51 = vmul.f32 1.442695, %v1365_v48  ;;  %v1367_v52 = vmul.f32 1.442695, %v1363_v49 }
 0x3c9   : > { %v1378_v53 = vsel %vm1350_vm4, %v2721_v50, 0.0 }
 0x3ca   : > { %2722 = vpow2.f32 %v1371_v51  ;;  %1379 = vadd.xlane.f32.xlu2 %v1378_v53  ;;  %v1649_v51 = vld [vmem:[#allocation20 + $0xe0] sm:$0xff] }
 0x3cb   : > { %2724 = vpow2.f32 %v1367_v52  ;;  %v1647_v52 = vld [vmem:[#allocation20 + $0xd0] sm:$0xff]  ;;  %v1645_v53 = vld [vmem:[#allocation20 + $0xc0] sm:$0xff] }
 0x3cd   : > { %v1362_v54 = vpop.xlane.xlu1 %1361 }
 0x3ce   : > { %v1366_v55 = vsub.f32 %v1349_v41, %v1362_v54  ;;  %v1643_v54 = vld [vmem:[#allocation20 + $0xb0] sm:$0xff] }
 0x3d0   : > { %v2723_v56 = vpop.eup %2722  ;;  %v1373_v57 = vmul.f32 1.442695, %v1366_v55  ;;  %v1641_v55 = vld [vmem:[#allocation20 + $0xa0] sm:$0xff] }
 0x3d1   : > { %v2725_v58 = vpop.eup %2724  ;;  %v1381_v59 = vsel %vm1350_vm4, %v2723_v56, 0.0 }
 0x3d2   : > { %2726 = vpow2.f32 %v1373_v57  ;;  %1382 = vadd.xlane.f32.xlu2 %v1381_v59  ;;  %v1375_v60 = vsel %vm1350_vm4, %v2725_v58, 0.0  ;;  %v1595_v57 = vld [vmem:[#allocation19 + $0x70] sm:$0xff] }
 0x3d3   : > { %1376 = vadd.xlane.f32.xlu0 %v1375_v60  ;;  %v1635_v59 = vld [vmem:[#allocation20 + $0x70] sm:$0xff]  ;;  %v1633_v60 = vld [vmem:[#allocation20 + $0x60] sm:$0xff] }
 0x3d8   : > { %v2727_v61 = vpop.eup %2726  ;;  %v1241_v62 = vpop.permute.xlu0 %1240 }
 0x3d9   : > { %1486 = vmatpush.msrb.mxu2 %v1241_v62  ;;  %v1384_v63 = vsel %vm1350_vm4, %v2727_v61, 0.0  ;;  %v1629_v62 = vld [vmem:[#allocation20 + $0x40] sm:$0xff] }
 0x3da   : > { %1385 = vadd.xlane.f32.xlu1 %v1384_v63  ;;  %v1627_v63 = vld [vmem:[#allocation20 + $0x30] sm:$0xff] }
 0x3ea   : > { %1237 = vrot.lane.b32.xlu2 %v1217_v21, %s3322_s29 }
 0x3f3   : > { %1234 = vrot.lane.b32.xlu1 %v1217_v21, %s3323_s1  ;;  %v1522_v21 = vld [vmem:[#allocation17 + $0x70] sm:$0xff] }
 0x3f4   : > { %1525 = vmatpush.msra.mxu3 %v1522_v21  ;;  %v1584_v21 = vld [vmem:[#allocation19 + $0x18] sm:$0xff] }
 0x3f6   : > { %1526 = vmatpush.msra.mxu3 %v1521_v22  ;;  %v1583_v22 = vld [vmem:[#allocation19 + $0x10] sm:$0xff] }
 0x3f8   : > { %1527 = vmatpush.msra.mxu3 %v1520_v27 }
 0x3fa   : > { %1528 = vmatpush.msra.mxu3 %v1519_v28 }
 0x43d   : > { %v1380_v6 = vpop.xlane.xlu2 %1379 }
 0x445   : > { %v1383_v12 = vpop.xlane.xlu2 %1382 }
 0x446   : > { %v1377_v1 = vpop.xlane.xlu0 %1376 }
 0x447   : > { %2728 = vrcp.f32 %v1377_v1 }
 0x44d   : > { %v2729_v2 = vpop.eup %2728  ;;  %v1386_v3 = vpop.xlane.xlu1 %1385 }
 0x44e   : > { %v1391_v4 = vmul.f32 %v2729_v2, %v2725_v58  ;;  %2730 = vrcp.f32 %v1386_v3  ;;  %v1238_v17 = vpop.permute.xlu2 %1237  ;;  %v1639_v58 = vld [vmem:[#allocation20 + $0x90] sm:$0xff]  ;;  %v1625_v3 = vld [vmem:[#allocation20 + $0x20] sm:$0xff] }
 0x44f   : > { %2732 = vrcp.f32 %v1380_v6 }
 0x450   : > { %v1395_v5 = vmul.f32 %v1391_v4, %v3753_v24  ;;  %2734 = vrcp.f32 %v1383_v12  ;;  %v3798_v12 = vld [vmem:[%s3697_s25 + $0x8] sm:$0xff] }
 0x452   : > { %2478 = vmatmul.msk.f32.vlgmr.msrb.gmra.mxu3 %vm1350_vm4, %v1395_v5  ;;  %v1623_v5 = vld [vmem:[#allocation20 + $0x10] sm:$0xff] }
 0x454   : > { %v2731_v7 = vpop.eup %2730 }
 0x455   : > { %v1394_v8 = vmul.f32 %v2731_v7, %v2727_v61  ;;  %v2733_v13 = vpop.eup %2732  ;;  %v1631_v61 = vld [vmem:[#allocation20 + $0x50] sm:$0xff]  ;;  %v1621_v7 = vld [vmem:[#allocation20] sm:$0xff] }
 0x456   : > { %v1392_v14 = vmul.f32 %v2733_v13, %v2721_v50  ;;  %v2735_v16 = vpop.eup %2734  ;;  %v1651_v50 = vld [vmem:[#allocation20 + $0xf0] sm:$0xff]  ;;  %v1594_v13 = vld [vmem:[#allocation19 + $0x68] sm:$0xff] }
 0x457   : > { %v1398_v11 = vmul.f32 %v1394_v8, %v3753_v24  ;;  %v1393_v18 = vmul.f32 %v2735_v16, %v2723_v56  ;;  %1659 = vmatpush.msrb.mxu1 %v1651_v50  ;;  %v1596_v56 = vld [vmem:[#allocation19 + $0x78] sm:$0xff]  ;;  %v1589_v16 = vld [vmem:[#allocation19 + $0x40] sm:$0xff] }
 0x458   : > { %v1396_v10 = vmul.f32 %v1392_v14, %v3753_v24  ;;  %v3794_v8 = vld [vmem:[%s3697_s25] sm:$0xff]  ;;  %s4037_s25 = sld [smem:[#allocation59_spill]] }
 0x459   : > { %2481 = vmatmul.msk.f32.vlgmr.msrb.gmra.mxu2 %vm1350_vm4, %v1398_v11  ;;  %v1397_v19 = vmul.f32 %v1393_v18, %v3753_v24  ;;  %v1518_v24 = vld [vmem:[#allocation17 + $0x50] sm:$0xff]  ;;  %1660 = vmatpush.msrb.mxu1 %v1649_v51  ;;  %v1593_v14 = vld [vmem:[#allocation19 + $0x60] sm:$0xff] }
 0x45a   : > { %1529 = vmatpush.msra.mxu3 %v1518_v24  ;;  %v1587_v18 = vld [vmem:[#allocation19 + $0x30] sm:$0xff] }
 0x45b   : > { %1661 = vmatpush.msrb.mxu1 %v1647_v52  ;;  %v3804_v24 = vld [vmem:[%s3942_s18] sm:$0x3] }
 0x45c   : > { %1530 = vmatpush.msra.mxu3 %v1517_v29  ;;  %v1655_v29 = vperm.slane %v3804_v24, 0  ;;  %v2711_v52 = vld [vmem:[%s4035_s19] ss:$0 sm:$0xff] }
 0x45d   : > { %1662 = vmatpush.msrb.mxu1 %v1645_v53 }
 0x45e   : > { %1531 = vmatpush.msra.mxu3 %v1516_v30 }
 0x45f   : > { %1663 = vmatpush.msrb.mxu1 %v1643_v54 }
 0x460   : > { %1532 = vmatpush.msra.mxu3 %v1515_v31 }
 0x461   : > { %1664 = vmatpush.msrb.mxu1 %v1641_v55 }
 0x462   : > { %1533 = vmatpush.msra.mxu3 %v1514_v32 }
 0x463   : > { %1665 = vmatpush.msrb.mxu1 %v1639_v58  ;;  %v1648_v58 = vld [vmem:[#allocation20 + $0xd8] sm:$0xff] }
 0x464   : > { %1534 = vmatpush.msra.mxu3 %v1513_v33 }
 0x465   : > { %v1235_v15 = vpop.permute.xlu1 %1234 }
 0x466   : > { %1440 = vmatpush.msra.mxu0 %v1235_v15  ;;  %1535 = vmatpush.msra.mxu3 %v1512_v34  ;;  %v1590_v15 = vld [vmem:[#allocation19 + $0x48] sm:$0xff] }
 0x467   : > { %2479 = vmatmul.msk.f32.vlgmr.msra.gmra.mxu0 %vm1350_vm4, %v1396_v10  ;;  %v1592_v10 = vld [vmem:[#allocation19 + $0x58] sm:$0xff] }
 0x468   : > { %1463 = vmatpush.msrb.mxu0 %v1238_v17  ;;  %1536 = vmatpush.msra.mxu3 %v1511_v35  ;;  %v1588_v17 = vld [vmem:[#allocation19 + $0x38] sm:$0xff] }
 0x46a   : > { %1537 = vmatpush.msra.mxu3 %v1510_v36  ;;  %1601 = vmatpush.msra.mxu0 %v1596_v56  ;;  %v1652_v56 = vld [vmem:[#allocation20 + $0xf8] sm:$0xff] }
 0x46b   : > { %1682 = vmatpush.msra.mxu2 %v1652_v56 }
 0x46c   : > { %1538 = vmatpush.msra.mxu3 %v1509_v37  ;;  %1602 = vmatpush.msra.mxu0 %v1595_v57  ;;  %v1650_v57 = vld [vmem:[#allocation20 + $0xe8] sm:$0xff] }
 0x46d   : > { %1683 = vmatpush.msra.mxu2 %v1650_v57 }
 0x46e   : > { %1539 = vmatpush.msra.mxu3 %v1508_v38  ;;  %1603 = vmatpush.msra.mxu0 %v1594_v13  ;;  %v1624_v13 = vld [vmem:[#allocation20 + $0x18] sm:$0xff] }
 0x46f   : > { %2480 = vmatmul.msk.f32.vlgmr.msrb.gmra.mxu0 %vm1350_vm4, %v1397_v19  ;;  %v1586_v19 = vld [vmem:[#allocation19 + $0x28] sm:$0xff]  ;;  %1684 = vmatpush.msra.mxu2 %v1648_v58 }
 0x470   : > { %1604 = vmatpush.msra.mxu0 %v1593_v14  ;;  %v1622_v14 = vld [vmem:[#allocation20 + $0x8] sm:$0xff] }
 0x472   : > { %1605 = vmatpush.msra.mxu0 %v1592_v10  ;;  %v1067_v10 = vld [vmem:[%s3839_s16] sm:$0x1] }
 0x4d5   : > { %v1419_v40 = vpop.f32.mrf.mxu3 }
 0x4dc   : > { %v1488_v25 = vpop.f32.mrf.mxu2 }
 0x4e4   : > { %v1442_v23 = vpop.f32.mrf.mxu0 }
 0x4e5   : > { %1492 = vrot.lane.b32.xlu1 %v1442_v23, %s3321_s7  ;;  %v1582_v23 = vld [vmem:[#allocation19 + $0x8] sm:$0xff] }
 0x4ec   : > { %v1465_v26 = vpop.f32.mrf.mxu0 }
 0x4ed   : > { %1500 = vrot.lane.b32.xlu1 %v1488_v25, %s3323_s1  ;;  %1496 = vrot.lane.b32.xlu2 %v1465_v26, %s3322_s29  ;;  %v1581_v25 = vld [vmem:[#allocation19] sm:$0xff] }
 0x547   : > { %v1497_v42 = vpop.permute.xlu2 %1496 }
 0x557   : > { %v1493_v39 = vpop.permute.xlu1 %1492 }
 0x558   : > { %v1503_v41 = vsel %vm1243_vm3, %v1419_v40, %v1493_v39  ;;  %v2709_v40 = vld [vmem:[#allocation13] ss:$0 sm:$0xff] }
 0x559   : > { %v1505_v44 = vsel %vm1504_vm5, %v1503_v41, %v1497_v42 }
 0x55f   : > { %v1501_v43 = vpop.permute.xlu1 %1500 }
 0x560   : > { %v1507_v45 = vsel %vm1506_vm6, %v1505_v44, %v1501_v43  ;;  %v2710_v43 = vld [vmem:[#allocation14] ss:$0 sm:$0xff] }
 0x561   : > { %1540 = vmatmul.f32.vlgmr.msra.gmra.mxu3 %v1507_v45 }
 0x5e4   : > { %v1541_v47 = vpop.f32.mrf.mxu3 }
 0x5e5   : > { %v1544_v48 = vadd.f32 %v1541_v47, %v3723_v0  ;;  %v1637_v0 = vld [vmem:[#allocation20 + $0x80] sm:$0xff] }
 0x5e6   : > { %1666 = vmatpush.msrb.mxu1 %v1637_v0  ;;  %v1646_v0 = vld [vmem:[#allocation20 + $0xc8] sm:$0xff] }
 0x5e7   : > { %v3785_v49 = vadd.f32 %v2708_v46, %v1544_v48  ;;  %1685 = vmatpush.msra.mxu2 %v1646_v0 }
 0x5e8   : > { %1667 = vmatpush.msrb.mxu1 %v1635_v59  ;;  %v1644_v59 = vld [vmem:[#allocation20 + $0xb8] sm:$0xff] }
 0x5e9   : > { %1552 = vadd.xlane.f32.xlu2 %v3785_v49  ;;  %1686 = vmatpush.msra.mxu2 %v1644_v59 }
 0x5ea   : > { %1668 = vmatpush.msrb.mxu1 %v1633_v60  ;;  %v1642_v60 = vld [vmem:[#allocation20 + $0xa8] sm:$0xff] }
 0x5eb   : > { %1687 = vmatpush.msra.mxu2 %v1642_v60 }
 0x5ec   : > { %1669 = vmatpush.msrb.mxu1 %v1631_v61  ;;  %v1640_v61 = vld [vmem:[#allocation20 + $0x98] sm:$0xff] }
 0x5ed   : > { %1688 = vmatpush.msra.mxu2 %v1640_v61 }
 0x5ee   : > { %1670 = vmatpush.msrb.mxu1 %v1629_v62  ;;  %v1638_v62 = vld [vmem:[#allocation20 + $0x88] sm:$0xff] }
 0x5ef   : > { %1689 = vmatpush.msra.mxu2 %v1638_v62 }
 0x5f0   : > { %1671 = vmatpush.msrb.mxu1 %v1627_v63 }
 0x5f2   : > { %1672 = vmatpush.msrb.mxu1 %v1625_v3  ;;  %v1632_v3 = vld [vmem:[#allocation20 + $0x58] sm:$0xff] }
 0x5f4   : > { %1673 = vmatpush.msrb.mxu1 %v1623_v5 }
 0x5f6   : > { %1674 = vmatpush.msrb.mxu1 %v1621_v7 }
 0x5f7   : > { %1675 = vmatmul.f32.vlgmr.msrb.gmra.mxu1 %v3794_v8 }
 0x5ff   : > { %1678 = vmatmul.f32.gmra.mxu1 %v3798_v12 }
 0x65c   : > { %v1553_v1 = vpop.xlane.xlu2 %1552 }
 0x65d   : > { %v1554_v2 = vmul.f32 0.03125, %v1553_v1  ;;  %v1636_v1 = vld [vmem:[#allocation20 + $0x78] sm:$0xff] }
 0x65e   : > { %1690 = vmatpush.msra.mxu2 %v1636_v1  ;;  %v2712_v1 = vld [vmem:[%s3839_s16] ss:$0 sm:$0xff] }
 0x65f   : > { %v3789_v4 = vsub.f32 %v3785_v49, %v1554_v2  ;;  %v1634_v2 = vld [vmem:[#allocation20 + $0x68] sm:$0xff] }
 0x660   : > { %1691 = vmatpush.msra.mxu2 %v1634_v2 }
 0x661   : > { %v1556_v6 = vmul.f32 %v3726_v9, %v3789_v4  ;;  %v1591_v9 = vld [vmem:[#allocation19 + $0x50] sm:$0xff] }
 0x662   : > { %1606 = vmatpush.msra.mxu0 %v1591_v9  ;;  %1692 = vmatpush.msra.mxu2 %v1632_v3 }
 0x663   : > { %v1557_v11 = vmul.f32 %v1556_v6, %v1556_v6  ;;  %v1628_v6 = vld [vmem:[#allocation20 + $0x38] sm:$0xff] }
 0x664   : > { %1607 = vmatpush.msra.mxu0 %v1590_v15  ;;  %v2494_v15 = vadd.f32 -1.0, %v1067_v10 }
 0x665   : > { %1558 = vadd.xlane.f32.xlu1 %v1557_v11  ;;  %v1626_v11 = vld [vmem:[#allocation20 + $0x28] sm:$0xff] }
 0x666   : > { %1608 = vmatpush.msra.mxu0 %v1589_v16  ;;  %v1855_v16 = vmul.f32 1e+30, %v2494_v15 }
 0x668   : > { %1609 = vmatpush.msra.mxu0 %v1588_v17 }
 0x66a   : > { %1610 = vmatpush.msra.mxu0 %v1587_v18 }
 0x66c   : > { %1611 = vmatpush.msra.mxu0 %v1586_v19  ;;  %v1857_v19 = vperm.slane %v1855_v16, 0 }
 0x66e   : > { %1612 = vmatpush.msra.mxu0 %v1585_v20 }
 0x670   : > { %1613 = vmatpush.msra.mxu0 %v1584_v21 }
 0x672   : > { %1614 = vmatpush.msra.mxu0 %v1583_v22 }
 0x674   : > { %1615 = vmatpush.msra.mxu0 %v1582_v23  ;;  %v1676_v30 = vpop.f32.mrf.mxu1 }
 0x675   : > { %v1677_v32 = vadd.f32 %v1676_v30, %v1655_v29 }
 0x676   : > { %1616 = vmatpush.msra.mxu0 %v1581_v25 }
 0x677   : > { %1718 = vrot.lane.b32.xlu2 %v1677_v32, %s3322_s29 }
 0x67c   : > { %v1679_v37 = vpop.f32.mrf.mxu1 }
 0x67d   : > { %v1680_v38 = vadd.f32 %v1679_v37, %v1655_v29 }
 0x67f   : > { %1720 = vrot.lane.b32.xlu0 %v1680_v38, %s3322_s29  ;;  %1716 = vrot.lane.b32.xlu1 %v1680_v38, %s3323_s1 }
 0x680   : > { %2482 = vmatpush.xpose.msk.msrb.mxu3 %vm1243_vm3, %v1680_v38  ;;  %1724 = vrot.lane.b32.xlu2 %v1680_v38, %s3321_s7 }
 0x684   : > { %2483 = vmatpush.xpose.msk.msrb.mxu3 %vm1243_vm3, %v1677_v32 }
 0x687   : > { %1714 = vrot.lane.b32.xlu0 %v1677_v32, %s3323_s1  ;;  %1722 = vrot.lane.b32.xlu1 %v1677_v32, %s3321_s7 }
 0x6d1   : > { %v1719_v47 = vpop.permute.xlu2 %1718 }
 0x6d8   : > { %v1559_v26 = vpop.xlane.xlu1 %1558 }
 0x6d9   : > { %v1560_v27 = vmul.f32 0.03125, %v1559_v26 }
 0x6da   : > { %v1725_v51 = vpop.permute.xlu2 %1724 }
 0x6db   : > { %v1561_v28 = vadd.f32 1e-12, %v1560_v27 }
 0x6dd   : > { %2736 = vrsqrt.f32 %v1561_v28  ;;  %vm1568_vm8 = vweird.f32 %v1561_v28 }
 0x6e3   : > { %v2737_v31 = vpop.eup %2736 }
 0x6e4   : > { %v1563_v33 = vmul.f32 %v2737_v31, %v1561_v28  ;;  %vm1569_vm7 = vweird.f32 %v2737_v31 }
 0x6e5   : > { %vm1570_vm9 = vmor %vm1568_vm8, %vm1569_vm7 }
 0x6e6   : > { %v1564_v34 = vmul.f32 %v2737_v31, %v1563_v33  ;;  %v1656_v33 = vperm.slane %v3804_v24, 1 }
 0x6e8   : > { %v1565_v35 = vmul.f32 0.5, %v1564_v34 }
 0x6ea   : > { %v1566_v36 = vsub.f32 1.5, %v1565_v35 }
 0x6ec   : > { %v1567_v39 = vmul.f32 %v2737_v31, %v1566_v36 }
 0x6ee   : > { %v1571_v41 = vsel %vm1570_vm9, %v2737_v31, %v1567_v39 }
 0x6ef   : > { %v1572_v42 = vmul.f32 %v1571_v41, %v3789_v4  ;;  %v1630_v4 = vld [vmem:[#allocation20 + $0x48] sm:$0xff] }
 0x6f0   : > { %1693 = vmatpush.msra.mxu2 %v1630_v4 }
 0x6f1   : > { %v1576_v44 = vmul.f32 %v2709_v40, %v1572_v42  ;;  %v1721_v46 = vpop.permute.xlu0 %1720  ;;  %v1717_v48 = vpop.permute.xlu1 %1716 }
 0x6f2   : > { %2488 = vmatpush.xpose.msk.msra.mxu3 %vm1243_vm3, %v1721_v46  ;;  %2485 = vmatpush.xpose.msk.msrb.mxu0 %vm1243_vm3, %v1717_v48 }
 0x6f3   : > { %v1580_v45 = vadd.f32 %v2710_v43, %v1576_v44  ;;  %1694 = vmatpush.msra.mxu2 %v1628_v6 }
 0x6f5   : > { %1617 = vmatmul.f32.vlgmr.msra.gmra.mxu0 %v1580_v45  ;;  %1695 = vmatpush.msra.mxu2 %v1626_v11 }
 0x6f6   : > { %2489 = vmatpush.xpose.msk.msra.mxu3 %vm1243_vm3, %v1719_v47 }
 0x6f7   : > { %1696 = vmatpush.msra.mxu2 %v1624_v13 }
 0x6f9   : > { %v1715_v50 = vpop.permute.xlu0 %1714  ;;  %v1723_v53 = vpop.permute.xlu1 %1722  ;;  %1697 = vmatpush.msra.mxu2 %v1622_v14 }
 0x6fa   : > { %2486 = vmatpush.xpose.msk.msrb.mxu0 %vm1243_vm3, %v1715_v50  ;;  %1698 = vmatmul.f32.vlgmr.msra.gmra.mxu2 %v3794_v8 }
 0x6fe   : > { %2491 = vmatpush.xpose.msk.msra.mxu0 %vm1243_vm3, %v1725_v51 }
 0x702   : > { %2492 = vmatpush.xpose.msk.msra.mxu0 %vm1243_vm3, %v1723_v53  ;;  %1701 = vmatmul.f32.gmra.mxu2 %v3798_v12 }
 0x772   : > { %v1618_v54 = vpop.f32.mrf.mxu0 }
 0x773   : > { %v1619_v55 = vadd.f32 %v2711_v52, %v1618_v54 }
 0x775   : > { %1708 = vrot.lane.b32.xlu0 %v1619_v55, %s3322_s29  ;;  %2484 = vmatmul.msk.f32.vlgmr.msrb.gmra.mxu3 %vm1243_vm3, %v1619_v55 }
 0x77d   : > { %1706 = vrot.lane.b32.xlu0 %v1619_v55, %s3323_s1  ;;  %v1699_v32 = vpop.f32.mrf.mxu2 }
 0x77e   : > { %v1700_v35 = vadd.f32 %v1699_v32, %v1656_v33  ;;  %v2029_v32 = vld [vmem:[#allocation22 + $0x38] sm:$0xff] }
 0x785   : > { %1710 = vrot.lane.b32.xlu0 %v1619_v55, %s3321_s7  ;;  %v1702_v34 = vpop.f32.mrf.mxu2 }
 0x786   : > { %v1703_v36 = vadd.f32 %v1702_v34, %v1656_v33  ;;  %v2028_v33 = vld [vmem:[#allocation22 + $0x30] sm:$0xff]  ;;  %v2027_v34 = vld [vmem:[#allocation22 + $0x28] sm:$0xff] }
 0x788   : > { %1932 = vmatpush.msra.mxu1 %v1703_v36  ;;  %v2695_v52 = vpack.i.bf16 %v1700_v35, %v1703_v36  ;;  %v2025_v36 = vld [vmem:[#allocation22 + $0x18] sm:$0xff] }
 0x78a   : > { %1933 = vmatpush.msra.mxu1 %v1700_v35  ;;  %v2026_v35 = vld [vmem:[#allocation22 + $0x20] sm:$0xff] }
 0x7e7   : > { %v1709_v63 = vpop.permute.xlu0 %1708 }
 0x7e8   : > { %2490 = vmatmul.msk.f32.vlgmr.msra.gmra.mxu3 %vm1243_vm3, %v1709_v63 }
 0x7ef   : > { %v1707_v5 = vpop.permute.xlu0 %1706 }
 0x7f0   : > { %2487 = vmatmul.msk.f32.vlgmr.msrb.gmra.mxu0 %vm1243_vm3, %v1707_v5 }
 0x7f7   : > { %v1711_v7 = vpop.permute.xlu0 %1710 }
 0x7f8   : > { %2493 = vmatmul.msk.f32.vlgmr.msra.gmra.mxu0 %vm1243_vm3, %v1711_v7  ;;  %v1769_v9 = vpop.f32.mrf.mxu3 }
 0x7f9   : > { %v1850_v23 = vmul.f32 0.35355338, %v1769_v9 }
 0x7fb   : > { %v1859_v28 = vadd.f32 %v1857_v19, %v1850_v23  ;;  %v2037_v23 = vld [vmem:[#allocation22 + $0x78] sm:$0xff] }
 0x7fc   : > { %2038 = vmatpush.msrb.mxu1 %v2037_v23 }
 0x7fd   : > { %v1864_v30 = vsel %vm1863_vm10, %v1859_v28, -inf }
 0x86b   : > { %v1821_v17 = vpop.f32.mrf.mxu3 }
 0x86c   : > { %v1852_v18 = vmul.f32 0.35355338, %v1821_v17 }
 0x86d   : > { %v1795_v20 = vpop.f32.mrf.mxu0 }
 0x86e   : > { %v1851_v21 = vmul.f32 0.35355338, %v1795_v20  ;;  %v1861_v8 = vadd.f32 %v1857_v19, %v1852_v18 }
 0x870   : > { %v1870_v22 = vsel %vm1863_vm10, %v1861_v8, -inf  ;;  %v1860_v12 = vadd.f32 %v1857_v19, %v1851_v21 }
 0x871   : > { %1871 = vmax.xlane.f32.xlu1 %v1870_v22 }
 0x872   : > { %v1867_v25 = vsel %vm1863_vm10, %v1860_v12, -inf }
 0x873   : > { %1868 = vmax.xlane.f32.xlu2 %v1867_v25  ;;  %v2036_v25 = vld [vmem:[#allocation22 + $0x70] sm:$0xff] }
 0x874   : > { %2039 = vmatpush.msrb.mxu1 %v2036_v25  ;;  %v2141_v25 = vld [vmem:[#allocation25 + $0x28] sm:$0xff] }
 0x875   : > { %v1847_v26 = vpop.f32.mrf.mxu0 }
 0x876   : > { %v1853_v27 = vmul.f32 0.35355338, %v1847_v26  ;;  %v2035_v26 = vld [vmem:[#allocation22 + $0x68] sm:$0xff] }
 0x877   : > { %2040 = vmatpush.msrb.mxu1 %v2035_v26 }
 0x878   : > { %v1862_v29 = vadd.f32 %v1857_v19, %v1853_v27  ;;  %v2034_v27 = vld [vmem:[#allocation22 + $0x60] sm:$0xff] }
 0x879   : > { %2041 = vmatpush.msrb.mxu1 %v2034_v27  ;;  %v2140_v27 = vld [vmem:[#allocation25 + $0x20] sm:$0xff] }
 0x87a   : > { %v1873_v31 = vsel %vm1863_vm10, %v1862_v29, -inf }
 0x87b   : > { %1865 = vmax.xlane.f32.xlu2 %v1864_v30  ;;  %1874 = vmax.xlane.f32.xlu0 %v1873_v31  ;;  %v2031_v30 = vld [vmem:[#allocation22 + $0x48] sm:$0xff]  ;;  %v2030_v31 = vld [vmem:[#allocation22 + $0x40] sm:$0xff] }
 0x8e4   : > { %v1872_v37 = vpop.xlane.xlu1 %1871 }
 0x8e5   : > { %v1878_v38 = vsub.f32 %v1861_v8, %v1872_v37  ;;  %v2024_v37 = vld [vmem:[#allocation22 + $0x10] sm:$0xff] }
 0x8e6   : > { %v1869_v39 = vpop.xlane.xlu2 %1868 }
 0x8e7   : > { %v1884_v40 = vmul.f32 1.442695, %v1878_v38  ;;  %v1877_v41 = vsub.f32 %v1860_v12, %v1869_v39  ;;  %v2023_v38 = vld [vmem:[#allocation22 + $0x8] sm:$0xff]  ;;  %v2022_v39 = vld [vmem:[#allocation22] sm:$0xff] }
 0x8e9   : > { %2738 = vpow2.f32 %v1884_v40  ;;  %v1882_v42 = vmul.f32 1.442695, %v1877_v41 }
 0x8eb   : > { %2740 = vpow2.f32 %v1882_v42 }
 0x8ee   : > { %v1875_v43 = vpop.xlane.xlu0 %1874  ;;  %v1866_v53 = vpop.xlane.xlu2 %1865 }
 0x8ef   : > { %v2739_v44 = vpop.eup %2738  ;;  %v1879_v45 = vsub.f32 %v1862_v29, %v1875_v43  ;;  %v1876_v54 = vsub.f32 %v1859_v28, %v1866_v53  ;;  %v2033_v28 = vld [vmem:[#allocation22 + $0x58] sm:$0xff]  ;;  %v2032_v29 = vld [vmem:[#allocation22 + $0x50] sm:$0xff] }
 0x8f0   : > { %v1894_v46 = vsel %vm1863_vm10, %v2739_v44, 0.0  ;;  %2042 = vmatpush.msrb.mxu1 %v2033_v28 }
 0x8f1   : > { %v2741_v47 = vpop.eup %2740  ;;  %v1886_v24 = vmul.f32 1.442695, %v1879_v45  ;;  %1895 = vadd.xlane.f32.xlu0 %v1894_v46  ;;  %v1880_v55 = vmul.f32 1.442695, %v1876_v54 }
 0x8f2   : > { %v1891_v48 = vsel %vm1863_vm10, %v2741_v47, 0.0  ;;  %2043 = vmatpush.msrb.mxu1 %v2032_v29  ;;  %v2139_v29 = vld [vmem:[#allocation25 + $0x18] sm:$0xff] }
 0x8f3   : > { %2742 = vpow2.f32 %v1886_v24  ;;  %1892 = vadd.xlane.f32.xlu1 %v1891_v48 }
 0x8f4   : > { %2744 = vpow2.f32 %v1880_v55  ;;  %2044 = vmatpush.msrb.mxu1 %v2031_v30 }
 0x8f6   : > { %2045 = vmatpush.msrb.mxu1 %v2030_v31 }
 0x8f8   : > { %2046 = vmatpush.msrb.mxu1 %v2029_v32 }
 0x8f9   : > { %v2743_v50 = vpop.eup %2742 }
 0x8fa   : > { %v1897_v51 = vsel %vm1863_vm10, %v2743_v50, 0.0  ;;  %v2745_v56 = vpop.eup %2744  ;;  %2047 = vmatpush.msrb.mxu1 %v2028_v33 }
 0x8fb   : > { %1898 = vadd.xlane.f32.xlu2 %v1897_v51  ;;  %v1888_v57 = vsel %vm1863_vm10, %v2745_v56, 0.0  ;;  %v2110_v51 = vld [vmem:[#allocation23 + $0x78] sm:$0xff] }
 0x8fc   : > { %2048 = vmatpush.msrb.mxu1 %v2027_v34  ;;  %v2715_v34 = vld [vmem:[%s4039_s26] ss:$0 sm:$0xff] }
 0x8fe   : > { %2049 = vmatpush.msrb.mxu1 %v2026_v35 }
 0x900   : > { %2050 = vmatpush.msrb.mxu1 %v2025_v36 }
 0x902   : > { %2051 = vmatpush.msrb.mxu1 %v2024_v37  ;;  %v2138_v37 = vld [vmem:[#allocation25 + $0x10] sm:$0xff] }
 0x904   : > { %2052 = vmatpush.msrb.mxu1 %v2023_v38  ;;  %v2137_v38 = vld [vmem:[#allocation25 + $0x8] sm:$0xff] }
 0x905   : > { %2696 = vrot.lane.b32.xlu0 %v2695_v52, %s3322_s29 }
 0x906   : > { %2053 = vmatpush.msrb.mxu1 %v2022_v39  ;;  %v2136_v39 = vld [vmem:[#allocation25] sm:$0xff] }
 0x90c   : > { %2691 = vrot.lane.b32.xlu1 %v2695_v52, %s3323_s1 }
 0x913   : > { %2701 = vrot.lane.b32.xlu2 %v2695_v52, %s3321_s7  ;;  %v2109_v52 = vld [vmem:[#allocation23 + $0x70] sm:$0xff] }
 0x92f   : > { %1889 = vadd.xlane.f32.xlu0 %v1888_v57 }
 0x964   : > { %v1896_v58 = vpop.xlane.xlu0 %1895 }
 0x965   : > { %2746 = vrcp.f32 %v1896_v58 }
 0x966   : > { %v1893_v59 = vpop.xlane.xlu1 %1892 }
 0x96b   : > { %v2747_v60 = vpop.eup %2746 }
 0x96c   : > { %v1906_v2 = vmul.f32 %v2747_v60, %v2739_v44  ;;  %v2105_v60 = vld [vmem:[#allocation23 + $0x50] sm:$0xff] }
 0x96e   : > { %v1899_v0 = vpop.xlane.xlu2 %1898  ;;  %v1913_v14 = vmul.f32 %v2712_v1, %v1906_v2  ;;  %v2100_v2 = vld [vmem:[#allocation23 + $0x28] sm:$0xff] }
 0x96f   : > { %2748 = vrcp.f32 %v1899_v0  ;;  %v2108_v0 = vld [vmem:[#allocation23 + $0x68] sm:$0xff] }
 0x970   : > { %2750 = vrcp.f32 %v1893_v59  ;;  %v2106_v59 = vld [vmem:[#allocation23 + $0x58] sm:$0xff] }
 0x975   : > { %v2749_v61 = vpop.eup %2748 }
 0x976   : > { %v1907_v62 = vmul.f32 %v2749_v61, %v2743_v50  ;;  %v2702_v63 = vpop.permute.xlu2 %2701  ;;  %v2751_v13 = vpop.eup %2750  ;;  %v2104_v61 = vld [vmem:[#allocation23 + $0x48] sm:$0xff] }
 0x977   : > { %v2703_v3 = vunpack.i.l.bf16 %v2702_v63  ;;  %v2697_v4 = vpop.permute.xlu0 %2696  ;;  %v2704_v6 = vunpack.i.h.bf16 %v2702_v63  ;;  %v1905_v10 = vmul.f32 %v2751_v13, %v2741_v47  ;;  %v2713_v47 = vld [vmem:[%s4037_s25] ss:$0 sm:$0xff]  ;;  %v2102_v63 = vld [vmem:[#allocation23 + $0x38] sm:$0xff]  ;;  %s2191_s25 = sshll.u32 %s1058_s21, 4  ;;  %s2192_s25 = int_to_ptr.vmem [resolvable:$true] %s2191_s25 }
 0x978   : > { %v2698_v5 = vunpack.i.l.bf16 %v2697_v4  ;;  %v1914_v7 = vmul.f32 %v2712_v1, %v1907_v62  ;;  %v2699_v11 = vunpack.i.h.bf16 %v2697_v4  ;;  %v2103_v62 = vld [vmem:[#allocation23 + $0x40] sm:$0xff]  ;;  %v2098_v4 = vld [vmem:[#allocation23 + $0x18] sm:$0xff]  ;;  %v2150_v13 = vld [vmem:[#allocation25 + $0x70] sm:$0xff] }
 0x979   : > { %2001 = vmatpush.msrb.mxu0 %v2703_v3  ;;  %v1912_v17 = vmul.f32 %v2712_v1, %v1905_v10  ;;  %v2099_v3 = vld [vmem:[#allocation23 + $0x20] sm:$0xff] }
 0x97a   : > { %1978 = vmatpush.msrb.mxu3 %v2698_v5  ;;  %v2097_v5 = vld [vmem:[#allocation23 + $0x10] sm:$0xff] }
 0x97b   : > { %2002 = vmatpush.msrb.mxu0 %v2704_v6  ;;  %v2096_v6 = vld [vmem:[#allocation23 + $0x8] sm:$0xff] }
 0x97c   : > { %1979 = vmatpush.msrb.mxu3 %v2699_v11  ;;  %2498 = vmatmul.msk.f32.vlgmr.msrb.gmra.mxu0 %vm1863_vm10, %v1914_v7  ;;  %v2095_v7 = vld [vmem:[#allocation23] sm:$0xff]  ;;  %v2151_v11 = vld [vmem:[#allocation25 + $0x78] sm:$0xff] }
 0x97d   : > { %2497 = vmatmul.msk.f32.vlgmr.msrb.gmra.mxu3 %vm1863_vm10, %v1913_v14  ;;  %v2149_v14 = vld [vmem:[#allocation25 + $0x68] sm:$0xff] }
 0x97e   : > { %v2692_v9 = vpop.permute.xlu1 %2691  ;;  %2156 = vmatpush.msra.mxu3 %v2151_v11 }
 0x97f   : > { %v2693_v15 = vunpack.i.l.bf16 %v2692_v9  ;;  %v2694_v16 = vunpack.i.h.bf16 %v2692_v9 }
 0x980   : > { %2157 = vmatpush.msra.mxu3 %v2150_v13 }
 0x981   : > { %1955 = vmatpush.msrb.mxu2 %v2693_v15  ;;  %v2148_v15 = vld [vmem:[#allocation25 + $0x60] sm:$0xff] }
 0x982   : > { %2158 = vmatpush.msra.mxu3 %v2149_v14 }
 0x983   : > { %1956 = vmatpush.msrb.mxu2 %v2694_v16 }
 0x984   : > { %2496 = vmatmul.msk.f32.vlgmr.msrb.gmra.mxu2 %vm1863_vm10, %v1912_v17  ;;  %v2147_v17 = vld [vmem:[#allocation25 + $0x58] sm:$0xff]  ;;  %2159 = vmatpush.msra.mxu3 %v2148_v15 }
 0x985   : > { %2115 = vmatpush.msra.mxu2 %v2110_v51 }
 0x986   : > { %2160 = vmatpush.msra.mxu3 %v2147_v17 }
 0x987   : > { %2116 = vmatpush.msra.mxu2 %v2109_v52 }
 0x989   : > { %2117 = vmatpush.msra.mxu2 %v2108_v0 }
 0x9a2   : > { %v1890_v18 = vpop.xlane.xlu0 %1889 }
 0x9a3   : > { %2752 = vrcp.f32 %v1890_v18  ;;  %v2146_v18 = vld [vmem:[#allocation25 + $0x50] sm:$0xff] }
 0x9a4   : > { %2161 = vmatpush.msra.mxu3 %v2146_v18 }
 0x9a9   : > { %v2753_v19 = vpop.eup %2752 }
 0x9aa   : > { %v1904_v20 = vmul.f32 %v2753_v19, %v2745_v56  ;;  %v2756_v56 = vld [vmem:[#allocation8] ss:$0 sm:$0xff]  ;;  %v2145_v19 = vld [vmem:[#allocation25 + $0x48] sm:$0xff] }
 0x9ab   : > { %2162 = vmatpush.msra.mxu3 %v2145_v19 }
 0x9ac   : > { %v1911_v21 = vmul.f32 %v2712_v1, %v1904_v20  ;;  %v2101_v1 = vld [vmem:[#allocation23 + $0x30] sm:$0xff]  ;;  %v2144_v20 = vld [vmem:[#allocation25 + $0x40] sm:$0xff] }
 0x9ad   : > { %2163 = vmatpush.msra.mxu3 %v2144_v20 }
 0x9ae   : > { %2495 = vmatmul.msk.f32.vlgmr.msra.gmra.mxu1 %vm1863_vm10, %v1911_v21 }
 0x9f9   : > { %v2004_v12 = vpop.f32.mrf.mxu0 }
 0xa00   : > { %v1981_v8 = vpop.f32.mrf.mxu3 }
 0xa01   : > { %2012 = vrot.lane.b32.xlu2 %v1981_v8, %s3322_s29  ;;  %v2143_v8 = vld [vmem:[#allocation25 + $0x38] sm:$0xff] }
 0xa02   : > { %2164 = vmatpush.msra.mxu3 %v2143_v8 }
 0xa07   : > { %v1958_v22 = vpop.f32.mrf.mxu2 }
 0xa08   : > { %2008 = vrot.lane.b32.xlu1 %v1958_v22, %s3321_s7  ;;  %s4038_s7 = sld [smem:[#allocation51_spill]] }
 0xa0e   : > { %v2714_v31 = vld [vmem:[%s4038_s7] ss:$0 sm:$0xff]  ;;  %s3223_s7 = scalar_lea.hbm %s3222_s11, 8 }
 0xa0f   : > { %p3224_p7 = scmp.ne.s32.totalorder %s3222_s11, %s3223_s7  ;;  %p3229_p12 = scmp.lt.s32.totalorder %s3227_s10, %s3223_s7 }
 0xa10   : > { %2016 = vrot.lane.b32.xlu1 %v2004_v12, %s3323_s1  ;;  %v2142_v12 = vld [vmem:[#allocation25 + $0x30] sm:$0xff] }
 0xa11   : > { %2165 = vmatpush.msra.mxu3 %v2142_v12  ;;  %p3225_p9 = pnand %p3224_p7, %p3555_p5  ;;  %p3230_p1 = por %p3229_p12, %p3228_p2 }
 0xa13   : > { %2166 = vmatpush.msra.mxu3 %v2141_v25  ;;  %p3226_p0 = pneg %p3225_p9 }
 0xa15   : > { %2167 = vmatpush.msra.mxu3 %v2140_v27  ;;  %p3231_p6 = pnand %p3230_p1, %p3226_p0 }
 0xa17   : > { %2168 = vmatpush.msra.mxu3 %v2139_v29 }
 0xa19   : > { %2169 = vmatpush.msra.mxu3 %v2138_v37 }
 0xa1b   : > { %2170 = vmatpush.msra.mxu3 %v2137_v38 }
 0xa1d   : > { %2171 = vmatpush.msra.mxu3 %v2136_v39 }
 0xa2b   : > { %v1935_v41 = vpop.f32.mrf.mxu1 }
 0xa5b   : > { %v2013_v43 = vpop.permute.xlu2 %2012 }
 0xa7a   : > { %v2009_v40 = vpop.permute.xlu1 %2008 }
 0xa7b   : > { %v2019_v42 = vsel %vm1243_vm3, %v1935_v41, %v2009_v40  ;;  %v2716_v40 = vld [vmem:[%s4040_s3] ss:$0 sm:$0xff] }
 0xa7c   : > { %v2020_v44 = vsel %vm1504_vm5, %v2019_v42, %v2013_v43 }
 0xa82   : > { %v2017_v45 = vpop.permute.xlu1 %2016 }
 0xa83   : > { %v2021_v46 = vsel %vm1506_vm6, %v2020_v44, %v2017_v45  ;;  %v2717_v44 = vld [vmem:[%s4041_s20] ss:$0 sm:$0xff] }
 0xa84   : > { %2054 = vmatmul.f32.vlgmr.msrb.gmra.mxu1 %v2021_v46 }
 0xb01   : > { %v2055_v24 = vpop.f32.mrf.mxu1 }
 0xb02   : > { %v2058_v48 = vadd.f32 %v2055_v24, %v3785_v49  ;;  %v2107_v49 = vld [vmem:[#allocation23 + $0x60] sm:$0xff] }
 0xb03   : > { %2118 = vmatpush.msra.mxu2 %v2107_v49 }
 0xb04   : > { %v3869_v50 = vadd.f32 %v2713_v47, %v2058_v48 }
 0xb05   : > { %2119 = vmatpush.msra.mxu2 %v2106_v59 }
 0xb06   : > { %2066 = vadd.xlane.f32.xlu2 %v3869_v50 }
 0xb07   : > { %2120 = vmatpush.msra.mxu2 %v2105_v60 }
 0xb09   : > { %2121 = vmatpush.msra.mxu2 %v2104_v61 }
 0xb0b   : > { %2122 = vmatpush.msra.mxu2 %v2103_v62 }
 0xb0d   : > { %2123 = vmatpush.msra.mxu2 %v2102_v63 }
 0xb0f   : > { %2124 = vmatpush.msra.mxu2 %v2101_v1 }
 0xb11   : > { %2125 = vmatpush.msra.mxu2 %v2100_v2 }
 0xb13   : > { %2126 = vmatpush.msra.mxu2 %v2099_v3 }
 0xb15   : > { %2127 = vmatpush.msra.mxu2 %v2098_v4 }
 0xb17   : > { %2128 = vmatpush.msra.mxu2 %v2097_v5 }
 0xb19   : > { %2129 = vmatpush.msra.mxu2 %v2096_v6 }
 0xb1b   : > { %2130 = vmatpush.msra.mxu2 %v2095_v7 }
 0xb79   : > { %v2067_v53 = vpop.xlane.xlu2 %2066 }
 0xb7a   : > { %v2068_v54 = vmul.f32 0.03125, %v2067_v53 }
 0xb7c   : > { %v3873_v55 = vsub.f32 %v3869_v50, %v2068_v54 }
 0xb7e   : > { %v2070_v57 = vmul.f32 %v2756_v56, %v3873_v55 }
 0xb80   : > { %v2071_v58 = vmul.f32 %v2070_v57, %v2070_v57 }
 0xb82   : > { %2072 = vadd.xlane.f32.xlu1 %v2071_v58 }
 0xbf5   : > { %v2073_v10 = vpop.xlane.xlu1 %2072 }
 0xbf6   : > { %v2074_v9 = vmul.f32 0.03125, %v2073_v10 }
 0xbf8   : > { %v2075_v16 = vadd.f32 1e-12, %v2074_v9 }
 0xbfa   : > { %2754 = vrsqrt.f32 %v2075_v16  ;;  %vm2082_vm12 = vweird.f32 %v2075_v16 }
 0xc00   : > { %v2755_v21 = vpop.eup %2754 }
 0xc01   : > { %v2077_v22 = vmul.f32 %v2755_v21, %v2075_v16  ;;  %vm2083_vm11 = vweird.f32 %v2755_v21 }
 0xc02   : > { %vm2084_vm13 = vmor %vm2082_vm12, %vm2083_vm11 }
 0xc03   : > { %v2078_v23 = vmul.f32 %v2755_v21, %v2077_v22 }
 0xc05   : > { %v2079_v26 = vmul.f32 0.5, %v2078_v23 }
 0xc07   : > { %v2080_v28 = vsub.f32 1.5, %v2079_v26 }
 0xc09   : > { %v2081_v30 = vmul.f32 %v2755_v21, %v2080_v28 }
 0xc0b   : > { %v2085_v32 = vsel %vm2084_vm13, %v2755_v21, %v2081_v30 }
 0xc0c   : > { %v2086_v33 = vmul.f32 %v2085_v32, %v3873_v55 }
 0xc0e   : > { %v2090_v35 = vmul.f32 %v2714_v31, %v2086_v33 }
 0xc10   : > { %v2094_v36 = vadd.f32 %v2715_v34, %v2090_v35 }
 0xc12   : > { %2131 = vmatmul.f32.vlgmr.msra.gmra.mxu2 %v2094_v36 }
 0xc95   : > { %v2132_v41 = vpop.f32.mrf.mxu2 }
 0xc96   : > { %v2133_v42 = vadd.f32 %v2716_v40, %v2132_v41 }
 0xc98   : > { %v2135_v43 = vmax.f32 %v2133_v42, 0.0 }
 0xc9a   : > { %2172 = vmatmul.f32.vlgmr.msra.gmra.mxu3 %v2135_v43 }
 0xd1d   : > { %v2173_v45 = vpop.f32.mrf.mxu3 }
 0xd1e   : > { %v2174_v46 = vadd.f32 %v2717_v44, %v2173_v45 }
 0xd20   : > { %v2176_v47 = vadd.f32 %v2174_v46, %v3869_v50 }
 0xd22   : > { %2177 = vst [vmem:[%s1058_s21] sm:$0xff] %v2176_v47 }
 0xd23   : > { %3234 = shalt.err (!%p3231_p6)
}
 0xd24   : > { %2558 = dma.vmem_to_hbm [thread:$0]  (%p3555_p5), %s2192_s25, 128, %s2194_s28, %s2179_s8  }
 0xd25 PF: > { %s4044_s9 = sld [smem:[#allocation36_spill]]  ;;  %p4046_p8 = scmp.ge.s32.totalorder %s3301_s30, 2 }
 0xd27   : > { %p2608_p10 = pnand %p4046_p8, %p3559_p4 }
 0xd29   : > { %p2609_p11 = pneg %p2608_p10 }
 0xd2b   : > { %s2205_s3 = sand.u32 1, %s4044_s9  }
 0xd2c   : > { %s2206_s22 = scalar_lea.sflag [#allocation4], %s2205_s3 }
 0xd2d   : > { %3284 = dma.done.wait (%p2609_p11), %s2206_s22, 128  }
 0xd2e   : > { %3286 = vsyncadd (%p2609_p11), %s2206_s22, 4294967168  ;;  %s4047_s30 = sld [smem:[#allocation38_spill]]  ;;  %s4050_s29 = smov %s3293_s2 }
 0xd2f   : > { %s4048_s15 = sld [smem:[#allocation37_spill]] }
 0xd30   : > { %s4049_s6 = sld [smem:[#allocation39_spill]] }
 0xd34   : > { %p47_p13 = scmp.ge.s32.totalorder %s4047_s30, 4  }
 0xd35   : > { %s4051_s2 = smov %s4048_s15 }
 0xd36   :  { %49 = sbr.rel (!%p47_p13) target bundleno = 36 (0x24), region = 240 }
 0xd3b   :  { %2212 = vsyncpa [#allocation3], 1 }
 0xd3c   :  { %2214 = vsyncpa [#allocation3 + $0x1], 1 }
 0xd3d   :  { %2215 = vsyncpa [#allocation6], 1 }
 0xd3e   :  { %2217 = vsyncpa [#allocation6 + $0x1], 1 }
 0xd3f   :  { %2218 = vsyncpa [#allocation9], 1 }
 0xd40   :  { %2219 = vsyncpa [#allocation12], 1 }
 0xd41   :  { %2220 = vsyncpa [#allocation15], 1 }
 0xd42   :  { %2221 = vsyncpa [#allocation18], 1 }
 0xd43   :  { %2222 = vsyncpa [#allocation21], 1 }
 0xd44   :  { %2223 = vsyncpa [#allocation24], 1 }
 0xd45   :  { %2224 = vsyncpa [#allocation4], 1 }
 0xd46   :  { %2226 = vsyncpa [#allocation4 + $0x1], 1 }

// kernel: tpu_custom_call.1
= control target key start
LH: loop header
LB: loop body
LE: loop exit
PB: predicated region body
PF: predicated region fallthrough
CT: control target
= control target key end

     0   :  { %s3924_s0 = inlined_call_operand.hbm [shape: f32[16,128], index: 0, kind: input, shape index: {}]   ;;  %s3925_s1 = inlined_call_operand.hbm [shape: f32[2,8,8], index: 1, kind: input, shape index: {}]   ;;  %s3926_s2 = inlined_call_operand.hbm [shape: f32[32,128], index: 2, kind: input, shape index: {}]   ;;  %s3927_s3 = inlined_call_operand.vmem [shape: f32[2,1,16], index: 3, kind: input, shape index: {}]   ;;  %s3928_s4 = inlined_call_operand.hbm [shape: f32[1,128], index: 4, kind: input, shape index: {}]   ;;  %s3929_s5 = inlined_call_operand.hbm [shape: f32[1,128], index: 5, kind: input, shape index: {}]   ;;  %s3930_s6 = inlined_call_operand.hbm [shape: f32[1,128], index: 6, kind: input, shape index: {}]   ;;  %s3931_s7 = inlined_call_operand.hbm [shape: f32[1,128], index: 7, kind: input, shape index: {}]   ;;  %s3932_s8 = inlined_call_operand.hbm [shape: f32[1,128], index: 8, kind: input, shape index: {}]   ;;  %s3933_s9 = inlined_call_operand.vmem [shape: f32[1,128], index: 9, kind: input, shape index: {}]   ;;  %s3934_s10 = inlined_call_operand.vmem [shape: f32[1,128], index: 10, kind: input, shape index: {}]   ;;  %s3935_s11 = inlined_call_operand.hbm [shape: f32[128,384], index: 11, kind: input, shape index: {}]   ;;  %s3936_s12 = inlined_call_operand.vmem [shape: f32[1,384], index: 12, kind: input, shape index: {}]   ;;  %s3937_s13 = inlined_call_operand.hbm [shape: f32[128,128], index: 13, kind: input, shape index: {}]   ;;  %s3938_s14 = inlined_call_operand.vmem [shape: f32[1,128], index: 14, kind: input, shape index: {}]   ;;  %s3939_s15 = inlined_call_operand.hbm [shape: f32[128,128], index: 15, kind: input, shape index: {}]   ;;  %s3940_s16 = inlined_call_operand.vmem [shape: f32[1,128], index: 16, kind: input, shape index: {}]   ;;  %s3941_s17 = inlined_call_operand.hbm [shape: f32[128,256], index: 17, kind: input, shape index: {}]   ;;  %s3942_s18 = inlined_call_operand.vmem [shape: f32[1,256], index: 18, kind: input, shape index: {}]   ;;  %s3943_s19 = inlined_call_operand.hbm [shape: f32[128,128], index: 19, kind: input, shape index: {}]   ;;  %s3944_s20 = inlined_call_operand.vmem [shape: f32[1,128], index: 20, kind: input, shape index: {}]   ;;  %s3945_s21 = inlined_call_operand.hbm [shape: f32[128,128], index: 21, kind: input, shape index: {}]   ;;  %s3946_s22 = inlined_call_operand.vmem [shape: f32[1,128], index: 22, kind: input, shape index: {}]   ;;  %s3947_s23 = inlined_call_operand.hbm [shape: f32[128,128], index: 23, kind: input, shape index: {}]   ;;  %s3948_s24 = inlined_call_operand.vmem [shape: f32[1,128], index: 24, kind: input, shape index: {}]   ;;  %s3949_s25 = inlined_call_operand.hbm [shape: f32[16,128], index: 25, kind: output, shape index: {}]  }
   0x1   :  { %3969 = sst [smem:[#allocation42_spill]] %s3924_s0 }
   0x2   :  { %3970 = sst [smem:[#allocation43_spill]] %s3925_s1 }
   0x3   :  { %3971 = sst [smem:[#allocation44_spill]] %s3926_s2 }
   0x4   :  { %3972 = sst [smem:[#allocation45_spill]] %s3927_s3 }
   0x5   :  { %3973 = sst [smem:[#allocation46_spill]] %s3928_s4 }
   0x6   :  { %3974 = sst [smem:[#allocation47_spill]] %s3929_s5 }
   0x7   :  { %3975 = sst [smem:[#allocation48_spill]] %s3930_s6 }
   0x8   :  { %3976 = sst [smem:[#allocation49_spill]] %s3931_s7 }
   0x9   :  { %3977 = sst [smem:[#allocation50_spill]] %s3932_s8 }
   0xa   :  { %3978 = sst [smem:[#allocation51_spill]] %s3933_s9 }
   0xb   :  { %3979 = sst [smem:[#allocation52_spill]] %s3934_s10 }
   0xc   :  { %3980 = sst [smem:[#allocation53_spill]] %s3935_s11 }
   0xd   :  { %3981 = sst [smem:[#allocation54_spill]] %s3937_s13 }
   0xe   :  { %3982 = sst [smem:[#allocation55_spill]] %s3939_s15 }
   0xf   :  { %3983 = sst [smem:[#allocation56_spill]] %s3940_s16 }
  0x10   :  { %3984 = sst [smem:[#allocation57_spill]] %s3941_s17 }
  0x11   :  { %3985 = sst [smem:[#allocation58_spill]] %s3943_s19 }
  0x12   :  { %3986 = sst [smem:[#allocation59_spill]] %s3944_s20 }
  0x13   :  { %3987 = sst [smem:[#allocation60_spill]] %s3945_s21 }
  0x14   :  { %3988 = sst [smem:[#allocation61_spill]] %s3946_s22 }
  0x15   :  { %3989 = sst [smem:[#allocation62_spill]] %s3948_s24 }
  0x16   :  { %3990 = sst [smem:[#allocation63_spill]] %s3949_s25 }
  0x17   :  { %30 = vsyncpa [#allocation3], 0 }
  0x18   :  { %32 = vsyncpa [#allocation3 + $0x1], 0 }
  0x19   :  { %33 = vsyncpa [#allocation6], 0 }
  0x1a   :  { %35 = vsyncpa [#allocation6 + $0x1], 0 }
  0x1b   :  { %36 = vsyncpa [#allocation9], 0 }
  0x1c   :  { %37 = vsyncpa [#allocation12], 0 }
  0x1d   :  { %38 = vsyncpa [#allocation15], 0 }
  0x1e   :  { %39 = vsyncpa [#allocation18], 0 }
  0x1f   :  { %40 = vsyncpa [#allocation21], 0 }
  0x20   :  { %41 = vsyncpa [#allocation24], 0 }
  0x21   :  { %42 = vsyncpa [#allocation4], 0 }
  0x22   :  { %44 = vsyncpa [#allocation4 + $0x1], 0  ;;  %s3454_s29 = smov 0   ;;  %s3456_s2 = smov 0  }
  0x23   :  { %s3458_s6 = smov 0   ;;  %s3460_s30 = smov 0  }
  0x24 LB: > { %3991 = sst [smem:[#allocation36_spill]] %s3289_s29  ;;  %s3478_s8 = sadd.s32 4294967295, %s3301_s30   ;;  %s3301_s30 = sphi %s3460_s30, %s4047_s30   ;;  %s3297_s6 = sphi %s3458_s6, %s4049_s6   ;;  %s3293_s2 = sphi %s3456_s2, %s4051_s2   ;;  %s3289_s29 = sphi %s3454_s29, %s4050_s29  }
  0x25   : > { %3992 = sst [smem:[#allocation37_spill]] %s3297_s6  ;;  %p2431_p0 = scmp.ge.s32.totalorder %s3301_s30, 1 }
  0x26   : > { %s3993_s26 = sld [smem:[#allocation46_spill]]  ;;  %p3962_p1 = scmp.eq.s32.totalorder %s3478_s8, 0 }
  0x27   : > { %p626_p2 = scmp.lt.s32.totalorder %s3301_s30, 3  ;;  %s3303_s4 = smov [#allocation8]  }
  0x28   : > { %s640_s28 = sshll.u32 %s3303_s4, 4  ;;  %s3995_s0 = sld [smem:[#allocation48_spill]]  ;;  %s641_s28 = int_to_ptr.vmem [resolvable:$true] %s640_s28 }
  0x29   : > { %p3483_p3 = pnand %p2431_p0, %p626_p2  ;;  %s3997_s22 = sld [smem:[#allocation50_spill]] }
  0x2a   : > { %s3998_s13 = sld [smem:[#allocation54_spill]]  ;;  %s3305_s20 = smov [#allocation14]  }
  0x2b   : > { %p2560_p5 = pneg %p3483_p3  ;;  %s688_s16 = sshll.u32 %s3305_s20, 4  ;;  %s689_s16 = int_to_ptr.vmem [resolvable:$true] %s688_s16 }
  0x2c   : > { %s638_s1 = sshll.u32 %s3993_s26, 4  ;;  %s3304_s26 = smov [#allocation11]   ;;  %s639_s1 = int_to_ptr.hbm [resolvable:$true] %s638_s1 }
  0x2d   : > { %p3495_p6 = pnand %p2560_p5, %p3962_p1  ;;  %s664_s25 = sshll.u32 %s3304_s26, 4  ;;  %s665_s25 = int_to_ptr.vmem [resolvable:$true] %s664_s25 }
  0x2e   : > { %s662_s7 = sshll.u32 %s3995_s0, 4  ;;  %s3306_s26 = smov [#allocation17]   ;;  %s663_s7 = int_to_ptr.hbm [resolvable:$true] %s662_s7 }
  0x2f   : > { %s686_s10 = sshll.u32 %s3997_s22, 4  ;;  %s722_s24 = sshll.u32 %s3306_s26, 4  ;;  %s687_s10 = int_to_ptr.hbm [resolvable:$true] %s686_s10  ;;  %s723_s24 = int_to_ptr.vmem [resolvable:$true] %s722_s24 }
  0x30   : > { %2563 = dma.hbm_to_vmem [thread:$0]  (!%p3495_p6), %s639_s1, 16, %s641_s28, [#allocation9]  }
  0x31   : > { %2569 = dma.hbm_to_vmem [thread:$0]  (!%p3495_p6), %s663_s7, 16, %s665_s25, [#allocation12]  }
  0x32   : > { %s720_s0 = sshll.u32 %s3998_s13, 4  ;;  %s3954_s22 = smov 128   ;;  %s721_s0 = int_to_ptr.hbm [resolvable:$true] %s720_s0 }
  0x33   : > { %2575 = dma.hbm_to_vmem [thread:$0]  (!%p3495_p6), %s687_s10, 16, %s689_s16, [#allocation15]  }
  0x34   : > { %s3956_s4 = smov 8   ;;  %s3999_s17 = sld [smem:[#allocation57_spill]] }
  0x35   : > { %2581 = dma.hbm_to_vmem [thread:$0]  (!%p3495_p6), %s721_s0, 2048, %s723_s24, [#allocation18], %s3954_s22, %s3954_s22, %s3956_s4  }
  0x36   : > { %s3309_s10 = smov [#allocation20]   ;;  %s4000_s21 = sld [smem:[#allocation60_spill]] }
  0x37   : > { %s756_s16 = sshll.u32 %s3309_s10, 4  ;;  %s3310_s5 = smov 256   ;;  %s757_s16 = int_to_ptr.vmem [resolvable:$true] %s756_s16 }
  0x38   : > { %s3311_s0 = smov 16   ;;  %s3312_s26 = smov [#allocation23]  }
  0x39   : > { %s790_s24 = sshll.u32 %s3312_s26, 4  ;;  %s2430_s25 = sadd.s32 4294967294, %s3301_s30   ;;  %s791_s24 = int_to_ptr.vmem [resolvable:$true] %s790_s24 }
  0x3a   : > { %s754_s20 = sshll.u32 %s3999_s17, 4  ;;  %s3531_s1 = sadd.s32 1, %s3301_s30   ;;  %s755_s20 = int_to_ptr.hbm [resolvable:$true] %s754_s20 }
  0x3b   : > { %2587 = dma.hbm_to_vmem [thread:$0]  (!%p3495_p6), %s755_s20, 4096, %s757_s16, [#allocation21], %s3310_s5, %s3310_s5, %s3311_s0  }
  0x3c   : > { %s788_s9 = sshll.u32 %s4000_s21, 4  ;;  %4001 = sst [smem:[#allocation38_spill]] %s3531_s1  ;;  %s789_s9 = int_to_ptr.hbm [resolvable:$true] %s788_s9 }
  0x3d   : > { %2593 = dma.hbm_to_vmem [thread:$0]  (!%p3495_p6), %s789_s9, 2048, %s791_s24, [#allocation24], %s3954_s22, %s3954_s22, %s3956_s4  }
  0x3e   : > { %s54_s10 = ssub.s32 %s3301_s30, %s3531_s1  ;;  %s57_s20 = sadd.s32 1, %s3297_s6 }
  0x3f   : > { %p55_p7 = scmp.eq.s32.totalorder %s54_s10, 0  ;;  %p64_p8 = scmp.ne.s32.totalorder %s3297_s6, %s3293_s2 }
  0x40   : > { %p65_p9 = scmp.eq.s32.totalorder %s3301_s30, 0  ;;  %p70_p10 = scmp.ne.s32.totalorder %s3293_s2, %s3289_s29 }
  0x41   : > { %s3542_s16 = scalar_select %p55_p7, %s3297_s6, %s57_s20  }
  0x42   : > { %p66_p11 = por %p65_p9, %p64_p8  ;;  %p3546_p12 = por %p3962_p1, %p70_p10 }
  0x43   : > { %4002 = sst [smem:[#allocation39_spill]] %s3542_s16  ;;  %p613_p13 = scmp.eq.s32.totalorder %s3478_s8, 1 }
  0x44   : > { %p619_p0 = scmp.eq.s32.totalorder %s2430_s25, 1  ;;  %p2623_p2 = scmp.lt.s32.totalorder %s3301_s30, 2 }
  0x45   : > { %s3553_s7 = sand.u32 1, %s3297_s6   ;;  %p3555_p5 = por %p613_p13, %p64_p8 }
  0x46   : > { %p3559_p4 = por %p619_p0, %p70_p10  ;;  %s3961_s0 = sshll.u32 %s3553_s7, 3 }
  0x47   : > { %s4004_s9 = scalar_select %p3555_p5, 1, 0 }
  0x48   : > { %s4006_s5 = scalar_select %p3559_p4, 1, 0 }
  0x49   : > { %4005 = sst [smem:[#allocation40_spill]] %s4004_s9  ;;  %s3963_s26 = sshll.u32 %s3301_s30, 3 }
  0x4a   : > { %4007 = sst [smem:[#allocation41_spill]] %s4006_s5  ;;  %p3565_p7 = pnand %p2623_p2, %p66_p11 }
  0x4b   : > { %s843_s25 = sand.u32 1, %s3301_s30   ;;  %s4009_s22 = sld [smem:[#allocation43_spill]] }
  0x4c   : > { %s847_s17 = scalar_lea.vmem [#allocation5], %s3961_s0  ;;  %s3577_s16 = scalar_lea.sflag [#allocation6], %s843_s25 }
  0x4d   : > { %s855_s21 = sshll.u32 %s847_s17, 4  ;;  %p2941_p9 = pneg %p3565_p7  ;;  %s856_s21 = int_to_ptr.vmem [resolvable:$true] %s855_s21 }
  0x51   : > { %s851_s4 = scalar_lea.hbm %s4009_s22, %s3963_s26 }
  0x52   : > { %s853_s13 = sshll.u32 %s851_s4, 4  ;;  %s2944_s4 = scalar_lea.hbm %s4009_s22, 16  ;;  %s854_s13 = int_to_ptr.hbm [resolvable:$true] %s853_s13 }
  0x53   : > { %s2937_s6 = sshra.s32 %s854_s13, 4  ;;  %s2938_s6 = int_to_ptr.hbm [resolvable:$true] %s2937_s6 }
  0x54   : > { %s2939_s1 = scalar_lea.hbm %s2938_s6, 8  ;;  %p2945_p13 = scmp.lt.s32.totalorder %s2938_s6, %s4009_s22 }
  0x55   : > { %p2940_p8 = scmp.ne.s32.totalorder %s2938_s6, %s2939_s1  ;;  %p2946_p0 = scmp.lt.s32.totalorder %s2944_s4, %s2939_s1 }
  0x57   : > { %p2942_p10 = pnand %p2941_p9, %p2940_p8  ;;  %p2947_p2 = por %p2946_p0, %p2945_p13 }
  0x59   : > { %p2943_p11 = pneg %p2942_p10 }
  0x5b   : > { %p2948_p1 = pnand %p2947_p2, %p2943_p11 }
  0x5d   : > { %2951 = shalt.err (!%p2948_p1)
}
  0x5e   : > { %2603 = dma.hbm_to_vmem [thread:$0]  (!%p3565_p7), %s854_s13, 128, %s856_s21, %s3577_s16  }
  0x5f   : > { %s2449_s25 = sshll.u32 %s3553_s7, 4  ;;  %s4010_s29 = sld [smem:[#allocation47_spill]] }
  0x60   : > { %s3597_s20 = scalar_lea.vmem [#allocation7], %s2449_s25  ;;  %s3313_s1 = smov [#allocation10]  }
  0x61   : > { %s652_s0 = sshll.u32 %s3313_s1, 4  ;;  %s4011_s22 = sld [smem:[#allocation49_spill]]  ;;  %s653_s0 = int_to_ptr.vmem [resolvable:$true] %s652_s0 }
  0x62   : > { %s3314_s13 = smov [#allocation13]   ;;  %s4012_s11 = sld [smem:[#allocation53_spill]] }
  0x63   : > { %s676_s21 = sshll.u32 %s3314_s13, 4  ;;  %s3315_s25 = smov [#allocation16]   ;;  %s677_s21 = int_to_ptr.vmem [resolvable:$true] %s676_s21 }
  0x64   : > { %s705_s1 = sshll.u32 %s3315_s25, 4  ;;  %s4013_s15 = sld [smem:[#allocation55_spill]]  ;;  %s706_s1 = int_to_ptr.vmem [resolvable:$true] %s705_s1 }
  0x65   : > { %s650_s10 = sshll.u32 %s4010_s29, 4  ;;  %s3318_s13 = smov [#allocation19]   ;;  %s651_s10 = int_to_ptr.hbm [resolvable:$true] %s650_s10 }
  0x66   : > { %2566 = dma.hbm_to_vmem [thread:$0]  (!%p3495_p6), %s651_s10, 16, %s653_s0, [#allocation9]  }
  0x67   : > { %s674_s9 = sshll.u32 %s4011_s22, 4  ;;  %s3316_s10 = smov 384   ;;  %s675_s9 = int_to_ptr.hbm [resolvable:$true] %s674_s9 }
  0x68   : > { %s703_s26 = sshll.u32 %s4012_s11, 4  ;;  %s3317_s0 = smov 24   ;;  %s704_s26 = int_to_ptr.hbm [resolvable:$true] %s703_s26 }
  0x69   : > { %2572 = dma.hbm_to_vmem [thread:$0]  (!%p3495_p6), %s675_s9, 16, %s677_s21, [#allocation12]  }
  0x6a   : > { %s737_s22 = sshll.u32 %s4013_s15, 4  ;;  %s739_s5 = sshll.u32 %s3318_s13, 4  ;;  %s738_s22 = int_to_ptr.hbm [resolvable:$true] %s737_s22  ;;  %s740_s5 = int_to_ptr.vmem [resolvable:$true] %s739_s5 }
  0x6b   : > { %2578 = dma.hbm_to_vmem [thread:$0]  (!%p3495_p6), %s704_s26, 6144, %s706_s1, [#allocation15], %s3316_s10, %s3316_s10, %s3317_s0  }
  0x6c   : > { %s4014_s19 = sld [smem:[#allocation58_spill]]  ;;  %s4015_s21 = smov 8  }
  0x6d   : > { %s4016_s25 = smov 128   ;;  %s805_s26 = sshll.u32 %s3947_s23, 4  ;;  %s806_s26 = int_to_ptr.hbm [resolvable:$true] %s805_s26 }
  0x6e   : > { %2584 = dma.hbm_to_vmem [thread:$0]  (!%p3495_p6), %s738_s22, 2048, %s740_s5, [#allocation18], %s4016_s25, %s4016_s25, %s4015_s21  }
  0x6f   : > { %s3319_s1 = smov [#allocation22]   ;;  %s3320_s6 = smov [#allocation25]  }
  0x70   : > { %s773_s10 = sshll.u32 %s3319_s1, 4  ;;  %s807_s0 = sshll.u32 %s3320_s6, 4  ;;  %s774_s10 = int_to_ptr.vmem [resolvable:$true] %s773_s10  ;;  %s808_s0 = int_to_ptr.vmem [resolvable:$true] %s807_s0 }
  0x71   : > { %2596 = dma.hbm_to_vmem [thread:$0]  (!%p3495_p6), %s806_s26, 2048, %s808_s0, [#allocation24], %s4016_s25, %s4016_s25, %s4015_s21  }
  0x72   : > { %s771_s9 = sshll.u32 %s4014_s19, 4  ;;  %s4017_s22 = sshll.u32 %s3301_s30, 3  ;;  %s772_s9 = int_to_ptr.hbm [resolvable:$true] %s771_s9 }
  0x73   : > { %2590 = dma.hbm_to_vmem [thread:$0]  (!%p3495_p6), %s772_s9, 2048, %s774_s10, [#allocation21], %s4016_s25, %s4016_s25, %s4015_s21  }
  0x74   : > { %s4018_s29 = sld [smem:[#allocation42_spill]]  ;;  %s4020_s1 = sshll.u32 %s3553_s7, 3 }
  0x75   : > { %s828_s11 = scalar_lea.vmem [#allocation2], %s4020_s1  ;;  %s2503_s9 = sshll.u32 %s3301_s30, 4 }
  0x76   : > { %s836_s15 = sshll.u32 %s828_s11, 4  ;;  %s825_s10 = scalar_lea.sflag [#allocation3], %s3553_s7  ;;  %s837_s15 = int_to_ptr.vmem [resolvable:$true] %s836_s15 }
  0x7a   : > { %s4019_s4 = smov %s4018_s29  ;;  %s832_s17 = scalar_lea.hbm %s4018_s29, %s4017_s22 }
  0x7b   : > { %s834_s19 = sshll.u32 %s832_s17, 4  ;;  %s3154_s22 = scalar_lea.hbm %s4019_s4, 16  ;;  %s835_s19 = int_to_ptr.hbm [resolvable:$true] %s834_s19 }
  0x7c   : > { %s3147_s6 = sshra.s32 %s835_s19, 4  ;;  %s3148_s6 = int_to_ptr.hbm [resolvable:$true] %s3147_s6 }
  0x7d   : > { %s3149_s3 = scalar_lea.hbm %s3148_s6, 8  ;;  %p3155_p10 = scmp.lt.s32.totalorder %s3148_s6, %s4019_s4 }
  0x7e   : > { %p3150_p1 = scmp.ne.s32.totalorder %s3148_s6, %s3149_s3  ;;  %p3156_p11 = scmp.lt.s32.totalorder %s3154_s22, %s3149_s3 }
  0x80   : > { %p3152_p6 = pnand %p3150_p1, %p2941_p9  ;;  %p3157_p13 = por %p3156_p11, %p3155_p10 }
  0x82   : > { %p3153_p8 = pneg %p3152_p6 }
  0x84   : > { %p3158_p0 = pnand %p3157_p13, %p3153_p8 }
  0x86   : > { %3161 = shalt.err (!%p3158_p0)
}
  0x87   : > { %2600 = dma.hbm_to_vmem [thread:$0]  (!%p3565_p7), %s835_s19, 128, %s837_s15, %s825_s10  }
  0x88   : > { %s4021_s11 = sshll.u32 %s3597_s20, 4  ;;  %s4022_s17 = sld [smem:[#allocation44_spill]]  ;;  %s875_s11 = int_to_ptr.vmem [resolvable:$true] %s4021_s11 }
  0x8e   : > { %s871_s1 = scalar_lea.hbm %s4022_s17, %s2503_s9  ;;  %s3184_s15 = scalar_lea.hbm %s4022_s17, 32 }
  0x8f   : > { %s872_s26 = sshll.u32 %s871_s1, 4  ;;  %s873_s26 = int_to_ptr.hbm [resolvable:$true] %s872_s26 }
  0x90   : > { %s3177_s0 = sshra.s32 %s873_s26, 4  ;;  %s3178_s0 = int_to_ptr.hbm [resolvable:$true] %s3177_s0 }
  0x91   : > { %s3179_s6 = scalar_lea.hbm %s3178_s0, 16  ;;  %p3185_p8 = scmp.lt.s32.totalorder %s3178_s0, %s4022_s17 }
  0x92   : > { %p3180_p2 = scmp.ne.s32.totalorder %s3178_s0, %s3179_s6  ;;  %p3186_p10 = scmp.lt.s32.totalorder %s3184_s15, %s3179_s6 }
  0x94   : > { %p3182_p1 = pnand %p3180_p2, %p2941_p9  ;;  %p3187_p11 = por %p3186_p10, %p3185_p8 }
  0x96   : > { %p3183_p6 = pneg %p3182_p1 }
  0x98   : > { %p3188_p13 = pnand %p3187_p11, %p3183_p6 }
  0x9a   : > { %3191 = shalt.err (!%p3188_p13)
}
  0x9b   : > { %2606 = dma.hbm_to_vmem [thread:$0]  (!%p3565_p7), %s873_s26, 256, %s875_s11, %s3577_s16, %s4016_s25, %s4016_s25, %s4015_s21  }
  0x9c   : > { %892 = sbr.rel (%p3483_p3) target bundleno = 3365 (0xd25), region = 120  ;;  %s3679_s9 = sand.u32 (!%p3483_p3), 1, %s3293_s2  }
  0x9d   : > { %s3682_s10 = sshll.u32 (!%p3483_p3), %s3679_s9, 3  ;;  %s895_s13 = scalar_lea.sflag (!%p3483_p3), [#allocation3], %s3679_s9 }
  0x9e   : > { %s898_s5 = scalar_lea.vmem (!%p3483_p3), [#allocation2], %s3682_s10 }
  0xa1   : > { %3252 = dma.done.wait (%p3546_p12), %s895_s13, 128  }
  0xa2   : > { %3254 = vsyncadd (%p3546_p12), %s895_s13, 4294967168  ;;  %s904_s27 = sand.u32 1, %s3478_s8   ;;  %s908_s24 = scalar_lea.vmem [#allocation5], %s3682_s10 }
  0xa3   : > { %s905_s16 = scalar_lea.sflag [#allocation6], %s904_s27 }
  0xa4   : > { %3256 = dma.done.wait (%p3546_p12), %s905_s16, 384  }
  0xa5   : > { %3258 = vsyncadd (%p3546_p12), %s905_s16, 4294966912  ;;  %s2455_s21 = sshll.u32 %s3679_s9, 4  ;;  %p4023_p3 = scmp.eq.s32.totalorder %s3478_s8, 0 }
  0xa6   : > { %s3697_s25 = scalar_lea.vmem [#allocation7], %s2455_s21 }
  0xa7   : > { %3260 = dma.done.wait (%p4023_p3), [#allocation9], 32   ;;  %p4024_p7 = pmov %p4023_p3 }
  0xa8   : > { %p4025_p9 = pmov %p4023_p3 }
  0xa9   : > { %3262 = vsyncadd (%p4024_p7), [#allocation9], 4294967264 }
  0xaa   : > { %3264 = dma.done.wait (%p4025_p9), [#allocation12], 32   ;;  %p4026_p0 = pmov %p4023_p3 }
  0xac   : > { %3266 = vsyncadd (%p4026_p0), [#allocation12], 4294967264  ;;  %p4027_p2 = pmov %p4026_p0 }
  0xad   : > { %p4028_p12 = pmov %p4026_p0 }
  0xae   : > { %3268 = dma.done.wait (%p4027_p2), [#allocation15], 6160  }
  0xaf   : > { %3270 = vsyncadd (%p4028_p12), [#allocation15], 4294961136  ;;  %p4029_p1 = pmov %p4026_p0 }
  0xb0   : > { %p4030_p6 = pmov %p4026_p0 }
  0xb1   : > { %3272 = dma.done.wait (%p4029_p1), [#allocation18], 4096  }
  0xb2   : > { %3274 = vsyncadd (%p4030_p6), [#allocation18], 4294963200  ;;  %p4031_p8 = pmov %p4026_p0 }
  0xb3   : > { %p4032_p10 = pmov %p4026_p0 }
  0xb4   : > { %3276 = dma.done.wait (%p4031_p8), [#allocation21], 6144  }
  0xb5   : > { %3278 = vsyncadd (%p4032_p10), [#allocation21], 4294961152  ;;  %p4033_p11 = pmov %p4026_p0 }
  0xb6   : > { %p4034_p13 = pmov %p4026_p0 }
  0xb7   : > { %3280 = dma.done.wait (%p4033_p11), [#allocation24], 4096  }
  0xb8   : > { %3282 = vsyncadd (%p4034_p13), [#allocation24], 4294963200  ;;  %v3723_v0 = vld [vmem:[%s898_s5] sm:$0xff]  ;;  %v1148_v1 = vld [vmem:[#allocation16 + $0x168] sm:$0xff]  ;;  %vm1243_vm3 = vcmask 261120   ;;  %s3321_s7 = smov 32  }
  0xb9   : > { %1071 = vadd.xlane.f32.xlu0 %v3723_v0  ;;  %v1149_v2 = vld [vmem:[#allocation16 + $0x170] sm:$0xff]  ;;  %v1150_v3 = vld [vmem:[#allocation16 + $0x178] sm:$0xff]  ;;  %1159 = vmatpush.msra.mxu0 %v1148_v1  ;;  %v1147_v6 = vld [vmem:[#allocation16 + $0x160] sm:$0xff]  ;;  %s3322_s29 = smov 64   ;;  %s3323_s1 = smov 96   ;;  %vm1350_vm4 = vcmask 64512  }
  0xba   : > { %1179 = vmatpush.msra.mxu1 %v1149_v2  ;;  %v1145_v4 = vld [vmem:[#allocation16 + $0x150] sm:$0xff]  ;;  %v1146_v5 = vld [vmem:[#allocation16 + $0x158] sm:$0xff]  ;;  %1199 = vmatpush.msra.mxu2 %v1150_v3  ;;  %v1143_v14 = vld [vmem:[#allocation16 + $0x140] sm:$0xff]  ;;  %vm1504_vm5 = vcmask 523264   ;;  %vm1506_vm6 = vcmask 785408   ;;  %s4035_s19 = sld [smem:[#allocation56_spill]] }
  0xbb   : > { %1160 = vmatpush.msra.mxu0 %v1145_v4  ;;  %v3726_v9 = vld [vmem:[#allocation8] ss:$0 sm:$0xff]  ;;  %v1142_v13 = vld [vmem:[#allocation16 + $0x138] sm:$0xff]  ;;  %v1144_v15 = vld [vmem:[#allocation16 + $0x148] sm:$0xff]  ;;  %p1060_p3 = scmp.lt.s32.totalorder %s3478_s8, 1  ;;  %s4036_s27 = sld [smem:[#allocation45_spill]] }
  0xbc   : > { %1180 = vmatpush.msra.mxu1 %v1146_v5  ;;  %1200 = vmatpush.msra.mxu2 %v1147_v6  ;;  %v1139_v16 = vld [vmem:[#allocation16 + $0x120] sm:$0xff]  ;;  %v1140_v17 = vld [vmem:[#allocation16 + $0x128] sm:$0xff]  ;;  %v1141_v18 = vld [vmem:[#allocation16 + $0x130] sm:$0xff]  ;;  %vm1863_vm10 = vcmask 130048   ;;  %s4039_s26 = sld [smem:[#allocation52_spill]]  ;;  %s2500_s22 = sshll.u32 %s3478_s8, 3 }
  0xbd   : > { %1161 = vmatpush.msra.mxu0 %v1142_v13  ;;  %v1136_v19 = vld [vmem:[#allocation16 + $0x108] sm:$0xff]  ;;  %v1137_v20 = vld [vmem:[#allocation16 + $0x110] sm:$0xff]  ;;  %v1138_v21 = vld [vmem:[#allocation16 + $0x118] sm:$0xff]  ;;  %s1061_s20 = scalar_select %p1060_p3, %s3478_s8, 1 }
  0xbe   : > { %1181 = vmatpush.msra.mxu1 %v1143_v14  ;;  %1201 = vmatpush.msra.mxu2 %v1144_v15  ;;  %v1133_v22 = vld [vmem:[#allocation16 + $0xf0] sm:$0xff]  ;;  %v1134_v23 = vld [vmem:[#allocation16 + $0xf8] sm:$0xff]  ;;  %v1135_v24 = vld [vmem:[#allocation16 + $0x100] sm:$0xff]  ;;  %s4040_s3 = sld [smem:[#allocation61_spill]]  ;;  %s1058_s21 = scalar_lea.vmem [#allocation26], %s3682_s10 }
  0xbf   : > { %1162 = vmatpush.msra.mxu0 %v1139_v16  ;;  %v1130_v25 = vld [vmem:[#allocation16 + $0xd8] sm:$0xff]  ;;  %v1131_v26 = vld [vmem:[#allocation16 + $0xe0] sm:$0xff]  ;;  %v1132_v27 = vld [vmem:[#allocation16 + $0xe8] sm:$0xff]  ;;  %s2179_s8 = scalar_lea.sflag [#allocation4], %s3679_s9 }
  0xc0   : > { %1182 = vmatpush.msra.mxu1 %v1140_v17  ;;  %1202 = vmatpush.msra.mxu2 %v1141_v18  ;;  %v1127_v28 = vld [vmem:[#allocation16 + $0xc0] sm:$0xff]  ;;  %v1128_v29 = vld [vmem:[#allocation16 + $0xc8] sm:$0xff]  ;;  %v1129_v30 = vld [vmem:[#allocation16 + $0xd0] sm:$0xff] }
  0xc1   : > { %1163 = vmatpush.msra.mxu0 %v1136_v19  ;;  %v1124_v31 = vld [vmem:[#allocation16 + $0xa8] sm:$0xff]  ;;  %v1125_v32 = vld [vmem:[#allocation16 + $0xb0] sm:$0xff]  ;;  %v1126_v33 = vld [vmem:[#allocation16 + $0xb8] sm:$0xff]  ;;  %s3839_s16 = scalar_lea.vmem %s4036_s27, %s1061_s20  ;;  %s4041_s20 = sld [smem:[#allocation62_spill]] }
  0xc2   : > { %1183 = vmatpush.msra.mxu1 %v1137_v20  ;;  %1203 = vmatpush.msra.mxu2 %v1138_v21  ;;  %v1121_v34 = vld [vmem:[#allocation16 + $0x90] sm:$0xff]  ;;  %v1122_v35 = vld [vmem:[#allocation16 + $0x98] sm:$0xff]  ;;  %v1123_v36 = vld [vmem:[#allocation16 + $0xa0] sm:$0xff]  ;;  %s4042_s27 = sld [smem:[#allocation63_spill]] }
  0xc3   : > { %1164 = vmatpush.msra.mxu0 %v1133_v22  ;;  %v1118_v37 = vld [vmem:[#allocation16 + $0x78] sm:$0xff]  ;;  %v1119_v38 = vld [vmem:[#allocation16 + $0x80] sm:$0xff]  ;;  %v1120_v39 = vld [vmem:[#allocation16 + $0x88] sm:$0xff] }
  0xc4   : > { %1184 = vmatpush.msra.mxu1 %v1134_v23  ;;  %1204 = vmatpush.msra.mxu2 %v1135_v24  ;;  %v1115_v40 = vld [vmem:[#allocation16 + $0x60] sm:$0xff]  ;;  %v1116_v41 = vld [vmem:[#allocation16 + $0x68] sm:$0xff]  ;;  %v1117_v42 = vld [vmem:[#allocation16 + $0x70] sm:$0xff] }
  0xc5   : > { %1165 = vmatpush.msra.mxu0 %v1130_v25  ;;  %v1112_v43 = vld [vmem:[#allocation16 + $0x48] sm:$0xff]  ;;  %v1113_v44 = vld [vmem:[#allocation16 + $0x50] sm:$0xff]  ;;  %v1114_v45 = vld [vmem:[#allocation16 + $0x58] sm:$0xff] }
  0xc6   : > { %1185 = vmatpush.msra.mxu1 %v1131_v26  ;;  %1205 = vmatpush.msra.mxu2 %v1132_v27  ;;  %v1109_v46 = vld [vmem:[#allocation16 + $0x30] sm:$0xff]  ;;  %v1110_v47 = vld [vmem:[#allocation16 + $0x38] sm:$0xff]  ;;  %v1111_v48 = vld [vmem:[#allocation16 + $0x40] sm:$0xff] }
  0xc7   : > { %1166 = vmatpush.msra.mxu0 %v1127_v28  ;;  %v1106_v49 = vld [vmem:[#allocation16 + $0x18] sm:$0xff]  ;;  %v1107_v50 = vld [vmem:[#allocation16 + $0x20] sm:$0xff]  ;;  %v1108_v51 = vld [vmem:[#allocation16 + $0x28] sm:$0xff] }
  0xc8   : > { %1186 = vmatpush.msra.mxu1 %v1128_v29  ;;  %1206 = vmatpush.msra.mxu2 %v1129_v30  ;;  %v1103_v52 = vld [vmem:[#allocation16] sm:$0xff]  ;;  %v1104_v53 = vld [vmem:[#allocation16 + $0x8] sm:$0xff]  ;;  %v1105_v54 = vld [vmem:[#allocation16 + $0x10] sm:$0xff]  ;;  %s3227_s10 = scalar_lea.hbm %s4042_s27, 16 }
  0xc9   : > { %1167 = vmatpush.msra.mxu0 %v1124_v31  ;;  %v2706_v1 = vld [vmem:[#allocation10] ss:$0 sm:$0xff]  ;;  %v2707_v4 = vld [vmem:[#allocation11] ss:$0 sm:$0xff]  ;;  %v3753_v24 = vld [vmem:[%s908_s24] sm:$0xff]  ;;  %s2189_s24 = scalar_lea.hbm %s4042_s27, %s2500_s22 }
  0xca   : > { %1187 = vmatpush.msra.mxu1 %v1125_v32  ;;  %1207 = vmatpush.msra.mxu2 %v1126_v33  ;;  %v2477_v25 = vadd.f32 -1.0, %v3753_v24  ;;  %s2193_s28 = sshll.u32 %s2189_s24, 4  ;;  %s2194_s28 = int_to_ptr.hbm [resolvable:$true] %s2193_s28 }
  0xcb   : > { %1168 = vmatpush.msra.mxu0 %v1121_v34  ;;  %s3221_s11 = sshra.s32 %s2194_s28, 4  ;;  %s3222_s11 = int_to_ptr.hbm [resolvable:$true] %s3221_s11 }
  0xcc   : > { %1188 = vmatpush.msra.mxu1 %v1122_v35  ;;  %1208 = vmatpush.msra.mxu2 %v1123_v36  ;;  %v1345_v28 = vmul.f32 1e+30, %v2477_v25  ;;  %p3228_p2 = scmp.lt.s32.totalorder %s3222_s11, %s4042_s27 }
  0xcd   : > { %1169 = vmatpush.msra.mxu0 %v1118_v37 }
  0xce   : > { %1189 = vmatpush.msra.mxu1 %v1119_v38  ;;  %1209 = vmatpush.msra.mxu2 %v1120_v39 }
  0xcf   : > { %1170 = vmatpush.msra.mxu0 %v1115_v40 }
  0xd0   : > { %1190 = vmatpush.msra.mxu1 %v1116_v41  ;;  %1210 = vmatpush.msra.mxu2 %v1117_v42 }
  0xd1   : > { %1171 = vmatpush.msra.mxu0 %v1112_v43 }
  0xd2   : > { %1191 = vmatpush.msra.mxu1 %v1113_v44  ;;  %1211 = vmatpush.msra.mxu2 %v1114_v45 }
  0xd3   : > { %1172 = vmatpush.msra.mxu0 %v1109_v46 }
  0xd4   : > { %1192 = vmatpush.msra.mxu1 %v1110_v47  ;;  %1212 = vmatpush.msra.mxu2 %v1111_v48 }
  0xd5   : > { %1173 = vmatpush.msra.mxu0 %v1106_v49 }
  0xd6   : > { %1193 = vmatpush.msra.mxu1 %v1107_v50  ;;  %1213 = vmatpush.msra.mxu2 %v1108_v51 }
  0xd7   : > { %1174 = vmatpush.msra.mxu0 %v1103_v52 }
  0xd8   : > { %1194 = vmatpush.msra.mxu1 %v1104_v53  ;;  %1214 = vmatpush.msra.mxu2 %v1105_v54 }
 0x12c   : > { %v1072_v7 = vpop.xlane.xlu0 %1071 }
 0x12d   : > { %v1073_v8 = vmul.f32 0.03125, %v1072_v7  ;;  %v1151_v7 = vld [vmem:[%s3936_s12] sm:$0x7] }
 0x12e   : > { %v1155_v19 = vperm.slane %v1151_v7, 2 }
 0x12f   : > { %v3729_v10 = vsub.f32 %v3723_v0, %v1073_v8  ;;  %v1154_v8 = vperm.slane %v1151_v7, 1 }
 0x131   : > { %v1078_v11 = vmul.f32 %v3726_v9, %v3729_v10 }
 0x133   : > { %v1079_v12 = vmul.f32 %v1078_v11, %v1078_v11 }
 0x135   : > { %1080 = vadd.xlane.f32.xlu0 %v1079_v12  ;;  %v1153_v12 = vperm.slane %v1151_v7, 0 }
 0x1a8   : > { %v1081_v55 = vpop.xlane.xlu0 %1080 }
 0x1a9   : > { %v1082_v56 = vmul.f32 0.03125, %v1081_v55 }
 0x1ab   : > { %v1083_v57 = vadd.f32 1e-12, %v1082_v56 }
 0x1ad   : > { %2718 = vrsqrt.f32 %v1083_v57  ;;  %vm1090_vm1 = vweird.f32 %v1083_v57 }
 0x1b3   : > { %v2719_v58 = vpop.eup %2718 }
 0x1b4   : > { %v1085_v59 = vmul.f32 %v2719_v58, %v1083_v57  ;;  %vm1091_vm0 = vweird.f32 %v2719_v58 }
 0x1b5   : > { %vm1092_vm2 = vmor %vm1090_vm1, %vm1091_vm0 }
 0x1b6   : > { %v1086_v60 = vmul.f32 %v2719_v58, %v1085_v59 }
 0x1b8   : > { %v1087_v61 = vmul.f32 0.5, %v1086_v60 }
 0x1ba   : > { %v1088_v62 = vsub.f32 1.5, %v1087_v61 }
 0x1bc   : > { %v1089_v63 = vmul.f32 %v2719_v58, %v1088_v62 }
 0x1be   : > { %v1093_v2 = vsel %vm1092_vm2, %v2719_v58, %v1089_v63 }
 0x1bf   : > { %v1094_v3 = vmul.f32 %v1093_v2, %v3729_v10 }
 0x1c1   : > { %v1098_v5 = vmul.f32 %v2706_v1, %v1094_v3 }
 0x1c3   : > { %v1102_v6 = vadd.f32 %v2707_v4, %v1098_v5 }
 0x1c5   : > { %1175 = vmatmul.f32.vlgmr.msra.gmra.mxu0 %v1102_v6  ;;  %1195 = vmatmul.f32.vlgmr.msra.gmra.mxu1 %v1102_v6 }
 0x1c6   : > { %1215 = vmatmul.f32.vlgmr.msra.gmra.mxu2 %v1102_v6 }
 0x242   : > { %v1196_v11 = vpop.f32.mrf.mxu1  ;;  %v1176_v14 = vpop.f32.mrf.mxu0 }
 0x243   : > { %v1197_v13 = vadd.f32 %v1196_v11, %v1154_v8  ;;  %v1177_v10 = vadd.f32 %v1176_v14, %v1153_v12 }
 0x245   : > { %1231 = vrot.lane.b32.xlu0 %v1197_v13, %s3321_s7  ;;  %1229 = vrot.lane.b32.xlu2 %v1197_v13, %s3322_s29 }
 0x246   : > { %1227 = vrot.lane.b32.xlu1 %v1197_v13, %s3323_s1  ;;  %2469 = vmatpush.xpose.msk.msrb.mxu0 %vm1243_vm3, %v1197_v13 }
 0x249   : > { %2470 = vmatmul.msk.f32.vlgmr.msrb.gmra.mxu0 %vm1243_vm3, %v1177_v10  ;;  %v1216_v20 = vpop.f32.mrf.mxu2 }
 0x24a   : > { %v1217_v21 = vadd.f32 %v1216_v20, %v1155_v19  ;;  %v1523_v20 = vld [vmem:[#allocation17 + $0x78] sm:$0xff] }
 0x24d   : > { %1222 = vrot.lane.b32.xlu2 %v1177_v10, %s3322_s29 }
 0x24e   : > { %1220 = vrot.lane.b32.xlu1 %v1177_v10, %s3323_s1 }
 0x256   : > { %1224 = vrot.lane.b32.xlu1 %v1177_v10, %s3321_s7 }
 0x29f   : > { %v1230_v16 = vpop.permute.xlu2 %1229 }
 0x2a7   : > { %v1223_v22 = vpop.permute.xlu2 %1222 }
 0x2b7   : > { %v1232_v18 = vpop.permute.xlu0 %1231 }
 0x2b8   : > { %v1228_v15 = vpop.permute.xlu1 %1227 }
 0x2b9   : > { %2471 = vmatpush.xpose.msk.msra.mxu3 %vm1243_vm3, %v1228_v15 }
 0x2bd   : > { %2473 = vmatpush.xpose.msk.msrb.mxu3 %vm1243_vm3, %v1230_v16 }
 0x2c0   : > { %v1221_v17 = vpop.permute.xlu1 %1220 }
 0x2c1   : > { %2472 = vmatmul.msk.f32.vlgmr.msra.gmra.mxu3 %vm1243_vm3, %v1221_v17 }
 0x2c2   : > { %2475 = vmatpush.xpose.msk.msra.mxu3 %vm1243_vm3, %v1232_v18 }
 0x2c6   : > { %v1265_v29 = vpop.f32.mrf.mxu0 }
 0x2c7   : > { %v1340_v31 = vmul.f32 0.35355338, %v1265_v29  ;;  %v1517_v29 = vld [vmem:[#allocation17 + $0x48] sm:$0xff] }
 0x2c8   : > { %v1225_v23 = vpop.permute.xlu1 %1224 }
 0x2c9   : > { %2474 = vmatmul.msk.f32.vlgmr.msrb.gmra.mxu3 %vm1243_vm3, %v1223_v22  ;;  %v1346_v35 = vadd.f32 %v1345_v28, %v1340_v31  ;;  %v1521_v22 = vld [vmem:[#allocation17 + $0x68] sm:$0xff]  ;;  %v1515_v31 = vld [vmem:[#allocation17 + $0x38] sm:$0xff] }
 0x2ca   : > { %1417 = vmatpush.msrb.mxu3 %v1217_v21 }
 0x2cb   : > { %v1351_v38 = vsel %vm1350_vm4, %v1346_v35, -inf }
 0x2d1   : > { %2476 = vmatmul.msk.f32.vlgmr.msra.gmra.mxu3 %vm1243_vm3, %v1225_v23 }
 0x2d2   : > { %1524 = vmatpush.msra.mxu3 %v1523_v20  ;;  %v1585_v20 = vld [vmem:[#allocation19 + $0x20] sm:$0xff] }
 0x344   : > { %v1289_v26 = vpop.f32.mrf.mxu3 }
 0x345   : > { %v1341_v27 = vmul.f32 0.35355338, %v1289_v26 }
 0x347   : > { %v1347_v30 = vadd.f32 %v1345_v28, %v1341_v27  ;;  %v1520_v27 = vld [vmem:[#allocation17 + $0x60] sm:$0xff] }
 0x349   : > { %v1354_v32 = vsel %vm1350_vm4, %v1347_v30, -inf }
 0x34a   : > { %1355 = vmax.xlane.f32.xlu2 %v1354_v32  ;;  %v1514_v32 = vld [vmem:[#allocation17 + $0x30] sm:$0xff] }
 0x34c   : > { %v1313_v33 = vpop.f32.mrf.mxu3 }
 0x34d   : > { %v1342_v34 = vmul.f32 0.35355338, %v1313_v33  ;;  %v1513_v33 = vld [vmem:[#allocation17 + $0x28] sm:$0xff] }
 0x34f   : > { %v1348_v36 = vadd.f32 %v1345_v28, %v1342_v34  ;;  %v1512_v34 = vld [vmem:[#allocation17 + $0x20] sm:$0xff] }
 0x351   : > { %v1357_v37 = vsel %vm1350_vm4, %v1348_v36, -inf }
 0x352   : > { %1358 = vmax.xlane.f32.xlu0 %v1357_v37  ;;  %1352 = vmax.xlane.f32.xlu2 %v1351_v38  ;;  %v1509_v37 = vld [vmem:[#allocation17 + $0x8] sm:$0xff]  ;;  %v1508_v38 = vld [vmem:[#allocation17] sm:$0xff] }
 0x354   : > { %v1337_v39 = vpop.f32.mrf.mxu3 }
 0x355   : > { %v1343_v40 = vmul.f32 0.35355338, %v1337_v39 }
 0x357   : > { %v1349_v41 = vadd.f32 %v1345_v28, %v1343_v40  ;;  %v1519_v28 = vld [vmem:[#allocation17 + $0x58] sm:$0xff] }
 0x359   : > { %v1360_v42 = vsel %vm1350_vm4, %v1349_v41, -inf }
 0x35a   : > { %1361 = vmax.xlane.f32.xlu1 %v1360_v42 }
 0x366   : > { %1240 = vrot.lane.b32.xlu0 %v1217_v21, %s3321_s7 }
 0x3bd   : > { %v1356_v43 = vpop.xlane.xlu2 %1355 }
 0x3be   : > { %v1364_v44 = vsub.f32 %v1347_v30, %v1356_v43  ;;  %v1516_v30 = vld [vmem:[#allocation17 + $0x40] sm:$0xff] }
 0x3c0   : > { %v1369_v45 = vmul.f32 1.442695, %v1364_v44 }
 0x3c2   : > { %2720 = vpow2.f32 %v1369_v45 }
 0x3c5   : > { %v1359_v46 = vpop.xlane.xlu0 %1358  ;;  %v1353_v47 = vpop.xlane.xlu2 %1352 }
 0x3c6   : > { %v1365_v48 = vsub.f32 %v1348_v36, %v1359_v46  ;;  %v1363_v49 = vsub.f32 %v1346_v35, %v1353_v47  ;;  %v1511_v35 = vld [vmem:[#allocation17 + $0x18] sm:$0xff]  ;;  %v1510_v36 = vld [vmem:[#allocation17 + $0x10] sm:$0xff] }
 0x3c7   : > { %v2708_v46 = vld [vmem:[%s3938_s14] ss:$0 sm:$0xff] }
 0x3c8   : > { %v2721_v50 = vpop.eup %2720  ;;  %v1371_v51 = vmul.f32 1.442695, %v1365_v48  ;;  %v1367_v52 = vmul.f32 1.442695, %v1363_v49 }
 0x3c9   : > { %v1378_v53 = vsel %vm1350_vm4, %v2721_v50, 0.0 }
 0x3ca   : > { %2722 = vpow2.f32 %v1371_v51  ;;  %1379 = vadd.xlane.f32.xlu2 %v1378_v53  ;;  %v1649_v51 = vld [vmem:[#allocation20 + $0xe0] sm:$0xff] }
 0x3cb   : > { %2724 = vpow2.f32 %v1367_v52  ;;  %v1647_v52 = vld [vmem:[#allocation20 + $0xd0] sm:$0xff]  ;;  %v1645_v53 = vld [vmem:[#allocation20 + $0xc0] sm:$0xff] }
 0x3cd   : > { %v1362_v54 = vpop.xlane.xlu1 %1361 }
 0x3ce   : > { %v1366_v55 = vsub.f32 %v1349_v41, %v1362_v54  ;;  %v1643_v54 = vld [vmem:[#allocation20 + $0xb0] sm:$0xff] }
 0x3d0   : > { %v2723_v56 = vpop.eup %2722  ;;  %v1373_v57 = vmul.f32 1.442695, %v1366_v55  ;;  %v1641_v55 = vld [vmem:[#allocation20 + $0xa0] sm:$0xff] }
 0x3d1   : > { %v2725_v58 = vpop.eup %2724  ;;  %v1381_v59 = vsel %vm1350_vm4, %v2723_v56, 0.0 }
 0x3d2   : > { %2726 = vpow2.f32 %v1373_v57  ;;  %1382 = vadd.xlane.f32.xlu2 %v1381_v59  ;;  %v1375_v60 = vsel %vm1350_vm4, %v2725_v58, 0.0  ;;  %v1595_v57 = vld [vmem:[#allocation19 + $0x70] sm:$0xff] }
 0x3d3   : > { %1376 = vadd.xlane.f32.xlu0 %v1375_v60  ;;  %v1635_v59 = vld [vmem:[#allocation20 + $0x70] sm:$0xff]  ;;  %v1633_v60 = vld [vmem:[#allocation20 + $0x60] sm:$0xff] }
 0x3d8   : > { %v2727_v61 = vpop.eup %2726  ;;  %v1241_v62 = vpop.permute.xlu0 %1240 }
 0x3d9   : > { %1486 = vmatpush.msrb.mxu2 %v1241_v62  ;;  %v1384_v63 = vsel %vm1350_vm4, %v2727_v61, 0.0  ;;  %v1629_v62 = vld [vmem:[#allocation20 + $0x40] sm:$0xff] }
 0x3da   : > { %1385 = vadd.xlane.f32.xlu1 %v1384_v63  ;;  %v1627_v63 = vld [vmem:[#allocation20 + $0x30] sm:$0xff] }
 0x3ea   : > { %1237 = vrot.lane.b32.xlu2 %v1217_v21, %s3322_s29 }
 0x3f3   : > { %1234 = vrot.lane.b32.xlu1 %v1217_v21, %s3323_s1  ;;  %v1522_v21 = vld [vmem:[#allocation17 + $0x70] sm:$0xff] }
 0x3f4   : > { %1525 = vmatpush.msra.mxu3 %v1522_v21  ;;  %v1584_v21 = vld [vmem:[#allocation19 + $0x18] sm:$0xff] }
 0x3f6   : > { %1526 = vmatpush.msra.mxu3 %v1521_v22  ;;  %v1583_v22 = vld [vmem:[#allocation19 + $0x10] sm:$0xff] }
 0x3f8   : > { %1527 = vmatpush.msra.mxu3 %v1520_v27 }
 0x3fa   : > { %1528 = vmatpush.msra.mxu3 %v1519_v28 }
 0x43d   : > { %v1380_v6 = vpop.xlane.xlu2 %1379 }
 0x445   : > { %v1383_v12 = vpop.xlane.xlu2 %1382 }
 0x446   : > { %v1377_v1 = vpop.xlane.xlu0 %1376 }
 0x447   : > { %2728 = vrcp.f32 %v1377_v1 }
 0x44d   : > { %v2729_v2 = vpop.eup %2728  ;;  %v1386_v3 = vpop.xlane.xlu1 %1385 }
 0x44e   : > { %v1391_v4 = vmul.f32 %v2729_v2, %v2725_v58  ;;  %2730 = vrcp.f32 %v1386_v3  ;;  %v1238_v17 = vpop.permute.xlu2 %1237  ;;  %v1639_v58 = vld [vmem:[#allocation20 + $0x90] sm:$0xff]  ;;  %v1625_v3 = vld [vmem:[#allocation20 + $0x20] sm:$0xff] }
 0x44f   : > { %2732 = vrcp.f32 %v1380_v6 }
 0x450   : > { %v1395_v5 = vmul.f32 %v1391_v4, %v3753_v24  ;;  %2734 = vrcp.f32 %v1383_v12  ;;  %v3798_v12 = vld [vmem:[%s3697_s25 + $0x8] sm:$0xff] }
 0x452   : > { %2478 = vmatmul.msk.f32.vlgmr.msrb.gmra.mxu3 %vm1350_vm4, %v1395_v5  ;;  %v1623_v5 = vld [vmem:[#allocation20 + $0x10] sm:$0xff] }
 0x454   : > { %v2731_v7 = vpop.eup %2730 }
 0x455   : > { %v1394_v8 = vmul.f32 %v2731_v7, %v2727_v61  ;;  %v2733_v13 = vpop.eup %2732  ;;  %v1631_v61 = vld [vmem:[#allocation20 + $0x50] sm:$0xff]  ;;  %v1621_v7 = vld [vmem:[#allocation20] sm:$0xff] }
 0x456   : > { %v1392_v14 = vmul.f32 %v2733_v13, %v2721_v50  ;;  %v2735_v16 = vpop.eup %2734  ;;  %v1651_v50 = vld [vmem:[#allocation20 + $0xf0] sm:$0xff]  ;;  %v1594_v13 = vld [vmem:[#allocation19 + $0x68] sm:$0xff] }
 0x457   : > { %v1398_v11 = vmul.f32 %v1394_v8, %v3753_v24  ;;  %v1393_v18 = vmul.f32 %v2735_v16, %v2723_v56  ;;  %1659 = vmatpush.msrb.mxu1 %v1651_v50  ;;  %v1596_v56 = vld [vmem:[#allocation19 + $0x78] sm:$0xff]  ;;  %v1589_v16 = vld [vmem:[#allocation19 + $0x40] sm:$0xff] }
 0x458   : > { %v1396_v10 = vmul.f32 %v1392_v14, %v3753_v24  ;;  %v3794_v8 = vld [vmem:[%s3697_s25] sm:$0xff]  ;;  %s4037_s25 = sld [smem:[#allocation59_spill]] }
 0x459   : > { %2481 = vmatmul.msk.f32.vlgmr.msrb.gmra.mxu2 %vm1350_vm4, %v1398_v11  ;;  %v1397_v19 = vmul.f32 %v1393_v18, %v3753_v24  ;;  %v1518_v24 = vld [vmem:[#allocation17 + $0x50] sm:$0xff]  ;;  %1660 = vmatpush.msrb.mxu1 %v1649_v51  ;;  %v1593_v14 = vld [vmem:[#allocation19 + $0x60] sm:$0xff] }
 0x45a   : > { %1529 = vmatpush.msra.mxu3 %v1518_v24  ;;  %v1587_v18 = vld [vmem:[#allocation19 + $0x30] sm:$0xff] }
 0x45b   : > { %1661 = vmatpush.msrb.mxu1 %v1647_v52  ;;  %v3804_v24 = vld [vmem:[%s3942_s18] sm:$0x3] }
 0x45c   : > { %1530 = vmatpush.msra.mxu3 %v1517_v29  ;;  %v1655_v29 = vperm.slane %v3804_v24, 0  ;;  %v2711_v52 = vld [vmem:[%s4035_s19] ss:$0 sm:$0xff] }
 0x45d   : > { %1662 = vmatpush.msrb.mxu1 %v1645_v53 }
 0x45e   : > { %1531 = vmatpush.msra.mxu3 %v1516_v30 }
 0x45f   : > { %1663 = vmatpush.msrb.mxu1 %v1643_v54 }
 0x460   : > { %1532 = vmatpush.msra.mxu3 %v1515_v31 }
 0x461   : > { %1664 = vmatpush.msrb.mxu1 %v1641_v55 }
 0x462   : > { %1533 = vmatpush.msra.mxu3 %v1514_v32 }
 0x463   : > { %1665 = vmatpush.msrb.mxu1 %v1639_v58  ;;  %v1648_v58 = vld [vmem:[#allocation20 + $0xd8] sm:$0xff] }
 0x464   : > { %1534 = vmatpush.msra.mxu3 %v1513_v33 }
 0x465   : > { %v1235_v15 = vpop.permute.xlu1 %1234 }
 0x466   : > { %1440 = vmatpush.msra.mxu0 %v1235_v15  ;;  %1535 = vmatpush.msra.mxu3 %v1512_v34  ;;  %v1590_v15 = vld [vmem:[#allocation19 + $0x48] sm:$0xff] }
 0x467   : > { %2479 = vmatmul.msk.f32.vlgmr.msra.gmra.mxu0 %vm1350_vm4, %v1396_v10  ;;  %v1592_v10 = vld [vmem:[#allocation19 + $0x58] sm:$0xff] }
 0x468   : > { %1463 = vmatpush.msrb.mxu0 %v1238_v17  ;;  %1536 = vmatpush.msra.mxu3 %v1511_v35  ;;  %v1588_v17 = vld [vmem:[#allocation19 + $0x38] sm:$0xff] }
 0x46a   : > { %1537 = vmatpush.msra.mxu3 %v1510_v36  ;;  %1601 = vmatpush.msra.mxu0 %v1596_v56  ;;  %v1652_v56 = vld [vmem:[#allocation20 + $0xf8] sm:$0xff] }
 0x46b   : > { %1682 = vmatpush.msra.mxu2 %v1652_v56 }
 0x46c   : > { %1538 = vmatpush.msra.mxu3 %v1509_v37  ;;  %1602 = vmatpush.msra.mxu0 %v1595_v57  ;;  %v1650_v57 = vld [vmem:[#allocation20 + $0xe8] sm:$0xff] }
 0x46d   : > { %1683 = vmatpush.msra.mxu2 %v1650_v57 }
 0x46e   : > { %1539 = vmatpush.msra.mxu3 %v1508_v38  ;;  %1603 = vmatpush.msra.mxu0 %v1594_v13  ;;  %v1624_v13 = vld [vmem:[#allocation20 + $0x18] sm:$0xff] }
 0x46f   : > { %2480 = vmatmul.msk.f32.vlgmr.msrb.gmra.mxu0 %vm1350_vm4, %v1397_v19  ;;  %v1586_v19 = vld [vmem:[#allocation19 + $0x28] sm:$0xff]  ;;  %1684 = vmatpush.msra.mxu2 %v1648_v58 }
 0x470   : > { %1604 = vmatpush.msra.mxu0 %v1593_v14  ;;  %v1622_v14 = vld [vmem:[#allocation20 + $0x8] sm:$0xff] }
 0x472   : > { %1605 = vmatpush.msra.mxu0 %v1592_v10  ;;  %v1067_v10 = vld [vmem:[%s3839_s16] sm:$0x1] }
 0x4d5   : > { %v1419_v40 = vpop.f32.mrf.mxu3 }
 0x4dc   : > { %v1488_v25 = vpop.f32.mrf.mxu2 }
 0x4e4   : > { %v1442_v23 = vpop.f32.mrf.mxu0 }
 0x4e5   : > { %1492 = vrot.lane.b32.xlu1 %v1442_v23, %s3321_s7  ;;  %v1582_v23 = vld [vmem:[#allocation19 + $0x8] sm:$0xff] }
 0x4ec   : > { %v1465_v26 = vpop.f32.mrf.mxu0 }
 0x4ed   : > { %1500 = vrot.lane.b32.xlu1 %v1488_v25, %s3323_s1  ;;  %1496 = vrot.lane.b32.xlu2 %v1465_v26, %s3322_s29  ;;  %v1581_v25 = vld [vmem:[#allocation19] sm:$0xff] }
 0x547   : > { %v1497_v42 = vpop.permute.xlu2 %1496 }
 0x557   : > { %v1493_v39 = vpop.permute.xlu1 %1492 }
 0x558   : > { %v1503_v41 = vsel %vm1243_vm3, %v1419_v40, %v1493_v39  ;;  %v2709_v40 = vld [vmem:[#allocation13] ss:$0 sm:$0xff] }
 0x559   : > { %v1505_v44 = vsel %vm1504_vm5, %v1503_v41, %v1497_v42 }
 0x55f   : > { %v1501_v43 = vpop.permute.xlu1 %1500 }
 0x560   : > { %v1507_v45 = vsel %vm1506_vm6, %v1505_v44, %v1501_v43  ;;  %v2710_v43 = vld [vmem:[#allocation14] ss:$0 sm:$0xff] }
 0x561   : > { %1540 = vmatmul.f32.vlgmr.msra.gmra.mxu3 %v1507_v45 }
 0x5e4   : > { %v1541_v47 = vpop.f32.mrf.mxu3 }
 0x5e5   : > { %v1544_v48 = vadd.f32 %v1541_v47, %v3723_v0  ;;  %v1637_v0 = vld [vmem:[#allocation20 + $0x80] sm:$0xff] }
 0x5e6   : > { %1666 = vmatpush.msrb.mxu1 %v1637_v0  ;;  %v1646_v0 = vld [vmem:[#allocation20 + $0xc8] sm:$0xff] }
 0x5e7   : > { %v3785_v49 = vadd.f32 %v2708_v46, %v1544_v48  ;;  %1685 = vmatpush.msra.mxu2 %v1646_v0 }
 0x5e8   : > { %1667 = vmatpush.msrb.mxu1 %v1635_v59  ;;  %v1644_v59 = vld [vmem:[#allocation20 + $0xb8] sm:$0xff] }
 0x5e9   : > { %1552 = vadd.xlane.f32.xlu2 %v3785_v49  ;;  %1686 = vmatpush.msra.mxu2 %v1644_v59 }
 0x5ea   : > { %1668 = vmatpush.msrb.mxu1 %v1633_v60  ;;  %v1642_v60 = vld [vmem:[#allocation20 + $0xa8] sm:$0xff] }
 0x5eb   : > { %1687 = vmatpush.msra.mxu2 %v1642_v60 }
 0x5ec   : > { %1669 = vmatpush.msrb.mxu1 %v1631_v61  ;;  %v1640_v61 = vld [vmem:[#allocation20 + $0x98] sm:$0xff] }
 0x5ed   : > { %1688 = vmatpush.msra.mxu2 %v1640_v61 }
 0x5ee   : > { %1670 = vmatpush.msrb.mxu1 %v1629_v62  ;;  %v1638_v62 = vld [vmem:[#allocation20 + $0x88] sm:$0xff] }
 0x5ef   : > { %1689 = vmatpush.msra.mxu2 %v1638_v62 }
 0x5f0   : > { %1671 = vmatpush.msrb.mxu1 %v1627_v63 }
 0x5f2   : > { %1672 = vmatpush.msrb.mxu1 %v1625_v3  ;;  %v1632_v3 = vld [vmem:[#allocation20 + $0x58] sm:$0xff] }
 0x5f4   : > { %1673 = vmatpush.msrb.mxu1 %v1623_v5 }
 0x5f6   : > { %1674 = vmatpush.msrb.mxu1 %v1621_v7 }
 0x5f7   : > { %1675 = vmatmul.f32.vlgmr.msrb.gmra.mxu1 %v3794_v8 }
 0x5ff   : > { %1678 = vmatmul.f32.gmra.mxu1 %v3798_v12 }
 0x65c   : > { %v1553_v1 = vpop.xlane.xlu2 %1552 }
 0x65d   : > { %v1554_v2 = vmul.f32 0.03125, %v1553_v1  ;;  %v1636_v1 = vld [vmem:[#allocation20 + $0x78] sm:$0xff] }
 0x65e   : > { %1690 = vmatpush.msra.mxu2 %v1636_v1  ;;  %v2712_v1 = vld [vmem:[%s3839_s16] ss:$0 sm:$0xff] }
 0x65f   : > { %v3789_v4 = vsub.f32 %v3785_v49, %v1554_v2  ;;  %v1634_v2 = vld [vmem:[#allocation20 + $0x68] sm:$0xff] }
 0x660   : > { %1691 = vmatpush.msra.mxu2 %v1634_v2 }
 0x661   : > { %v1556_v6 = vmul.f32 %v3726_v9, %v3789_v4  ;;  %v1591_v9 = vld [vmem:[#allocation19 + $0x50] sm:$0xff] }
 0x662   : > { %1606 = vmatpush.msra.mxu0 %v1591_v9  ;;  %1692 = vmatpush.msra.mxu2 %v1632_v3 }
 0x663   : > { %v1557_v11 = vmul.f32 %v1556_v6, %v1556_v6  ;;  %v1628_v6 = vld [vmem:[#allocation20 + $0x38] sm:$0xff] }
 0x664   : > { %1607 = vmatpush.msra.mxu0 %v1590_v15  ;;  %v2494_v15 = vadd.f32 -1.0, %v1067_v10 }
 0x665   : > { %1558 = vadd.xlane.f32.xlu1 %v1557_v11  ;;  %v1626_v11 = vld [vmem:[#allocation20 + $0x28] sm:$0xff] }
 0x666   : > { %1608 = vmatpush.msra.mxu0 %v1589_v16  ;;  %v1855_v16 = vmul.f32 1e+30, %v2494_v15 }
 0x668   : > { %1609 = vmatpush.msra.mxu0 %v1588_v17 }
 0x66a   : > { %1610 = vmatpush.msra.mxu0 %v1587_v18 }
 0x66c   : > { %1611 = vmatpush.msra.mxu0 %v1586_v19  ;;  %v1857_v19 = vperm.slane %v1855_v16, 0 }
 0x66e   : > { %1612 = vmatpush.msra.mxu0 %v1585_v20 }
 0x670   : > { %1613 = vmatpush.msra.mxu0 %v1584_v21 }
 0x672   : > { %1614 = vmatpush.msra.mxu0 %v1583_v22 }
 0x674   : > { %1615 = vmatpush.msra.mxu0 %v1582_v23  ;;  %v1676_v30 = vpop.f32.mrf.mxu1 }
 0x675   : > { %v1677_v32 = vadd.f32 %v1676_v30, %v1655_v29 }
 0x676   : > { %1616 = vmatpush.msra.mxu0 %v1581_v25 }
 0x677   : > { %1718 = vrot.lane.b32.xlu2 %v1677_v32, %s3322_s29 }
 0x67c   : > { %v1679_v37 = vpop.f32.mrf.mxu1 }
 0x67d   : > { %v1680_v38 = vadd.f32 %v1679_v37, %v1655_v29 }
 0x67f   : > { %1720 = vrot.lane.b32.xlu0 %v1680_v38, %s3322_s29  ;;  %1716 = vrot.lane.b32.xlu1 %v1680_v38, %s3323_s1 }
 0x680   : > { %2482 = vmatpush.xpose.msk.msrb.mxu3 %vm1243_vm3, %v1680_v38  ;;  %1724 = vrot.lane.b32.xlu2 %v1680_v38, %s3321_s7 }
 0x684   : > { %2483 = vmatpush.xpose.msk.msrb.mxu3 %vm1243_vm3, %v1677_v32 }
 0x687   : > { %1714 = vrot.lane.b32.xlu0 %v1677_v32, %s3323_s1  ;;  %1722 = vrot.lane.b32.xlu1 %v1677_v32, %s3321_s7 }
 0x6d1   : > { %v1719_v47 = vpop.permute.xlu2 %1718 }
 0x6d8   : > { %v1559_v26 = vpop.xlane.xlu1 %1558 }
 0x6d9   : > { %v1560_v27 = vmul.f32 0.03125, %v1559_v26 }
 0x6da   : > { %v1725_v51 = vpop.permute.xlu2 %1724 }
 0x6db   : > { %v1561_v28 = vadd.f32 1e-12, %v1560_v27 }
 0x6dd   : > { %2736 = vrsqrt.f32 %v1561_v28  ;;  %vm1568_vm8 = vweird.f32 %v1561_v28 }
 0x6e3   : > { %v2737_v31 = vpop.eup %2736 }
 0x6e4   : > { %v1563_v33 = vmul.f32 %v2737_v31, %v1561_v28  ;;  %vm1569_vm7 = vweird.f32 %v2737_v31 }
 0x6e5   : > { %vm1570_vm9 = vmor %vm1568_vm8, %vm1569_vm7 }
 0x6e6   : > { %v1564_v34 = vmul.f32 %v2737_v31, %v1563_v33  ;;  %v1656_v33 = vperm.slane %v3804_v24, 1 }
 0x6e8   : > { %v1565_v35 = vmul.f32 0.5, %v1564_v34 }
 0x6ea   : > { %v1566_v36 = vsub.f32 1.5, %v1565_v35 }
 0x6ec   : > { %v1567_v39 = vmul.f32 %v2737_v31, %v1566_v36 }
 0x6ee   : > { %v1571_v41 = vsel %vm1570_vm9, %v2737_v31, %v1567_v39 }
 0x6ef   : > { %v1572_v42 = vmul.f32 %v1571_v41, %v3789_v4  ;;  %v1630_v4 = vld [vmem:[#allocation20 + $0x48] sm:$0xff] }
 0x6f0   : > { %1693 = vmatpush.msra.mxu2 %v1630_v4 }
 0x6f1   : > { %v1576_v44 = vmul.f32 %v2709_v40, %v1572_v42  ;;  %v1721_v46 = vpop.permute.xlu0 %1720  ;;  %v1717_v48 = vpop.permute.xlu1 %1716 }
 0x6f2   : > { %2488 = vmatpush.xpose.msk.msra.mxu3 %vm1243_vm3, %v1721_v46  ;;  %2485 = vmatpush.xpose.msk.msrb.mxu0 %vm1243_vm3, %v1717_v48 }
 0x6f3   : > { %v1580_v45 = vadd.f32 %v2710_v43, %v1576_v44  ;;  %1694 = vmatpush.msra.mxu2 %v1628_v6 }
 0x6f5   : > { %1617 = vmatmul.f32.vlgmr.msra.gmra.mxu0 %v1580_v45  ;;  %1695 = vmatpush.msra.mxu2 %v1626_v11 }
 0x6f6   : > { %2489 = vmatpush.xpose.msk.msra.mxu3 %vm1243_vm3, %v1719_v47 }
 0x6f7   : > { %1696 = vmatpush.msra.mxu2 %v1624_v13 }
 0x6f9   : > { %v1715_v50 = vpop.permute.xlu0 %1714  ;;  %v1723_v53 = vpop.permute.xlu1 %1722  ;;  %1697 = vmatpush.msra.mxu2 %v1622_v14 }
 0x6fa   : > { %2486 = vmatpush.xpose.msk.msrb.mxu0 %vm1243_vm3, %v1715_v50  ;;  %1698 = vmatmul.f32.vlgmr.msra.gmra.mxu2 %v3794_v8 }
 0x6fe   : > { %2491 = vmatpush.xpose.msk.msra.mxu0 %vm1243_vm3, %v1725_v51 }
 0x702   : > { %2492 = vmatpush.xpose.msk.msra.mxu0 %vm1243_vm3, %v1723_v53  ;;  %1701 = vmatmul.f32.gmra.mxu2 %v3798_v12 }
 0x772   : > { %v1618_v54 = vpop.f32.mrf.mxu0 }
 0x773   : > { %v1619_v55 = vadd.f32 %v2711_v52, %v1618_v54 }
 0x775   : > { %1708 = vrot.lane.b32.xlu0 %v1619_v55, %s3322_s29  ;;  %2484 = vmatmul.msk.f32.vlgmr.msrb.gmra.mxu3 %vm1243_vm3, %v1619_v55 }
 0x77d   : > { %1706 = vrot.lane.b32.xlu0 %v1619_v55, %s3323_s1  ;;  %v1699_v32 = vpop.f32.mrf.mxu2 }
 0x77e   : > { %v1700_v35 = vadd.f32 %v1699_v32, %v1656_v33  ;;  %v2029_v32 = vld [vmem:[#allocation22 + $0x38] sm:$0xff] }
 0x785   : > { %1710 = vrot.lane.b32.xlu0 %v1619_v55, %s3321_s7  ;;  %v1702_v34 = vpop.f32.mrf.mxu2 }
 0x786   : > { %v1703_v36 = vadd.f32 %v1702_v34, %v1656_v33  ;;  %v2028_v33 = vld [vmem:[#allocation22 + $0x30] sm:$0xff]  ;;  %v2027_v34 = vld [vmem:[#allocation22 + $0x28] sm:$0xff] }
 0x788   : > { %1932 = vmatpush.msra.mxu1 %v1703_v36  ;;  %v2695_v52 = vpack.i.bf16 %v1700_v35, %v1703_v36  ;;  %v2025_v36 = vld [vmem:[#allocation22 + $0x18] sm:$0xff] }
 0x78a   : > { %1933 = vmatpush.msra.mxu1 %v1700_v35  ;;  %v2026_v35 = vld [vmem:[#allocation22 + $0x20] sm:$0xff] }
 0x7e7   : > { %v1709_v63 = vpop.permute.xlu0 %1708 }
 0x7e8   : > { %2490 = vmatmul.msk.f32.vlgmr.msra.gmra.mxu3 %vm1243_vm3, %v1709_v63 }
 0x7ef   : > { %v1707_v5 = vpop.permute.xlu0 %1706 }
 0x7f0   : > { %2487 = vmatmul.msk.f32.vlgmr.msrb.gmra.mxu0 %vm1243_vm3, %v1707_v5 }
 0x7f7   : > { %v1711_v7 = vpop.permute.xlu0 %1710 }
 0x7f8   : > { %2493 = vmatmul.msk.f32.vlgmr.msra.gmra.mxu0 %vm1243_vm3, %v1711_v7  ;;  %v1769_v9 = vpop.f32.mrf.mxu3 }
 0x7f9   : > { %v1850_v23 = vmul.f32 0.35355338, %v1769_v9 }
 0x7fb   : > { %v1859_v28 = vadd.f32 %v1857_v19, %v1850_v23  ;;  %v2037_v23 = vld [vmem:[#allocation22 + $0x78] sm:$0xff] }
 0x7fc   : > { %2038 = vmatpush.msrb.mxu1 %v2037_v23 }
 0x7fd   : > { %v1864_v30 = vsel %vm1863_vm10, %v1859_v28, -inf }
 0x86b   : > { %v1821_v17 = vpop.f32.mrf.mxu3 }
 0x86c   : > { %v1852_v18 = vmul.f32 0.35355338, %v1821_v17 }
 0x86d   : > { %v1795_v20 = vpop.f32.mrf.mxu0 }
 0x86e   : > { %v1851_v21 = vmul.f32 0.35355338, %v1795_v20  ;;  %v1861_v8 = vadd.f32 %v1857_v19, %v1852_v18 }
 0x870   : > { %v1870_v22 = vsel %vm1863_vm10, %v1861_v8, -inf  ;;  %v1860_v12 = vadd.f32 %v1857_v19, %v1851_v21 }
 0x871   : > { %1871 = vmax.xlane.f32.xlu1 %v1870_v22 }
 0x872   : > { %v1867_v25 = vsel %vm1863_vm10, %v1860_v12, -inf }
 0x873   : > { %1868 = vmax.xlane.f32.xlu2 %v1867_v25  ;;  %v2036_v25 = vld [vmem:[#allocation22 + $0x70] sm:$0xff] }
 0x874   : > { %2039 = vmatpush.msrb.mxu1 %v2036_v25  ;;  %v2141_v25 = vld [vmem:[#allocation25 + $0x28] sm:$0xff] }
 0x875   : > { %v1847_v26 = vpop.f32.mrf.mxu0 }
 0x876   : > { %v1853_v27 = vmul.f32 0.35355338, %v1847_v26  ;;  %v2035_v26 = vld [vmem:[#allocation22 + $0x68] sm:$0xff] }
 0x877   : > { %2040 = vmatpush.msrb.mxu1 %v2035_v26 }
 0x878   : > { %v1862_v29 = vadd.f32 %v1857_v19, %v1853_v27  ;;  %v2034_v27 = vld [vmem:[#allocation22 + $0x60] sm:$0xff] }
 0x879   : > { %2041 = vmatpush.msrb.mxu1 %v2034_v27  ;;  %v2140_v27 = vld [vmem:[#allocation25 + $0x20] sm:$0xff] }
 0x87a   : > { %v1873_v31 = vsel %vm1863_vm10, %v1862_v29, -inf }
 0x87b   : > { %1865 = vmax.xlane.f32.xlu2 %v1864_v30  ;;  %1874 = vmax.xlane.f32.xlu0 %v1873_v31  ;;  %v2031_v30 = vld [vmem:[#allocation22 + $0x48] sm:$0xff]  ;;  %v2030_v31 = vld [vmem:[#allocation22 + $0x40] sm:$0xff] }
 0x8e4   : > { %v1872_v37 = vpop.xlane.xlu1 %1871 }
 0x8e5   : > { %v1878_v38 = vsub.f32 %v1861_v8, %v1872_v37  ;;  %v2024_v37 = vld [vmem:[#allocation22 + $0x10] sm:$0xff] }
 0x8e6   : > { %v1869_v39 = vpop.xlane.xlu2 %1868 }
 0x8e7   : > { %v1884_v40 = vmul.f32 1.442695, %v1878_v38  ;;  %v1877_v41 = vsub.f32 %v1860_v12, %v1869_v39  ;;  %v2023_v38 = vld [vmem:[#allocation22 + $0x8] sm:$0xff]  ;;  %v2022_v39 = vld [vmem:[#allocation22] sm:$0xff] }
 0x8e9   : > { %2738 = vpow2.f32 %v1884_v40  ;;  %v1882_v42 = vmul.f32 1.442695, %v1877_v41 }
 0x8eb   : > { %2740 = vpow2.f32 %v1882_v42 }
 0x8ee   : > { %v1875_v43 = vpop.xlane.xlu0 %1874  ;;  %v1866_v53 = vpop.xlane.xlu2 %1865 }
 0x8ef   : > { %v2739_v44 = vpop.eup %2738  ;;  %v1879_v45 = vsub.f32 %v1862_v29, %v1875_v43  ;;  %v1876_v54 = vsub.f32 %v1859_v28, %v1866_v53  ;;  %v2033_v28 = vld [vmem:[#allocation22 + $0x58] sm:$0xff]  ;;  %v2032_v29 = vld [vmem:[#allocation22 + $0x50] sm:$0xff] }
 0x8f0   : > { %v1894_v46 = vsel %vm1863_vm10, %v2739_v44, 0.0  ;;  %2042 = vmatpush.msrb.mxu1 %v2033_v28 }
 0x8f1   : > { %v2741_v47 = vpop.eup %2740  ;;  %v1886_v24 = vmul.f32 1.442695, %v1879_v45  ;;  %1895 = vadd.xlane.f32.xlu0 %v1894_v46  ;;  %v1880_v55 = vmul.f32 1.442695, %v1876_v54 }
 0x8f2   : > { %v1891_v48 = vsel %vm1863_vm10, %v2741_v47, 0.0  ;;  %2043 = vmatpush.msrb.mxu1 %v2032_v29  ;;  %v2139_v29 = vld [vmem:[#allocation25 + $0x18] sm:$0xff] }
 0x8f3   : > { %2742 = vpow2.f32 %v1886_v24  ;;  %1892 = vadd.xlane.f32.xlu1 %v1891_v48 }
 0x8f4   : > { %2744 = vpow2.f32 %v1880_v55  ;;  %2044 = vmatpush.msrb.mxu1 %v2031_v30 }
 0x8f6   : > { %2045 = vmatpush.msrb.mxu1 %v2030_v31 }
 0x8f8   : > { %2046 = vmatpush.msrb.mxu1 %v2029_v32 }
 0x8f9   : > { %v2743_v50 = vpop.eup %2742 }
 0x8fa   : > { %v1897_v51 = vsel %vm1863_vm10, %v2743_v50, 0.0  ;;  %v2745_v56 = vpop.eup %2744  ;;  %2047 = vmatpush.msrb.mxu1 %v2028_v33 }
 0x8fb   : > { %1898 = vadd.xlane.f32.xlu2 %v1897_v51  ;;  %v1888_v57 = vsel %vm1863_vm10, %v2745_v56, 0.0  ;;  %v2110_v51 = vld [vmem:[#allocation23 + $0x78] sm:$0xff] }
 0x8fc   : > { %2048 = vmatpush.msrb.mxu1 %v2027_v34  ;;  %v2715_v34 = vld [vmem:[%s4039_s26] ss:$0 sm:$0xff] }
 0x8fe   : > { %2049 = vmatpush.msrb.mxu1 %v2026_v35 }
 0x900   : > { %2050 = vmatpush.msrb.mxu1 %v2025_v36 }
 0x902   : > { %2051 = vmatpush.msrb.mxu1 %v2024_v37  ;;  %v2138_v37 = vld [vmem:[#allocation25 + $0x10] sm:$0xff] }
 0x904   : > { %2052 = vmatpush.msrb.mxu1 %v2023_v38  ;;  %v2137_v38 = vld [vmem:[#allocation25 + $0x8] sm:$0xff] }
 0x905   : > { %2696 = vrot.lane.b32.xlu0 %v2695_v52, %s3322_s29 }
 0x906   : > { %2053 = vmatpush.msrb.mxu1 %v2022_v39  ;;  %v2136_v39 = vld [vmem:[#allocation25] sm:$0xff] }
 0x90c   : > { %2691 = vrot.lane.b32.xlu1 %v2695_v52, %s3323_s1 }
 0x913   : > { %2701 = vrot.lane.b32.xlu2 %v2695_v52, %s3321_s7  ;;  %v2109_v52 = vld [vmem:[#allocation23 + $0x70] sm:$0xff] }
 0x92f   : > { %1889 = vadd.xlane.f32.xlu0 %v1888_v57 }
 0x964   : > { %v1896_v58 = vpop.xlane.xlu0 %1895 }
 0x965   : > { %2746 = vrcp.f32 %v1896_v58 }
 0x966   : > { %v1893_v59 = vpop.xlane.xlu1 %1892 }
 0x96b   : > { %v2747_v60 = vpop.eup %2746 }
 0x96c   : > { %v1906_v2 = vmul.f32 %v2747_v60, %v2739_v44  ;;  %v2105_v60 = vld [vmem:[#allocation23 + $0x50] sm:$0xff] }
 0x96e   : > { %v1899_v0 = vpop.xlane.xlu2 %1898  ;;  %v1913_v14 = vmul.f32 %v2712_v1, %v1906_v2  ;;  %v2100_v2 = vld [vmem:[#allocation23 + $0x28] sm:$0xff] }
 0x96f   : > { %2748 = vrcp.f32 %v1899_v0  ;;  %v2108_v0 = vld [vmem:[#allocation23 + $0x68] sm:$0xff] }
 0x970   : > { %2750 = vrcp.f32 %v1893_v59  ;;  %v2106_v59 = vld [vmem:[#allocation23 + $0x58] sm:$0xff] }
 0x975   : > { %v2749_v61 = vpop.eup %2748 }
 0x976   : > { %v1907_v62 = vmul.f32 %v2749_v61, %v2743_v50  ;;  %v2702_v63 = vpop.permute.xlu2 %2701  ;;  %v2751_v13 = vpop.eup %2750  ;;  %v2104_v61 = vld [vmem:[#allocation23 + $0x48] sm:$0xff] }
 0x977   : > { %v2703_v3 = vunpack.i.l.bf16 %v2702_v63  ;;  %v2697_v4 = vpop.permute.xlu0 %2696  ;;  %v2704_v6 = vunpack.i.h.bf16 %v2702_v63  ;;  %v1905_v10 = vmul.f32 %v2751_v13, %v2741_v47  ;;  %v2713_v47 = vld [vmem:[%s4037_s25] ss:$0 sm:$0xff]  ;;  %v2102_v63 = vld [vmem:[#allocation23 + $0x38] sm:$0xff]  ;;  %s2191_s25 = sshll.u32 %s1058_s21, 4  ;;  %s2192_s25 = int_to_ptr.vmem [resolvable:$true] %s2191_s25 }
 0x978   : > { %v2698_v5 = vunpack.i.l.bf16 %v2697_v4  ;;  %v1914_v7 = vmul.f32 %v2712_v1, %v1907_v62  ;;  %v2699_v11 = vunpack.i.h.bf16 %v2697_v4  ;;  %v2103_v62 = vld [vmem:[#allocation23 + $0x40] sm:$0xff]  ;;  %v2098_v4 = vld [vmem:[#allocation23 + $0x18] sm:$0xff]  ;;  %v2150_v13 = vld [vmem:[#allocation25 + $0x70] sm:$0xff] }
 0x979   : > { %2001 = vmatpush.msrb.mxu0 %v2703_v3  ;;  %v1912_v17 = vmul.f32 %v2712_v1, %v1905_v10  ;;  %v2099_v3 = vld [vmem:[#allocation23 + $0x20] sm:$0xff] }
 0x97a   : > { %1978 = vmatpush.msrb.mxu3 %v2698_v5  ;;  %v2097_v5 = vld [vmem:[#allocation23 + $0x10] sm:$0xff] }
 0x97b   : > { %2002 = vmatpush.msrb.mxu0 %v2704_v6  ;;  %v2096_v6 = vld [vmem:[#allocation23 + $0x8] sm:$0xff] }
 0x97c   : > { %1979 = vmatpush.msrb.mxu3 %v2699_v11  ;;  %2498 = vmatmul.msk.f32.vlgmr.msrb.gmra.mxu0 %vm1863_vm10, %v1914_v7  ;;  %v2095_v7 = vld [vmem:[#allocation23] sm:$0xff]  ;;  %v2151_v11 = vld [vmem:[#allocation25 + $0x78] sm:$0xff] }
 0x97d   : > { %2497 = vmatmul.msk.f32.vlgmr.msrb.gmra.mxu3 %vm1863_vm10, %v1913_v14  ;;  %v2149_v14 = vld [vmem:[#allocation25 + $0x68] sm:$0xff] }
 0x97e   : > { %v2692_v9 = vpop.permute.xlu1 %2691  ;;  %2156 = vmatpush.msra.mxu3 %v2151_v11 }
 0x97f   : > { %v2693_v15 = vunpack.i.l.bf16 %v2692_v9  ;;  %v2694_v16 = vunpack.i.h.bf16 %v2692_v9 }
 0x980   : > { %2157 = vmatpush.msra.mxu3 %v2150_v13 }
 0x981   : > { %1955 = vmatpush.msrb.mxu2 %v2693_v15  ;;  %v2148_v15 = vld [vmem:[#allocation25 + $0x60] sm:$0xff] }
 0x982   : > { %2158 = vmatpush.msra.mxu3 %v2149_v14 }
 0x983   : > { %1956 = vmatpush.msrb.mxu2 %v2694_v16 }
 0x984   : > { %2496 = vmatmul.msk.f32.vlgmr.msrb.gmra.mxu2 %vm1863_vm10, %v1912_v17  ;;  %v2147_v17 = vld [vmem:[#allocation25 + $0x58] sm:$0xff]  ;;  %2159 = vmatpush.msra.mxu3 %v2148_v15 }
 0x985   : > { %2115 = vmatpush.msra.mxu2 %v2110_v51 }
 0x986   : > { %2160 = vmatpush.msra.mxu3 %v2147_v17 }
 0x987   : > { %2116 = vmatpush.msra.mxu2 %v2109_v52 }
 0x989   : > { %2117 = vmatpush.msra.mxu2 %v2108_v0 }
 0x9a2   : > { %v1890_v18 = vpop.xlane.xlu0 %1889 }
 0x9a3   : > { %2752 = vrcp.f32 %v1890_v18  ;;  %v2146_v18 = vld [vmem:[#allocation25 + $0x50] sm:$0xff] }
 0x9a4   : > { %2161 = vmatpush.msra.mxu3 %v2146_v18 }
 0x9a9   : > { %v2753_v19 = vpop.eup %2752 }
 0x9aa   : > { %v1904_v20 = vmul.f32 %v2753_v19, %v2745_v56  ;;  %v2756_v56 = vld [vmem:[#allocation8] ss:$0 sm:$0xff]  ;;  %v2145_v19 = vld [vmem:[#allocation25 + $0x48] sm:$0xff] }
 0x9ab   : > { %2162 = vmatpush.msra.mxu3 %v2145_v19 }
 0x9ac   : > { %v1911_v21 = vmul.f32 %v2712_v1, %v1904_v20  ;;  %v2101_v1 = vld [vmem:[#allocation23 + $0x30] sm:$0xff]  ;;  %v2144_v20 = vld [vmem:[#allocation25 + $0x40] sm:$0xff] }
 0x9ad   : > { %2163 = vmatpush.msra.mxu3 %v2144_v20 }
 0x9ae   : > { %2495 = vmatmul.msk.f32.vlgmr.msra.gmra.mxu1 %vm1863_vm10, %v1911_v21 }
 0x9f9   : > { %v2004_v12 = vpop.f32.mrf.mxu0 }
 0xa00   : > { %v1981_v8 = vpop.f32.mrf.mxu3 }
 0xa01   : > { %2012 = vrot.lane.b32.xlu2 %v1981_v8, %s3322_s29  ;;  %v2143_v8 = vld [vmem:[#allocation25 + $0x38] sm:$0xff] }
 0xa02   : > { %2164 = vmatpush.msra.mxu3 %v2143_v8 }
 0xa07   : > { %v1958_v22 = vpop.f32.mrf.mxu2 }
 0xa08   : > { %2008 = vrot.lane.b32.xlu1 %v1958_v22, %s3321_s7  ;;  %s4038_s7 = sld [smem:[#allocation51_spill]] }
 0xa0e   : > { %v2714_v31 = vld [vmem:[%s4038_s7] ss:$0 sm:$0xff]  ;;  %s3223_s7 = scalar_lea.hbm %s3222_s11, 8 }
 0xa0f   : > { %p3224_p7 = scmp.ne.s32.totalorder %s3222_s11, %s3223_s7  ;;  %p3229_p12 = scmp.lt.s32.totalorder %s3227_s10, %s3223_s7 }
 0xa10   : > { %2016 = vrot.lane.b32.xlu1 %v2004_v12, %s3323_s1  ;;  %v2142_v12 = vld [vmem:[#allocation25 + $0x30] sm:$0xff] }
 0xa11   : > { %2165 = vmatpush.msra.mxu3 %v2142_v12  ;;  %p3225_p9 = pnand %p3224_p7, %p3555_p5  ;;  %p3230_p1 = por %p3229_p12, %p3228_p2 }
 0xa13   : > { %2166 = vmatpush.msra.mxu3 %v2141_v25  ;;  %p3226_p0 = pneg %p3225_p9 }
 0xa15   : > { %2167 = vmatpush.msra.mxu3 %v2140_v27  ;;  %p3231_p6 = pnand %p3230_p1, %p3226_p0 }
 0xa17   : > { %2168 = vmatpush.msra.mxu3 %v2139_v29 }
 0xa19   : > { %2169 = vmatpush.msra.mxu3 %v2138_v37 }
 0xa1b   : > { %2170 = vmatpush.msra.mxu3 %v2137_v38 }
 0xa1d   : > { %2171 = vmatpush.msra.mxu3 %v2136_v39 }
 0xa2b   : > { %v1935_v41 = vpop.f32.mrf.mxu1 }
 0xa5b   : > { %v2013_v43 = vpop.permute.xlu2 %2012 }
 0xa7a   : > { %v2009_v40 = vpop.permute.xlu1 %2008 }
 0xa7b   : > { %v2019_v42 = vsel %vm1243_vm3, %v1935_v41, %v2009_v40  ;;  %v2716_v40 = vld [vmem:[%s4040_s3] ss:$0 sm:$0xff] }
 0xa7c   : > { %v2020_v44 = vsel %vm1504_vm5, %v2019_v42, %v2013_v43 }
 0xa82   : > { %v2017_v45 = vpop.permute.xlu1 %2016 }
 0xa83   : > { %v2021_v46 = vsel %vm1506_vm6, %v2020_v44, %v2017_v45  ;;  %v2717_v44 = vld [vmem:[%s4041_s20] ss:$0 sm:$0xff] }
 0xa84   : > { %2054 = vmatmul.f32.vlgmr.msrb.gmra.mxu1 %v2021_v46 }
 0xb01   : > { %v2055_v24 = vpop.f32.mrf.mxu1 }
 0xb02   : > { %v2058_v48 = vadd.f32 %v2055_v24, %v3785_v49  ;;  %v2107_v49 = vld [vmem:[#allocation23 + $0x60] sm:$0xff] }
 0xb03   : > { %2118 = vmatpush.msra.mxu2 %v2107_v49 }
 0xb04   : > { %v3869_v50 = vadd.f32 %v2713_v47, %v2058_v48 }
 0xb05   : > { %2119 = vmatpush.msra.mxu2 %v2106_v59 }
 0xb06   : > { %2066 = vadd.xlane.f32.xlu2 %v3869_v50 }
 0xb07   : > { %2120 = vmatpush.msra.mxu2 %v2105_v60 }
 0xb09   : > { %2121 = vmatpush.msra.mxu2 %v2104_v61 }
 0xb0b   : > { %2122 = vmatpush.msra.mxu2 %v2103_v62 }
 0xb0d   : > { %2123 = vmatpush.msra.mxu2 %v2102_v63 }
 0xb0f   : > { %2124 = vmatpush.msra.mxu2 %v2101_v1 }
 0xb11   : > { %2125 = vmatpush.msra.mxu2 %v2100_v2 }
 0xb13   : > { %2126 = vmatpush.msra.mxu2 %v2099_v3 }
 0xb15   : > { %2127 = vmatpush.msra.mxu2 %v2098_v4 }
 0xb17   : > { %2128 = vmatpush.msra.mxu2 %v2097_v5 }
 0xb19   : > { %2129 = vmatpush.msra.mxu2 %v2096_v6 }
 0xb1b   : > { %2130 = vmatpush.msra.mxu2 %v2095_v7 }
 0xb79   : > { %v2067_v53 = vpop.xlane.xlu2 %2066 }
 0xb7a   : > { %v2068_v54 = vmul.f32 0.03125, %v2067_v53 }
 0xb7c   : > { %v3873_v55 = vsub.f32 %v3869_v50, %v2068_v54 }
 0xb7e   : > { %v2070_v57 = vmul.f32 %v2756_v56, %v3873_v55 }
 0xb80   : > { %v2071_v58 = vmul.f32 %v2070_v57, %v2070_v57 }
 0xb82   : > { %2072 = vadd.xlane.f32.xlu1 %v2071_v58 }
 0xbf5   : > { %v2073_v10 = vpop.xlane.xlu1 %2072 }
 0xbf6   : > { %v2074_v9 = vmul.f32 0.03125, %v2073_v10 }
 0xbf8   : > { %v2075_v16 = vadd.f32 1e-12, %v2074_v9 }
 0xbfa   : > { %2754 = vrsqrt.f32 %v2075_v16  ;;  %vm2082_vm12 = vweird.f32 %v2075_v16 }
 0xc00   : > { %v2755_v21 = vpop.eup %2754 }
 0xc01   : > { %v2077_v22 = vmul.f32 %v2755_v21, %v2075_v16  ;;  %vm2083_vm11 = vweird.f32 %v2755_v21 }
 0xc02   : > { %vm2084_vm13 = vmor %vm2082_vm12, %vm2083_vm11 }
 0xc03   : > { %v2078_v23 = vmul.f32 %v2755_v21, %v2077_v22 }
 0xc05   : > { %v2079_v26 = vmul.f32 0.5, %v2078_v23 }
 0xc07   : > { %v2080_v28 = vsub.f32 1.5, %v2079_v26 }
 0xc09   : > { %v2081_v30 = vmul.f32 %v2755_v21, %v2080_v28 }
 0xc0b   : > { %v2085_v32 = vsel %vm2084_vm13, %v2755_v21, %v2081_v30 }
 0xc0c   : > { %v2086_v33 = vmul.f32 %v2085_v32, %v3873_v55 }
 0xc0e   : > { %v2090_v35 = vmul.f32 %v2714_v31, %v2086_v33 }
 0xc10   : > { %v2094_v36 = vadd.f32 %v2715_v34, %v2090_v35 }
 0xc12   : > { %2131 = vmatmul.f32.vlgmr.msra.gmra.mxu2 %v2094_v36 }
 0xc95   : > { %v2132_v41 = vpop.f32.mrf.mxu2 }
 0xc96   : > { %v2133_v42 = vadd.f32 %v2716_v40, %v2132_v41 }
 0xc98   : > { %v2135_v43 = vmax.f32 %v2133_v42, 0.0 }
 0xc9a   : > { %2172 = vmatmul.f32.vlgmr.msra.gmra.mxu3 %v2135_v43 }
 0xd1d   : > { %v2173_v45 = vpop.f32.mrf.mxu3 }
 0xd1e   : > { %v2174_v46 = vadd.f32 %v2717_v44, %v2173_v45 }
 0xd20   : > { %v2176_v47 = vadd.f32 %v2174_v46, %v3869_v50 }
 0xd22   : > { %2177 = vst [vmem:[%s1058_s21] sm:$0xff] %v2176_v47 }
 0xd23   : > { %3234 = shalt.err (!%p3231_p6)
}
 0xd24   : > { %2558 = dma.vmem_to_hbm [thread:$0]  (%p3555_p5), %s2192_s25, 128, %s2194_s28, %s2179_s8  }
 0xd25 PF: > { %s4044_s9 = sld [smem:[#allocation36_spill]]  ;;  %p4046_p8 = scmp.ge.s32.totalorder %s3301_s30, 2 }
 0xd27   : > { %p2608_p10 = pnand %p4046_p8, %p3559_p4 }
 0xd29   : > { %p2609_p11 = pneg %p2608_p10 }
 0xd2b   : > { %s2205_s3 = sand.u32 1, %s4044_s9  }
 0xd2c   : > { %s2206_s22 = scalar_lea.sflag [#allocation4], %s2205_s3 }
 0xd2d   : > { %3284 = dma.done.wait (%p2609_p11), %s2206_s22, 128  }
 0xd2e   : > { %3286 = vsyncadd (%p2609_p11), %s2206_s22, 4294967168  ;;  %s4047_s30 = sld [smem:[#allocation38_spill]]  ;;  %s4050_s29 = smov %s3293_s2 }
 0xd2f   : > { %s4048_s15 = sld [smem:[#allocation37_spill]] }
 0xd30   : > { %s4049_s6 = sld [smem:[#allocation39_spill]] }
 0xd34   : > { %p47_p13 = scmp.ge.s32.totalorder %s4047_s30, 4  }
 0xd35   : > { %s4051_s2 = smov %s4048_s15 }
 0xd36   :  { %49 = sbr.rel (!%p47_p13) target bundleno = 36 (0x24), region = 240 }
 0xd3b   :  { %2212 = vsyncpa [#allocation3], 1 }
 0xd3c   :  { %2214 = vsyncpa [#allocation3 + $0x1], 1 }
 0xd3d   :  { %2215 = vsyncpa [#allocation6], 1 }
 0xd3e   :  { %2217 = vsyncpa [#allocation6 + $0x1], 1 }
 0xd3f   :  { %2218 = vsyncpa [#allocation9], 1 }
 0xd40   :  { %2219 = vsyncpa [#allocation12], 1 }
 0xd41   :  { %2220 = vsyncpa [#allocation15], 1 }
 0xd42   :  { %2221 = vsyncpa [#allocation18], 1 }
 0xd43   :  { %2222 = vsyncpa [#allocation21], 1 }
 0xd44   :  { %2223 = vsyncpa [#allocation24], 1 }
 0xd45   :  { %2224 = vsyncpa [#allocation4], 1 }
 0xd46   :  { %2226 = vsyncpa [#allocation4 + $0x1], 1 }

</bundles_post_ra>
